<compile_context>
chip_gen: v5e
topology: v5e:2x2
jax: 0.10.0
libtpu: 0.0.40
codegen_flags: <defaults>
</compile_context>

<pallas_src>
import math

import jax
import jax.numpy as jnp
from jax.experimental import pallas as pl
from jax.experimental.pallas import tpu as pltpu


def _ssp(v):
    # shifted softplus: log(1 + exp(v)) - log(2), numerically stable, f32.
    return jnp.maximum(v, 0.0) + jnp.log1p(jnp.exp(-jnp.abs(v))) - math.log(2.0)


def _make_kernel(B, A, N, F, nab):
    AN = A * N
    M_pair = B * AN      # rows of pairwise (atom, neighbor) quantities
    M_atom = B * A       # rows of per-atom quantities

    def kernel(x_ref, f_ref, oh_ref,
               w1_ref, b1_ref, w2_ref, b2_ref,
               win_ref, wout_ref, bout_ref, wd_ref, bd_ref,
               o_ref):
        # ---- filter-generating network (Dense + ssp + Dense), bf16 MXU ----
        h = jnp.dot(f_ref[...], w1_ref[...],
                    preferred_element_type=jnp.float32) + b1_ref[...]
        h = _ssp(h)
        W = jnp.dot(h.astype(jnp.bfloat16), w2_ref[...],
                    preferred_element_type=jnp.float32) + b2_ref[...]   # (B*AN, F)

        # ---- in2f projection of atom embeddings ----
        y = jnp.dot(x_ref[...], win_ref[...],
                    preferred_element_type=jnp.float32)                 # (B*A, F)

        # ---- per-system neighbor gather (one-hot already carries
        #      cosine-cutoff * neighbor_mask, so no further masking) ----
        y_nbh = jnp.einsum('bpa,baf->bpf', oh_ref[...],
                           y.reshape(B, A, F).astype(jnp.bfloat16),
                           preferred_element_type=jnp.float32)          # (B, AN, F)

        # ---- continuous-filter conv + neighbor-group sum (f32, linear) ----
        prod = y_nbh.reshape(M_pair, F) * W
        y_agg = prod.reshape(B, A, N, F).sum(axis=2).reshape(M_atom, F)

        # ---- f2out (Dense + ssp) ----
        v = _ssp(jnp.dot(y_agg.astype(jnp.bfloat16), wout_ref[...],
                         preferred_element_type=jnp.float32) + bout_ref[...])

        # ---- final interaction Dense (no activation) ----
        out = jnp.dot(v.astype(jnp.bfloat16), wd_ref[...],
                      preferred_element_type=jnp.float32) + bd_ref[...]

        o_ref[...] = out.astype(o_ref.dtype)

    return kernel


def schnet_interaction_pallas(x, r_ij, neighbors, neighbor_mask, f_ij, params,
                              cutoff):
    B, A, nab = x.shape
    N = r_ij.shape[-1]
    if f_ij is None:  # module default: expand distances trivially
        f_ij = r_ij[..., None]
    S = f_ij.shape[-1]
    F = params["w1"].shape[1]
    AN = A * N

    # ---- host-side (XLA) precompute / layout plumbing ----
    x2 = x.reshape(B * A, nab).astype(jnp.bfloat16)
    f2 = f_ij.reshape(B * AN, S).astype(jnp.bfloat16)

    # cosine cutoff * neighbor mask, folded into a per-system gather one-hot:
    #   onehot_cm[b, p, a] = cm[b, p] * [neighbors[b, p] == a]
    cm = 0.5 * (jnp.cos(r_ij * (math.pi / cutoff)) + 1.0)
    cm = cm * (r_ij < cutoff).astype(jnp.float32) * neighbor_mask.astype(jnp.float32)
    cm = cm.reshape(B, AN, 1)
    cols = jnp.arange(A, dtype=neighbors.dtype)[None, None, :]
    onehot = (neighbors.reshape(B, AN, 1) == cols).astype(jnp.float32)
    onehot_cm = (onehot * cm).astype(jnp.bfloat16)                      # (B, AN, A)

    wb = lambda k: params[k].astype(jnp.bfloat16)   # MXU weights -> bf16
    fb = lambda k: params[k].astype(jnp.float32)    # biases stay f32

    inputs = (x2, f2, onehot_cm,
              wb("w1"), fb("b1"), wb("w2"), fb("b2"),
              wb("w_in2f"), wb("w_f2out"), fb("b_f2out"),
              wb("w_dense"), fb("b_dense"))

    def full_spec(arr):
        nd = arr.ndim
        return pl.BlockSpec(arr.shape, lambda i, _nd=nd: (0,) * _nd)

    in_specs = [full_spec(a) for a in inputs]
    out_shape = jax.ShapeDtypeStruct((B * A, nab), jnp.float32)
    out_spec = pl.BlockSpec((B * A, nab), lambda i: (0, 0))

    # VMEM budget: all buffers, x2 for double-buffering, plus slack; clamped
    # so it is safe on both 64 MiB (v7x) and 128 MiB (v5e/v6e) parts.
    total_bytes = sum(int(a.size) * a.dtype.itemsize for a in inputs)
    total_bytes += B * A * nab * 4
    vmem_limit = int(min(max(2 * total_bytes + (4 << 20), 32 << 20), 64 << 20))

    kernel = _make_kernel(B, A, N, F, nab)
    out = pl.pallas_call(
        kernel,
        out_shape=out_shape,
        grid=(1,),
        in_specs=in_specs,
        out_specs=out_spec,
        compiler_params=pltpu.CompilerParams(
            dimension_semantics=("arbitrary",),
            vmem_limit_bytes=vmem_limit),
    )(*inputs)
    return out.reshape(B, A, nab)


def schnet_interaction_ref(x, r_ij, neighbors, neighbor_mask, f_ij, p, cutoff):
    """Pure-JAX f32 reference (mirrors the PyTorch module)."""
    hp = jax.lax.Precision.HIGHEST
    h = _ssp(jnp.dot(f_ij, p["w1"], precision=hp) + p["b1"])
    W = jnp.dot(h, p["w2"], precision=hp) + p["b2"]
    C = 0.5 * (jnp.cos(r_ij * math.pi / cutoff) + 1.0) * (r_ij < cutoff)
    W = W * C[..., None]
    y = jnp.dot(x, p["w_in2f"], precision=hp)                 # (B, A, F)
    y_nbh = jax.vmap(lambda yb, nb: yb[nb])(y, neighbors)     # (B, A, N, F)
    prod = y_nbh * W * neighbor_mask[..., None]
    y_agg = prod.sum(axis=2)
    v = _ssp(jnp.dot(y_agg, p["w_f2out"], precision=hp) + p["b_f2out"])
    return jnp.dot(v, p["w_dense"], precision=hp) + p["b_dense"]


if __name__ == "__main__":
    # Small, module-consistent shapes.
    B, A, N = 8, 8, 8            # batch, atoms, neighbors
    n_atom_basis, n_spatial_basis, n_filters = 32, 16, 32
    cutoff = 5.0

    key = jax.random.PRNGKey(0)
    ks = jax.random.split(key, 16)

    params = {
        "w1":      0.2 * jax.random.normal(ks[0], (n_spatial_basis, n_filters), jnp.float32),
        "b1":      0.1 * jax.random.normal(ks[1], (1, n_filters), jnp.float32),
        "w2":      0.2 * jax.random.normal(ks[2], (n_filters, n_filters), jnp.float32),
        "b2":      0.1 * jax.random.normal(ks[3], (1, n_filters), jnp.float32),
        "w_in2f":  0.2 * jax.random.normal(ks[4], (n_atom_basis, n_filters), jnp.float32),
        "w_f2out": 0.2 * jax.random.normal(ks[5], (n_filters, n_atom_basis), jnp.float32),
        "b_f2out": 0.1 * jax.random.normal(ks[6], (1, n_atom_basis), jnp.float32),
        "w_dense": 0.2 * jax.random.normal(ks[7], (n_atom_basis, n_atom_basis), jnp.float32),
        "b_dense": 0.1 * jax.random.normal(ks[8], (1, n_atom_basis), jnp.float32),
    }

    x = jax.random.normal(ks[9], (B, A, n_atom_basis), jnp.float32)
    r_ij = jax.random.uniform(ks[10], (B, A, N), jnp.float32, 0.5, 1.2 * cutoff)
    neighbors = jax.random.randint(ks[11], (B, A, N), 0, A, jnp.int32)
    neighbor_mask = (jax.random.uniform(ks[12], (B, A, N)) > 0.2).astype(jnp.float32)
    f_ij = jax.random.normal(ks[13], (B, A, N, n_spatial_basis), jnp.float32)

    out = schnet_interaction_pallas(x, r_ij, neighbors, neighbor_mask, f_ij,
                                    params, cutoff)
    out = jax.block_until_ready(out)

    ref = schnet_interaction_ref(x, r_ij, neighbors, neighbor_mask, f_ij,
                                 params, cutoff)
    assert out.shape == (B, A, n_atom_basis)
    # bf16 MXU operands with f32 accumulation: check to 1% of the output scale.
    scale = float(jnp.max(jnp.abs(ref)))
    err = float(jnp.max(jnp.abs(out - ref)))
    assert err < 1e-2 * (1.0 + scale), f"mismatch vs reference: {err} (scale {scale})"

    print("KERNEL_OK")
</pallas_src>

<mosaic_0001>
module attributes {stable_mosaic.version = 11 : i64} {
  func.func @kernel(%arg0: i32, %arg1: memref<64x32xbf16, #tpu.memory_space<vmem>>, %arg2: memref<512x16xbf16, #tpu.memory_space<vmem>>, %arg3: memref<8x64x8xbf16, #tpu.memory_space<vmem>>, %arg4: memref<16x32xbf16, #tpu.memory_space<vmem>>, %arg5: memref<1x32xf32, #tpu.memory_space<vmem>>, %arg6: memref<32x32xbf16, #tpu.memory_space<vmem>>, %arg7: memref<1x32xf32, #tpu.memory_space<vmem>>, %arg8: memref<32x32xbf16, #tpu.memory_space<vmem>>, %arg9: memref<32x32xbf16, #tpu.memory_space<vmem>>, %arg10: memref<1x32xf32, #tpu.memory_space<vmem>>, %arg11: memref<32x32xbf16, #tpu.memory_space<vmem>>, %arg12: memref<1x32xf32, #tpu.memory_space<vmem>>, %arg13: memref<64x32xf32, #tpu.memory_space<vmem>>) attributes {dimension_semantics = [#tpu.dimension_semantics<arbitrary>], iteration_bounds = array<i64: 1>, scalar_prefetch = 0 : i64, scratch_operands = 0 : i64, tpu.core_type = #tpu.core_type<tc>, window_params = [{pipeline_mode = #tpu.pipeline_mode<synchronous>, transform_indices = @transform_0, window_bounds = array<i64: 64, 32>}, {pipeline_mode = #tpu.pipeline_mode<synchronous>, transform_indices = @transform_1, window_bounds = array<i64: 512, 16>}, {pipeline_mode = #tpu.pipeline_mode<synchronous>, transform_indices = @transform_2, window_bounds = array<i64: 8, 64, 8>}, {pipeline_mode = #tpu.pipeline_mode<synchronous>, transform_indices = @transform_3, window_bounds = array<i64: 16, 32>}, {pipeline_mode = #tpu.pipeline_mode<synchronous>, transform_indices = @transform_4, window_bounds = array<i64: 1, 32>}, {pipeline_mode = #tpu.pipeline_mode<synchronous>, transform_indices = @transform_5, window_bounds = array<i64: 32, 32>}, {pipeline_mode = #tpu.pipeline_mode<synchronous>, transform_indices = @transform_6, window_bounds = array<i64: 1, 32>}, {pipeline_mode = #tpu.pipeline_mode<synchronous>, transform_indices = @transform_7, window_bounds = array<i64: 32, 32>}, {pipeline_mode = #tpu.pipeline_mode<synchronous>, transform_indices = @transform_8, window_bounds = array<i64: 32, 32>}, {pipeline_mode = #tpu.pipeline_mode<synchronous>, transform_indices = @transform_9, window_bounds = array<i64: 1, 32>}, {pipeline_mode = #tpu.pipeline_mode<synchronous>, transform_indices = @transform_10, window_bounds = array<i64: 32, 32>}, {pipeline_mode = #tpu.pipeline_mode<synchronous>, transform_indices = @transform_11, window_bounds = array<i64: 1, 32>}, {pipeline_mode = #tpu.pipeline_mode<synchronous>, transform_indices = @transform_12, window_bounds = array<i64: 64, 32>}]} {
    %c0 = arith.constant 0 : index
    %c0_0 = arith.constant 0 : index
    %0 = vector.load %arg2[%c0, %c0_0] : memref<512x16xbf16, #tpu.memory_space<vmem>>, vector<512x16xbf16>
    %c0_1 = arith.constant 0 : index
    %c0_2 = arith.constant 0 : index
    %1 = vector.load %arg4[%c0_1, %c0_2] : memref<16x32xbf16, #tpu.memory_space<vmem>>, vector<16x32xbf16>
    %cst = arith.constant dense<0.000000e+00> : vector<512x32xf32>
    %2 = tpu.matmul %0, %1, %cst {dimension_numbers = #tpu.dot_dimension_numbers<[1], [0], [0], [1], [0, 0, 1, 1], [], []>} : vector<512x16xbf16>, vector<16x32xbf16>, vector<512x32xf32> -> vector<512x32xf32>
    %c0_3 = arith.constant 0 : index
    %c0_4 = arith.constant 0 : index
    %3 = vector.load %arg5[%c0_3, %c0_4] : memref<1x32xf32, #tpu.memory_space<vmem>>, vector<1x32xf32>
    %4 = vector.broadcast %3 : vector<1x32xf32> to vector<512x32xf32>
    %5 = arith.addf %2, %4 : vector<512x32xf32>
    %cst_5 = arith.constant 0.000000e+00 : f32
    %6 = vector.broadcast %cst_5 : f32 to vector<512x32xf32>
    %7 = arith.maximumf %5, %6 : vector<512x32xf32>
    %8 = math.absf %5 : vector<512x32xf32>
    %cst_6 = arith.constant 0.000000e+00 : f32
    %9 = vector.broadcast %cst_6 : f32 to vector<512x32xf32>
    %10 = arith.subf %9, %8 : vector<512x32xf32>
    %11 = math.exp %10 : vector<512x32xf32>
    %12 = math.log1p %11 : vector<512x32xf32>
    %13 = arith.addf %7, %12 : vector<512x32xf32>
    %cst_7 = arith.constant 0.693147182 : f32
    %14 = vector.broadcast %cst_7 : f32 to vector<512x32xf32>
    %15 = arith.subf %13, %14 : vector<512x32xf32>
    %16 = arith.truncf %15 : vector<512x32xf32> to vector<512x32xbf16>
    %c0_8 = arith.constant 0 : index
    %c0_9 = arith.constant 0 : index
    %17 = vector.load %arg6[%c0_8, %c0_9] : memref<32x32xbf16, #tpu.memory_space<vmem>>, vector<32x32xbf16>
    %cst_10 = arith.constant dense<0.000000e+00> : vector<512x32xf32>
    %18 = tpu.matmul %16, %17, %cst_10 {dimension_numbers = #tpu.dot_dimension_numbers<[1], [0], [0], [1], [0, 0, 1, 1], [], []>} : vector<512x32xbf16>, vector<32x32xbf16>, vector<512x32xf32> -> vector<512x32xf32>
    %c0_11 = arith.constant 0 : index
    %c0_12 = arith.constant 0 : index
    %19 = vector.load %arg7[%c0_11, %c0_12] : memref<1x32xf32, #tpu.memory_space<vmem>>, vector<1x32xf32>
    %20 = vector.broadcast %19 : vector<1x32xf32> to vector<512x32xf32>
    %21 = arith.addf %18, %20 : vector<512x32xf32>
    %c0_13 = arith.constant 0 : index
    %c0_14 = arith.constant 0 : index
    %22 = vector.load %arg1[%c0_13, %c0_14] : memref<64x32xbf16, #tpu.memory_space<vmem>>, vector<64x32xbf16>
    %c0_15 = arith.constant 0 : index
    %c0_16 = arith.constant 0 : index
    %23 = vector.load %arg8[%c0_15, %c0_16] : memref<32x32xbf16, #tpu.memory_space<vmem>>, vector<32x32xbf16>
    %cst_17 = arith.constant dense<0.000000e+00> : vector<64x32xf32>
    %24 = tpu.matmul %22, %23, %cst_17 {dimension_numbers = #tpu.dot_dimension_numbers<[1], [0], [0], [1], [0, 0, 1, 1], [], []>} : vector<64x32xbf16>, vector<32x32xbf16>, vector<64x32xf32> -> vector<64x32xf32>
    %c0_18 = arith.constant 0 : index
    %c0_19 = arith.constant 0 : index
    %c0_20 = arith.constant 0 : index
    %25 = vector.load %arg3[%c0_18, %c0_19, %c0_20] : memref<8x64x8xbf16, #tpu.memory_space<vmem>>, vector<8x64x8xbf16>
    %26 = vector.shape_cast %24 : vector<64x32xf32> to vector<8x8x32xf32>
    %27 = arith.truncf %26 : vector<8x8x32xf32> to vector<8x8x32xbf16>
    "tpu.trace_start"() <{level = 10 : i32, message = "bpa,baf->bpf"}> : () -> ()
    %cst_21 = arith.constant dense<0.000000e+00> : vector<8x64x32xf32>
    %28 = tpu.matmul %25, %27, %cst_21 {dimension_numbers = #tpu.dot_dimension_numbers<[2], [1], [1], [2], [0, 0, 0, 1, 1, 2], [0], [0]>} : vector<8x64x8xbf16>, vector<8x8x32xbf16>, vector<8x64x32xf32> -> vector<8x64x32xf32>
    "tpu.trace_stop"() : () -> ()
    %29 = vector.shape_cast %28 : vector<8x64x32xf32> to vector<512x32xf32>
    %30 = arith.mulf %29, %21 : vector<512x32xf32>
    %31 = vector.shape_cast %30 : vector<512x32xf32> to vector<8x8x8x32xf32>
    %cst_22 = arith.constant dense<0.000000e+00> : vector<8x8x32xf32>
    %32 = vector.multi_reduction <add>, %31, %cst_22 [2] : vector<8x8x8x32xf32> to vector<8x8x32xf32>
    %33 = vector.shape_cast %32 : vector<8x8x32xf32> to vector<64x32xf32>
    %34 = arith.truncf %33 : vector<64x32xf32> to vector<64x32xbf16>
    %c0_23 = arith.constant 0 : index
    %c0_24 = arith.constant 0 : index
    %35 = vector.load %arg9[%c0_23, %c0_24] : memref<32x32xbf16, #tpu.memory_space<vmem>>, vector<32x32xbf16>
    %cst_25 = arith.constant dense<0.000000e+00> : vector<64x32xf32>
    %36 = tpu.matmul %34, %35, %cst_25 {dimension_numbers = #tpu.dot_dimension_numbers<[1], [0], [0], [1], [0, 0, 1, 1], [], []>} : vector<64x32xbf16>, vector<32x32xbf16>, vector<64x32xf32> -> vector<64x32xf32>
    %c0_26 = arith.constant 0 : index
    %c0_27 = arith.constant 0 : index
    %37 = vector.load %arg10[%c0_26, %c0_27] : memref<1x32xf32, #tpu.memory_space<vmem>>, vector<1x32xf32>
    %38 = vector.broadcast %37 : vector<1x32xf32> to vector<64x32xf32>
    %39 = arith.addf %36, %38 : vector<64x32xf32>
    %cst_28 = arith.constant 0.000000e+00 : f32
    %40 = vector.broadcast %cst_28 : f32 to vector<64x32xf32>
    %41 = arith.maximumf %39, %40 : vector<64x32xf32>
    %42 = math.absf %39 : vector<64x32xf32>
    %cst_29 = arith.constant 0.000000e+00 : f32
    %43 = vector.broadcast %cst_29 : f32 to vector<64x32xf32>
    %44 = arith.subf %43, %42 : vector<64x32xf32>
    %45 = math.exp %44 : vector<64x32xf32>
    %46 = math.log1p %45 : vector<64x32xf32>
    %47 = arith.addf %41, %46 : vector<64x32xf32>
    %cst_30 = arith.constant 0.693147182 : f32
    %48 = vector.broadcast %cst_30 : f32 to vector<64x32xf32>
    %49 = arith.subf %47, %48 : vector<64x32xf32>
    %50 = arith.truncf %49 : vector<64x32xf32> to vector<64x32xbf16>
    %c0_31 = arith.constant 0 : index
    %c0_32 = arith.constant 0 : index
    %51 = vector.load %arg11[%c0_31, %c0_32] : memref<32x32xbf16, #tpu.memory_space<vmem>>, vector<32x32xbf16>
    %cst_33 = arith.constant dense<0.000000e+00> : vector<64x32xf32>
    %52 = tpu.matmul %50, %51, %cst_33 {dimension_numbers = #tpu.dot_dimension_numbers<[1], [0], [0], [1], [0, 0, 1, 1], [], []>} : vector<64x32xbf16>, vector<32x32xbf16>, vector<64x32xf32> -> vector<64x32xf32>
    %c0_34 = arith.constant 0 : index
    %c0_35 = arith.constant 0 : index
    %53 = vector.load %arg12[%c0_34, %c0_35] : memref<1x32xf32, #tpu.memory_space<vmem>>, vector<1x32xf32>
    %54 = vector.broadcast %53 : vector<1x32xf32> to vector<64x32xf32>
    %55 = arith.addf %52, %54 : vector<64x32xf32>
    %c0_36 = arith.constant 0 : index
    %c0_37 = arith.constant 0 : index
    %56 = vector.load %arg13[%c0_36, %c0_37] : memref<64x32xf32, #tpu.memory_space<vmem>>, vector<64x32xf32>
    tpu.vector_store %arg13[%c0_36, %c0_37], %55 {strides = array<i32>} : memref<64x32xf32, #tpu.memory_space<vmem>>, vector<64x32xf32>,
    return
  }
  func.func @transform_0(%arg0: i32) -> (i32, i32) {
    %c0_i32 = arith.constant 0 : i32
    %c0_i32_0 = arith.constant 0 : i32
    %c0_i32_1 = arith.constant 0 : i32
    return %c0_i32, %c0_i32_0 : i32, i32
  }
  func.func @transform_1(%arg0: i32) -> (i32, i32) {
    %c0_i32 = arith.constant 0 : i32
    %c0_i32_0 = arith.constant 0 : i32
    %c0_i32_1 = arith.constant 0 : i32
    return %c0_i32, %c0_i32_0 : i32, i32
  }
  func.func @transform_2(%arg0: i32) -> (i32, i32, i32) {
    %c0_i32 = arith.constant 0 : i32
    %c0_i32_0 = arith.constant 0 : i32
    %c0_i32_1 = arith.constant 0 : i32
    %c0_i32_2 = arith.constant 0 : i32
    return %c0_i32, %c0_i32_0, %c0_i32_1 : i32, i32, i32
  }
  func.func @transform_3(%arg0: i32) -> (i32, i32) {
    %c0_i32 = arith.constant 0 : i32
    %c0_i32_0 = arith.constant 0 : i32
    %c0_i32_1 = arith.constant 0 : i32
    return %c0_i32, %c0_i32_0 : i32, i32
  }
  func.func @transform_4(%arg0: i32) -> (i32, i32) {
    %c0_i32 = arith.constant 0 : i32
    %c0_i32_0 = arith.constant 0 : i32
    %c0_i32_1 = arith.constant 0 : i32
    return %c0_i32, %c0_i32_0 : i32, i32
  }
  func.func @transform_5(%arg0: i32) -> (i32, i32) {
    %c0_i32 = arith.constant 0 : i32
    %c0_i32_0 = arith.constant 0 : i32
    %c0_i32_1 = arith.constant 0 : i32
    return %c0_i32, %c0_i32_0 : i32, i32
  }
  func.func @transform_6(%arg0: i32) -> (i32, i32) {
    %c0_i32 = arith.constant 0 : i32
    %c0_i32_0 = arith.constant 0 : i32
    %c0_i32_1 = arith.constant 0 : i32
    return %c0_i32, %c0_i32_0 : i32, i32
  }
  func.func @transform_7(%arg0: i32) -> (i32, i32) {
    %c0_i32 = arith.constant 0 : i32
    %c0_i32_0 = arith.constant 0 : i32
    %c0_i32_1 = arith.constant 0 : i32
    return %c0_i32, %c0_i32_0 : i32, i32
  }
  func.func @transform_8(%arg0: i32) -> (i32, i32) {
    %c0_i32 = arith.constant 0 : i32
    %c0_i32_0 = arith.constant 0 : i32
    %c0_i32_1 = arith.constant 0 : i32
    return %c0_i32, %c0_i32_0 : i32, i32
  }
  func.func @transform_9(%arg0: i32) -> (i32, i32) {
    %c0_i32 = arith.constant 0 : i32
    %c0_i32_0 = arith.constant 0 : i32
    %c0_i32_1 = arith.constant 0 : i32
    return %c0_i32, %c0_i32_0 : i32, i32
  }
  func.func @transform_10(%arg0: i32) -> (i32, i32) {
    %c0_i32 = arith.constant 0 : i32
    %c0_i32_0 = arith.constant 0 : i32
    %c0_i32_1 = arith.constant 0 : i32
    return %c0_i32, %c0_i32_0 : i32, i32
  }
  func.func @transform_11(%arg0: i32) -> (i32, i32) {
    %c0_i32 = arith.constant 0 : i32
    %c0_i32_0 = arith.constant 0 : i32
    %c0_i32_1 = arith.constant 0 : i32
    return %c0_i32, %c0_i32_0 : i32, i32
  }
  func.func @transform_12(%arg0: i32) -> (i32, i32) {
    %c0_i32 = arith.constant 0 : i32
    %c0_i32_0 = arith.constant 0 : i32
    %c0_i32_1 = arith.constant 0 : i32
    return %c0_i32, %c0_i32_0 : i32, i32
  }
}

</mosaic_0001>

<bundles_post_ra>
// kernel: tpu_custom_call.1
= control target key start
LH: loop header
LB: loop body
LE: loop exit
PB: predicated region body
PF: predicated region fallthrough
CT: control target
= control target key end

     0   :  { %vm278_vm0 = vcmask 130048   ;;  %vm1620_vm3 = vcmask 261120   ;;  %s5676_s3 = inlined_call_operand.vmem [shape: bf16[16,32], index: 3, kind: input, shape index: {}]   ;;  %s5677_s1 = inlined_call_operand.vmem [shape: bf16[512,16], index: 1, kind: input, shape index: {}]   ;;  %s5678_s4 = inlined_call_operand.vmem [shape: f32[1,32], index: 4, kind: input, shape index: {}]   ;;  %s5679_s5 = inlined_call_operand.vmem [shape: bf16[32,32], index: 5, kind: input, shape index: {}]   ;;  %s5680_s6 = inlined_call_operand.vmem [shape: f32[1,32], index: 6, kind: input, shape index: {}]   ;;  %s5681_s7 = inlined_call_operand.vmem [shape: bf16[32,32], index: 7, kind: input, shape index: {}]   ;;  %s5682_s0 = inlined_call_operand.vmem [shape: bf16[64,32], index: 0, kind: input, shape index: {}]   ;;  %s5683_s2 = inlined_call_operand.vmem [shape: bf16[8,64,8], index: 2, kind: input, shape index: {}]   ;;  %s5684_s8 = inlined_call_operand.vmem [shape: bf16[32,32], index: 8, kind: input, shape index: {}]   ;;  %s5685_s9 = inlined_call_operand.vmem [shape: f32[1,32], index: 9, kind: input, shape index: {}]   ;;  %s5686_s10 = inlined_call_operand.vmem [shape: bf16[32,32], index: 10, kind: input, shape index: {}]   ;;  %s5687_s11 = inlined_call_operand.vmem [shape: f32[1,32], index: 11, kind: input, shape index: {}]   ;;  %s5688_s12 = inlined_call_operand.vmem [shape: f32[64,32], index: 12, kind: output, shape index: {}]  }
   0x1   :  { %v4114_v0 = vld [vmem:[%s5676_s3] sm:$0xff]  ;;  %v4083_v2 = vld [vmem:[%s5677_s1 + $0x8] sm:$0xff]  ;;  %v4084_v3 = vld [vmem:[%s5677_s1 + $0x10] sm:$0xff] }
   0x2   :  { %v4082_v1 = vld [vmem:[%s5677_s1] sm:$0xff]  ;;  %382 = vmatpush.bf16.msra.mxu0 %v4114_v0  ;;  %4159 = vmatpush.bf16.msra.mxu3 %v4114_v0  ;;  %v4085_v4 = vld [vmem:[%s5677_s1 + $0x18] sm:$0xff]  ;;  %v4087_v6 = vld [vmem:[%s5677_s1 + $0x28] sm:$0xff] }
   0x3   :  { %v4086_v5 = vld [vmem:[%s5677_s1 + $0x20] sm:$0xff]  ;;  %v4088_v7 = vld [vmem:[%s5677_s1 + $0x30] sm:$0xff]  ;;  %v4089_v8 = vld [vmem:[%s5677_s1 + $0x38] sm:$0xff] }
   0x4   :  { %v4560_v9 = vld [vmem:[%s5678_s4] ss:$0 sm:$0xff]  ;;  %v4116_v13 = vld [vmem:[%s5679_s5 + $0x8] sm:$0xff]  ;;  %v4092_v49 = vld [vmem:[%s5677_s1 + $0x50] sm:$0xff] }
   0x5   :  { %3726 = vmatmul.msk.bf16.vlgmr.msra.gmra.mxu0 %vm278_vm0, %v4082_v1  ;;  %v4090_v10 = vld [vmem:[%s5677_s1 + $0x40] sm:$0xff]  ;;  %1723 = vmatpush.bf16.msra.mxu1 %v4116_v13  ;;  %v4091_v24 = vld [vmem:[%s5677_s1 + $0x48] sm:$0xff] }
   0x6   :  { %4160 = vmatpush.bf16.msra.mxu2 %v4116_v13  ;;  %v4115_v16 = vld [vmem:[%s5679_s5] sm:$0xff] }
   0x9   :  { %1724 = vmatpush.bf16.msra.mxu1 %v4115_v16 }
   0xa   :  { %4161 = vmatpush.bf16.msra.mxu2 %v4115_v16 }
  0x15   :  { %3727 = vmatmul.msk.bf16.gmra.mxu0 %vm278_vm0, %v4083_v2 }
  0x25   :  { %3728 = vmatmul.msk.bf16.gmra.mxu0 %vm278_vm0, %v4084_v3 }
  0x35   :  { %3729 = vmatmul.msk.bf16.gmra.mxu0 %vm278_vm0, %v4085_v4 }
  0x45   :  { %3730 = vmatmul.msk.bf16.gmra.mxu0 %vm278_vm0, %v4086_v5 }
  0x55   :  { %3731 = vmatmul.msk.bf16.gmra.mxu0 %vm278_vm0, %v4087_v6 }
  0x65   :  { %3732 = vmatmul.msk.bf16.gmra.mxu0 %vm278_vm0, %v4088_v7 }
  0x75   :  { %3733 = vmatmul.msk.bf16.gmra.mxu0 %vm278_vm0, %v4089_v8 }
  0x82   :  { %v384_v11 = vpop.f32.mrf.mxu0 }
  0x83   :  { %v385_v12 = vadd.f32 %v4560_v9, %v384_v11 }
  0x85   :  { %v608_v14 = vand.u32 2147483647, %v385_v12  ;;  %3734 = vmatmul.msk.bf16.gmra.mxu0 %vm278_vm0, %v4090_v10  ;;  %v544_v51 = vmax.f32 %v385_v12, 0.0 }
  0x87   :  { %v672_v15 = vsub.f32 0.0, %v608_v14 }
  0x89   :  { %v736_v17 = vmul.f32 1.442695, %v672_v15 }
  0x8a   :  { %v386_v18 = vpop.f32.mrf.mxu0 }
  0x8b   :  { %4166 = vpow2.f32 %v736_v17  ;;  %v387_v19 = vadd.f32 %v4560_v9, %v386_v18 }
  0x8d   :  { %v609_v20 = vand.u32 2147483647, %v387_v19  ;;  %v545_v58 = vmax.f32 %v387_v19, 0.0 }
  0x8f   :  { %v673_v21 = vsub.f32 0.0, %v609_v20 }
  0x91   :  { %v4167_v22 = vpop.eup %4166  ;;  %v738_v23 = vmul.f32 1.442695, %v673_v21 }
  0x92   :  { %v864_v25 = vadd.f32 1.0, %v4167_v22  ;;  %v389_v26 = vpop.f32.mrf.mxu0  ;;  %v867_v29 = vmul.f32 -0.5, %v4167_v22  ;;  %v870_v39 = vand.u32 2147483647, %v4167_v22 }
  0x93   :  { %4168 = vpow2.f32 %v738_v23  ;;  %v4578_v27 = vadd.f32 %v4560_v9, %v389_v26 }
  0x94   :  { %4170 = vlog2.f32 %v864_v25  ;;  %v868_v36 = vadd.f32 1.0, %v867_v29  ;;  %vm871_vm1 = vcmp.lt.f32.partialorder %v870_v39, 0.0004427343 }
  0x95   :  { %v610_v28 = vand.u32 2147483647, %v4578_v27  ;;  %3735 = vmatmul.msk.bf16.gmra.mxu0 %vm278_vm0, %v4091_v24  ;;  %v546_v24 = vmax.f32 %v4578_v27, 0.0 }
  0x96   :  { %v869_v42 = vmul.f32 %v4167_v22, %v868_v36  ;;  %v4093_v22 = vld [vmem:[%s5677_s1 + $0x58] sm:$0xff] }
  0x97   :  { %v674_v30 = vsub.f32 0.0, %v610_v28 }
  0x99   :  { %v4169_v31 = vpop.eup %4168  ;;  %v740_v32 = vmul.f32 1.442695, %v674_v30 }
  0x9a   :  { %v4171_v33 = vpop.eup %4170  ;;  %v873_v34 = vadd.f32 1.0, %v4169_v31  ;;  %v391_v35 = vpop.f32.mrf.mxu0  ;;  %v876_v37 = vmul.f32 -0.5, %v4169_v31  ;;  %v879_v45 = vand.u32 2147483647, %v4169_v31 }
  0x9b   :  { %4172 = vpow2.f32 %v740_v32  ;;  %v4583_v38 = vadd.f32 %v4560_v9, %v391_v35  ;;  %v866_v40 = vmul.f32 0.6931472, %v4171_v33 }
  0x9c   :  { %4174 = vlog2.f32 %v873_v34  ;;  %v877_v43 = vadd.f32 1.0, %v876_v37  ;;  %vm880_vm2 = vcmp.lt.f32.partialorder %v879_v45, 0.0004427343 }
  0x9d   :  { %v611_v41 = vand.u32 2147483647, %v4583_v38  ;;  %v872_v47 = vsel %vm871_vm1, %v869_v42, %v866_v40  ;;  %v547_v32 = vmax.f32 %v4583_v38, 0.0 }
  0x9e   :  { %v878_v55 = vmul.f32 %v4169_v31, %v877_v43  ;;  %v1440_v57 = vadd.f32 %v872_v47, %v544_v51 }
  0x9f   :  { %v675_v44 = vsub.f32 0.0, %v611_v41 }
  0xa0   :  { %v3758_v0 = vadd.f32 -0.6931472, %v1440_v57 }
  0xa1   :  { %v4173_v46 = vpop.eup %4172  ;;  %v742_v48 = vmul.f32 1.442695, %v675_v44 }
  0xa2   :  { %v4175_v50 = vpop.eup %4174  ;;  %v882_v52 = vadd.f32 1.0, %v4173_v46  ;;  %v394_v53 = vpop.f32.mrf.mxu0  ;;  %v885_v62 = vmul.f32 -0.5, %v4173_v46  ;;  %v888_v12 = vand.u32 2147483647, %v4173_v46 }
  0xa3   :  { %v875_v54 = vmul.f32 0.6931472, %v4175_v50  ;;  %4176 = vpow2.f32 %v742_v48  ;;  %v4590_v56 = vadd.f32 %v4560_v9, %v394_v53 }
  0xa4   :  { %4178 = vlog2.f32 %v882_v52  ;;  %v886_v8 = vadd.f32 1.0, %v885_v62  ;;  %vm889_vm4 = vcmp.lt.f32.partialorder %v888_v12, 0.0004427343 }
  0xa5   :  { %v881_v59 = vsel %vm880_vm2, %v878_v55, %v875_v54  ;;  %v612_v60 = vand.u32 2147483647, %v4590_v56  ;;  %3736 = vmatmul.msk.bf16.gmra.mxu0 %vm278_vm0, %v4092_v49 }
  0xa6   :  { %v1441_v61 = vadd.f32 %v881_v59, %v545_v58  ;;  %v887_v15 = vmul.f32 %v4173_v46, %v886_v8  ;;  %v4094_v59 = vld [vmem:[%s5677_s1 + $0x60] sm:$0xff] }
  0xa7   :  { %v676_v63 = vsub.f32 0.0, %v612_v60 }
  0xa8   :  { %v3759_v1 = vadd.f32 -0.6931472, %v1441_v61  ;;  %v548_v61 = vmax.f32 %v4590_v56, 0.0 }
  0xa9   :  { %v4177_v2 = vpop.eup %4176  ;;  %v744_v3 = vmul.f32 1.442695, %v676_v63 }
  0xaa   :  { %v4179_v4 = vpop.eup %4178  ;;  %v891_v5 = vadd.f32 1.0, %v4177_v2  ;;  %v396_v6 = vpop.f32.mrf.mxu0  ;;  %v1568_v7 = vpack.c.bf16 %v3759_v1, %v3758_v0  ;;  %v894_v10 = vmul.f32 -0.5, %v4177_v2  ;;  %v897_v18 = vand.u32 2147483647, %v4177_v2 }
  0xab   :  { %4180 = vpow2.f32 %v744_v3  ;;  %v4595_v11 = vadd.f32 %v4560_v9, %v396_v6  ;;  %v884_v13 = vmul.f32 0.6931472, %v4179_v4 }
  0xac   :  { %4182 = vlog2.f32 %v891_v5  ;;  %3830 = vmatmul.msk.bf16.vlgmr.msra.gmra.mxu1 %vm1620_vm3, %v1568_v7  ;;  %v895_v16 = vadd.f32 1.0, %v894_v10  ;;  %vm898_vm5 = vcmp.lt.f32.partialorder %v897_v18, 0.0004427343 }
  0xad   :  { %v613_v14 = vand.u32 2147483647, %v4595_v11  ;;  %v890_v20 = vsel %vm889_vm4, %v887_v15, %v884_v13  ;;  %v549_v4 = vmax.f32 %v4595_v11, 0.0 }
  0xae   :  { %v896_v29 = vmul.f32 %v4177_v2, %v895_v16  ;;  %v1442_v31 = vadd.f32 %v890_v20, %v546_v24 }
  0xaf   :  { %v677_v17 = vsub.f32 0.0, %v613_v14 }
  0xb0   :  { %v3760_v37 = vadd.f32 -0.6931472, %v1442_v31 }
  0xb1   :  { %v4181_v19 = vpop.eup %4180  ;;  %v746_v21 = vmul.f32 1.442695, %v677_v17 }
  0xb2   :  { %v4183_v23 = vpop.eup %4182  ;;  %v900_v25 = vadd.f32 1.0, %v4181_v19  ;;  %v399_v26 = vpop.f32.mrf.mxu0  ;;  %v903_v27 = vmul.f32 -0.5, %v4181_v19  ;;  %v906_v48 = vand.u32 2147483647, %v4181_v19 }
  0xb3   :  { %v893_v28 = vmul.f32 0.6931472, %v4183_v23  ;;  %4184 = vpow2.f32 %v746_v21  ;;  %v4604_v30 = vadd.f32 %v4560_v9, %v399_v26 }
  0xb4   :  { %4186 = vlog2.f32 %v900_v25  ;;  %v904_v46 = vadd.f32 1.0, %v903_v27  ;;  %vm907_vm6 = vcmp.lt.f32.partialorder %v906_v48, 0.0004427343 }
  0xb5   :  { %v899_v33 = vsel %vm898_vm5, %v896_v29, %v893_v28  ;;  %v614_v34 = vand.u32 2147483647, %v4604_v30  ;;  %3737 = vmatmul.msk.bf16.gmra.mxu0 %vm278_vm0, %v4093_v22 }
  0xb6   :  { %v1443_v35 = vadd.f32 %v899_v33, %v547_v32  ;;  %v905_v51 = vmul.f32 %v4181_v19, %v904_v46  ;;  %v4095_v33 = vld [vmem:[%s5677_s1 + $0x68] sm:$0xff] }
  0xb7   :  { %v678_v36 = vsub.f32 0.0, %v614_v34 }
  0xb8   :  { %v3761_v39 = vadd.f32 -0.6931472, %v1443_v35  ;;  %v550_v35 = vmax.f32 %v4604_v30, 0.0 }
  0xb9   :  { %v4185_v40 = vpop.eup %4184  ;;  %v748_v41 = vmul.f32 1.442695, %v678_v36 }
  0xba   :  { %v4187_v42 = vpop.eup %4186  ;;  %v909_v43 = vadd.f32 1.0, %v4185_v40  ;;  %v401_v44 = vpop.f32.mrf.mxu0  ;;  %v1569_v45 = vpack.c.bf16 %v3761_v39, %v3760_v37  ;;  %v912_v38 = vmul.f32 -0.5, %v4185_v40  ;;  %v915_v54 = vand.u32 2147483647, %v4185_v40 }
  0xbb   :  { %4188 = vpow2.f32 %v748_v41  ;;  %v4610_v47 = vadd.f32 %v4560_v9, %v401_v44  ;;  %v902_v49 = vmul.f32 0.6931472, %v4187_v42 }
  0xbc   :  { %4190 = vlog2.f32 %v909_v43  ;;  %3831 = vmatmul.msk.bf16.gmra.mxu1 %vm1620_vm3, %v1569_v45  ;;  %v913_v52 = vadd.f32 1.0, %v912_v38  ;;  %vm916_vm7 = vcmp.lt.f32.partialorder %v915_v54, 0.0004427343 }
  0xbd   :  { %v615_v50 = vand.u32 2147483647, %v4610_v47  ;;  %v908_v57 = vsel %vm907_vm6, %v905_v51, %v902_v49  ;;  %v551_v42 = vmax.f32 %v4610_v47, 0.0 }
  0xbe   :  { %v914_v1 = vmul.f32 %v4185_v40, %v913_v52  ;;  %v1444_v3 = vadd.f32 %v908_v57, %v548_v61 }
  0xbf   :  { %v679_v53 = vsub.f32 0.0, %v615_v50 }
  0xc0   :  { %v3762_v10 = vadd.f32 -0.6931472, %v1444_v3 }
  0xc1   :  { %v4189_v55 = vpop.eup %4188  ;;  %v750_v58 = vmul.f32 1.442695, %v679_v53 }
  0xc2   :  { %v4191_v60 = vpop.eup %4190  ;;  %v918_v62 = vadd.f32 1.0, %v4189_v55  ;;  %v404_v63 = vpop.f32.mrf.mxu0  ;;  %v921_v56 = vmul.f32 -0.5, %v4189_v55  ;;  %v924_v21 = vand.u32 2147483647, %v4189_v55 }
  0xc3   :  { %v911_v0 = vmul.f32 0.6931472, %v4191_v60  ;;  %4192 = vpow2.f32 %v750_v58  ;;  %v4619_v2 = vadd.f32 %v4560_v9, %v404_v63 }
  0xc4   :  { %4194 = vlog2.f32 %v918_v62  ;;  %v922_v19 = vadd.f32 1.0, %v921_v56  ;;  %vm925_vm8 = vcmp.lt.f32.partialorder %v924_v21, 0.0004427343 }
  0xc5   :  { %v917_v5 = vsel %vm916_vm7, %v914_v1, %v911_v0  ;;  %v616_v6 = vand.u32 2147483647, %v4619_v2  ;;  %3738 = vmatmul.msk.bf16.gmra.mxu0 %vm278_vm0, %v4094_v59 }
  0xc6   :  { %v1445_v7 = vadd.f32 %v917_v5, %v549_v4  ;;  %v923_v24 = vmul.f32 %v4189_v55, %v922_v19  ;;  %v4096_v5 = vld [vmem:[%s5677_s1 + $0x70] sm:$0xff] }
  0xc7   :  { %v680_v8 = vsub.f32 0.0, %v616_v6 }
  0xc8   :  { %v3763_v12 = vadd.f32 -0.6931472, %v1445_v7  ;;  %v552_v7 = vmax.f32 %v4619_v2, 0.0 }
  0xc9   :  { %v4193_v13 = vpop.eup %4192  ;;  %v752_v14 = vmul.f32 1.442695, %v680_v8 }
  0xca   :  { %v4195_v15 = vpop.eup %4194  ;;  %v927_v16 = vadd.f32 1.0, %v4193_v13  ;;  %v406_v17 = vpop.f32.mrf.mxu0  ;;  %v1570_v18 = vpack.c.bf16 %v3763_v12, %v3762_v10  ;;  %v930_v11 = vmul.f32 -0.5, %v4193_v13  ;;  %v933_v28 = vand.u32 2147483647, %v4193_v13 }
  0xcb   :  { %4196 = vpow2.f32 %v752_v14  ;;  %v4625_v20 = vadd.f32 %v4560_v9, %v406_v17  ;;  %v920_v22 = vmul.f32 0.6931472, %v4195_v15 }
  0xcc   :  { %4198 = vlog2.f32 %v927_v16  ;;  %3832 = vmatmul.msk.bf16.gmra.mxu1 %vm1620_vm3, %v1570_v18  ;;  %v931_v25 = vadd.f32 1.0, %v930_v11  ;;  %vm934_vm9 = vcmp.lt.f32.partialorder %v933_v28, 0.0004427343 }
  0xcd   :  { %v617_v23 = vand.u32 2147483647, %v4625_v20  ;;  %v926_v31 = vsel %vm925_vm8, %v923_v24, %v920_v22  ;;  %v553_v15 = vmax.f32 %v4625_v20, 0.0 }
  0xce   :  { %v932_v39 = vmul.f32 %v4193_v13, %v931_v25  ;;  %v1446_v41 = vadd.f32 %v926_v31, %v550_v35 }
  0xcf   :  { %v681_v26 = vsub.f32 0.0, %v617_v23 }
  0xd0   :  { %v3764_v38 = vadd.f32 -0.6931472, %v1446_v41 }
  0xd1   :  { %v4197_v29 = vpop.eup %4196  ;;  %v754_v32 = vmul.f32 1.442695, %v681_v26 }
  0xd2   :  { %v4199_v34 = vpop.eup %4198  ;;  %v936_v27 = vadd.f32 1.0, %v4197_v29  ;;  %v409_v36 = vpop.f32.mrf.mxu0  ;;  %v939_v30 = vmul.f32 -0.5, %v4197_v29  ;;  %v942_v58 = vand.u32 2147483647, %v4197_v29 }
  0xd3   :  { %v929_v37 = vmul.f32 0.6931472, %v4199_v34  ;;  %4200 = vpow2.f32 %v754_v32  ;;  %v4634_v40 = vadd.f32 %v4560_v9, %v409_v36 }
  0xd4   :  { %4202 = vlog2.f32 %v936_v27  ;;  %v940_v55 = vadd.f32 1.0, %v939_v30  ;;  %vm943_vm10 = vcmp.lt.f32.partialorder %v942_v58, 0.0004427343 }
  0xd5   :  { %v935_v43 = vsel %vm934_vm9, %v932_v39, %v929_v37  ;;  %v618_v44 = vand.u32 2147483647, %v4634_v40  ;;  %3739 = vmatmul.msk.bf16.gmra.mxu0 %vm278_vm0, %v4095_v33 }
  0xd6   :  { %v1447_v45 = vadd.f32 %v935_v43, %v551_v42  ;;  %v941_v61 = vmul.f32 %v4197_v29, %v940_v55  ;;  %v4097_v43 = vld [vmem:[%s5677_s1 + $0x78] sm:$0xff] }
  0xd7   :  { %v682_v46 = vsub.f32 0.0, %v618_v44 }
  0xd8   :  { %v3765_v48 = vadd.f32 -0.6931472, %v1447_v45  ;;  %v554_v45 = vmax.f32 %v4634_v40, 0.0 }
  0xd9   :  { %v4201_v49 = vpop.eup %4200  ;;  %v756_v50 = vmul.f32 1.442695, %v682_v46 }
  0xda   :  { %v4203_v51 = vpop.eup %4202  ;;  %v945_v52 = vadd.f32 1.0, %v4201_v49  ;;  %v411_v53 = vpop.f32.mrf.mxu0  ;;  %v1571_v54 = vpack.c.bf16 %v3765_v48, %v3764_v38  ;;  %v948_v47 = vmul.f32 -0.5, %v4201_v49  ;;  %v951_v0 = vand.u32 2147483647, %v4201_v49 }
  0xdb   :  { %4204 = vpow2.f32 %v756_v50  ;;  %v4640_v57 = vadd.f32 %v4560_v9, %v411_v53  ;;  %v938_v59 = vmul.f32 0.6931472, %v4203_v51 }
  0xdc   :  { %4206 = vlog2.f32 %v945_v52  ;;  %3833 = vmatmul.msk.bf16.gmra.mxu1 %vm1620_vm3, %v1571_v54  ;;  %v949_v62 = vadd.f32 1.0, %v948_v47  ;;  %vm952_vm11 = vcmp.lt.f32.partialorder %v951_v0, 0.0004427343 }
  0xdd   :  { %v619_v60 = vand.u32 2147483647, %v4640_v57  ;;  %v944_v3 = vsel %vm943_vm10, %v941_v61, %v938_v59  ;;  %v555_v51 = vmax.f32 %v4640_v57, 0.0 }
  0xde   :  { %v950_v12 = vmul.f32 %v4201_v49, %v949_v62  ;;  %v1448_v14 = vadd.f32 %v944_v3, %v552_v7 }
  0xdf   :  { %v683_v63 = vsub.f32 0.0, %v619_v60 }
  0xe0   :  { %v3766_v11 = vadd.f32 -0.6931472, %v1448_v14 }
  0xe1   :  { %v4205_v1 = vpop.eup %4204  ;;  %v758_v4 = vmul.f32 1.442695, %v683_v63 }
  0xe2   :  { %v4207_v6 = vpop.eup %4206  ;;  %v954_v56 = vadd.f32 1.0, %v4205_v1  ;;  %v414_v8 = vpop.f32.mrf.mxu0  ;;  %v957_v2 = vmul.f32 -0.5, %v4205_v1  ;;  %v960_v32 = vand.u32 2147483647, %v4205_v1 }
  0xe3   :  { %v947_v10 = vmul.f32 0.6931472, %v4207_v6  ;;  %4208 = vpow2.f32 %v758_v4  ;;  %v4649_v13 = vadd.f32 %v4560_v9, %v414_v8 }
  0xe4   :  { %4210 = vlog2.f32 %v954_v56  ;;  %v958_v29 = vadd.f32 1.0, %v957_v2  ;;  %vm961_vm12 = vcmp.lt.f32.partialorder %v960_v32, 0.0004427343 }
  0xe5   :  { %v953_v16 = vsel %vm952_vm11, %v950_v12, %v947_v10  ;;  %v620_v17 = vand.u32 2147483647, %v4649_v13  ;;  %3740 = vmatmul.msk.bf16.gmra.mxu0 %vm278_vm0, %v4096_v5 }
  0xe6   :  { %v1449_v18 = vadd.f32 %v953_v16, %v553_v15  ;;  %v959_v35 = vmul.f32 %v4205_v1, %v958_v29  ;;  %v4098_v16 = vld [vmem:[%s5677_s1 + $0x80] sm:$0xff] }
  0xe7   :  { %v684_v19 = vsub.f32 0.0, %v620_v17 }
  0xe8   :  { %v3767_v21 = vadd.f32 -0.6931472, %v1449_v18  ;;  %v556_v18 = vmax.f32 %v4649_v13, 0.0 }
  0xe9   :  { %v4209_v22 = vpop.eup %4208  ;;  %v760_v23 = vmul.f32 1.442695, %v684_v19 }
  0xea   :  { %v4211_v24 = vpop.eup %4210  ;;  %v963_v25 = vadd.f32 1.0, %v4209_v22  ;;  %v416_v26 = vpop.f32.mrf.mxu0  ;;  %v1572_v28 = vpack.c.bf16 %v3767_v21, %v3766_v11  ;;  %v966_v20 = vmul.f32 -0.5, %v4209_v22  ;;  %v969_v37 = vand.u32 2147483647, %v4209_v22 }
  0xeb   :  { %4212 = vpow2.f32 %v760_v23  ;;  %v4655_v31 = vadd.f32 %v4560_v9, %v416_v26  ;;  %v956_v33 = vmul.f32 0.6931472, %v4211_v24 }
  0xec   :  { %4214 = vlog2.f32 %v963_v25  ;;  %3834 = vmatmul.msk.bf16.gmra.mxu1 %vm1620_vm3, %v1572_v28  ;;  %v967_v27 = vadd.f32 1.0, %v966_v20  ;;  %vm970_vm13 = vcmp.lt.f32.partialorder %v969_v37, 0.0004427343 }
  0xed   :  { %v621_v34 = vand.u32 2147483647, %v4655_v31  ;;  %v962_v41 = vsel %vm961_vm12, %v959_v35, %v956_v33  ;;  %v557_v24 = vmax.f32 %v4655_v31, 0.0 }
  0xee   :  { %v968_v48 = vmul.f32 %v4209_v22, %v967_v27  ;;  %v1450_v50 = vadd.f32 %v962_v41, %v554_v45 }
  0xef   :  { %v685_v36 = vsub.f32 0.0, %v621_v34 }
  0xf0   :  { %v3768_v47 = vadd.f32 -0.6931472, %v1450_v50 }
  0xf1   :  { %v4213_v39 = vpop.eup %4212  ;;  %v762_v42 = vmul.f32 1.442695, %v685_v36 }
  0xf2   :  { %v4215_v44 = vpop.eup %4214  ;;  %v972_v30 = vadd.f32 1.0, %v4213_v39  ;;  %v419_v46 = vpop.f32.mrf.mxu0  ;;  %v975_v40 = vmul.f32 -0.5, %v4213_v39  ;;  %v978_v4 = vand.u32 2147483647, %v4213_v39 }
  0xf3   :  { %v965_v38 = vmul.f32 0.6931472, %v4215_v44  ;;  %4216 = vpow2.f32 %v762_v42  ;;  %v4664_v49 = vadd.f32 %v4560_v9, %v419_v46 }
  0xf4   :  { %4218 = vlog2.f32 %v972_v30  ;;  %v976_v1 = vadd.f32 1.0, %v975_v40  ;;  %vm979_vm14 = vcmp.lt.f32.partialorder %v978_v4, 0.0004427343 }
  0xf5   :  { %v971_v52 = vsel %vm970_vm13, %v968_v48, %v965_v38  ;;  %v622_v53 = vand.u32 2147483647, %v4664_v49  ;;  %3741 = vmatmul.msk.bf16.gmra.mxu0 %vm278_vm0, %v4097_v43 }
  0xf6   :  { %v1451_v54 = vadd.f32 %v971_v52, %v555_v51  ;;  %v977_v7 = vmul.f32 %v4213_v39, %v976_v1  ;;  %v4099_v52 = vld [vmem:[%s5677_s1 + $0x88] sm:$0xff] }
  0xf7   :  { %v686_v55 = vsub.f32 0.0, %v622_v53 }
  0xf8   :  { %v3769_v58 = vadd.f32 -0.6931472, %v1451_v54  ;;  %v558_v54 = vmax.f32 %v4664_v49, 0.0 }
  0xf9   :  { %v4217_v59 = vpop.eup %4216  ;;  %v764_v60 = vmul.f32 1.442695, %v686_v55 }
  0xfa   :  { %v4219_v61 = vpop.eup %4218  ;;  %v981_v62 = vadd.f32 1.0, %v4217_v59  ;;  %v421_v63 = vpop.f32.mrf.mxu0  ;;  %v1573_v0 = vpack.c.bf16 %v3769_v58, %v3768_v47  ;;  %v984_v57 = vmul.f32 -0.5, %v4217_v59  ;;  %v987_v10 = vand.u32 2147483647, %v4217_v59 }
  0xfb   :  { %4220 = vpow2.f32 %v764_v60  ;;  %v4670_v3 = vadd.f32 %v4560_v9, %v421_v63  ;;  %v974_v5 = vmul.f32 0.6931472, %v4219_v61 }
  0xfc   :  { %4222 = vlog2.f32 %v981_v62  ;;  %3835 = vmatmul.msk.bf16.gmra.mxu1 %vm1620_vm3, %v1573_v0  ;;  %v985_v56 = vadd.f32 1.0, %v984_v57  ;;  %vm988_vm15 = vcmp.lt.f32.partialorder %v987_v10, 0.0004427343 }
  0xfd   :  { %v623_v6 = vand.u32 2147483647, %v4670_v3  ;;  %v980_v14 = vsel %vm979_vm14, %v977_v7, %v974_v5  ;;  %v559_v61 = vmax.f32 %v4670_v3, 0.0 }
  0xfe   :  { %v986_v21 = vmul.f32 %v4217_v59, %v985_v56  ;;  %v1452_v23 = vadd.f32 %v980_v14, %v556_v18 }
  0xff   :  { %v687_v8 = vsub.f32 0.0, %v623_v6 }
 0x100   :  { %v3770_v20 = vadd.f32 -0.6931472, %v1452_v23 }
 0x101   :  { %v4221_v12 = vpop.eup %4220  ;;  %v766_v15 = vmul.f32 1.442695, %v687_v8 }
 0x102   :  { %v4223_v17 = vpop.eup %4222  ;;  %v990_v2 = vadd.f32 1.0, %v4221_v12  ;;  %v424_v19 = vpop.f32.mrf.mxu0  ;;  %v993_v13 = vmul.f32 -0.5, %v4221_v12  ;;  %v996_v42 = vand.u32 2147483647, %v4221_v12 }
 0x103   :  { %v983_v11 = vmul.f32 0.6931472, %v4223_v17  ;;  %4224 = vpow2.f32 %v766_v15  ;;  %v4679_v22 = vadd.f32 %v4560_v9, %v424_v19 }
 0x104   :  { %4226 = vlog2.f32 %v990_v2  ;;  %v994_v39 = vadd.f32 1.0, %v993_v13  ;;  %vm997_vm1 = vcmp.lt.f32.partialorder %v996_v42, 0.0004427343 }
 0x105   :  { %v989_v25 = vsel %vm988_vm15, %v986_v21, %v983_v11  ;;  %v624_v26 = vand.u32 2147483647, %v4679_v22  ;;  %3742 = vmatmul.msk.bf16.gmra.mxu0 %vm278_vm0, %v4098_v16 }
 0x106   :  { %v1453_v28 = vadd.f32 %v989_v25, %v557_v24  ;;  %v995_v45 = vmul.f32 %v4221_v12, %v994_v39  ;;  %v4100_v24 = vld [vmem:[%s5677_s1 + $0x90] sm:$0xff] }
 0x107   :  { %v688_v29 = vsub.f32 0.0, %v624_v26  ;;  %v560_v26 = vmax.f32 %v4679_v22, 0.0 }
 0x108   :  { %v3771_v32 = vadd.f32 -0.6931472, %v1453_v28 }
 0x109   :  { %v4225_v33 = vpop.eup %4224  ;;  %v768_v34 = vmul.f32 1.442695, %v688_v29 }
 0x10a   :  { %v4227_v35 = vpop.eup %4226  ;;  %v999_v27 = vadd.f32 1.0, %v4225_v33  ;;  %v426_v36 = vpop.f32.mrf.mxu0  ;;  %v1574_v37 = vpack.c.bf16 %v3771_v32, %v3770_v20  ;;  %v1002_v31 = vmul.f32 -0.5, %v4225_v33  ;;  %v1005_v38 = vand.u32 2147483647, %v4225_v33 }
 0x10b   :  { %4228 = vpow2.f32 %v768_v34  ;;  %v4685_v41 = vadd.f32 %v4560_v9, %v426_v36  ;;  %v992_v43 = vmul.f32 0.6931472, %v4227_v35 }
 0x10c   :  { %4230 = vlog2.f32 %v999_v27  ;;  %3836 = vmatmul.msk.bf16.gmra.mxu1 %vm1620_vm3, %v1574_v37  ;;  %v1003_v30 = vadd.f32 1.0, %v1002_v31  ;;  %vm1006_vm2 = vcmp.lt.f32.partialorder %v1005_v38, 0.0004427343 }
 0x10d   :  { %v625_v44 = vand.u32 2147483647, %v4685_v41  ;;  %v998_v50 = vsel %vm997_vm1, %v995_v45, %v992_v43  ;;  %v561_v34 = vmax.f32 %v4685_v41, 0.0 }
 0x10e   :  { %v1004_v58 = vmul.f32 %v4225_v33, %v1003_v30  ;;  %v1454_v60 = vadd.f32 %v998_v50, %v558_v54 }
 0x10f   :  { %v689_v46 = vsub.f32 0.0, %v625_v44 }
 0x110   :  { %v3772_v1 = vadd.f32 -0.6931472, %v1454_v60 }
 0x111   :  { %v4229_v48 = vpop.eup %4228  ;;  %v770_v51 = vmul.f32 1.442695, %v689_v46 }
 0x112   :  { %v4231_v53 = vpop.eup %4230  ;;  %v1008_v40 = vadd.f32 1.0, %v4229_v48  ;;  %v429_v55 = vpop.f32.mrf.mxu0  ;;  %v1011_v57 = vmul.f32 -0.5, %v4229_v48  ;;  %v1014_v15 = vand.u32 2147483647, %v4229_v48 }
 0x113   :  { %v1001_v47 = vmul.f32 0.6931472, %v4231_v53  ;;  %4232 = vpow2.f32 %v770_v51  ;;  %v4694_v59 = vadd.f32 %v4560_v9, %v429_v55 }
 0x114   :  { %4234 = vlog2.f32 %v1008_v40  ;;  %v1012_v14 = vadd.f32 1.0, %v1011_v57  ;;  %vm1015_vm4 = vcmp.lt.f32.partialorder %v1014_v15, 0.0004427343 }
 0x115   :  { %v1007_v62 = vsel %vm1006_vm2, %v1004_v58, %v1001_v47  ;;  %v626_v63 = vand.u32 2147483647, %v4694_v59  ;;  %3743 = vmatmul.msk.bf16.gmra.mxu0 %vm278_vm0, %v4099_v52 }
 0x116   :  { %v1455_v0 = vadd.f32 %v1007_v62, %v559_v61  ;;  %v1013_v19 = vmul.f32 %v4229_v48, %v1012_v14  ;;  %v4101_v62 = vld [vmem:[%s5677_s1 + $0x98] sm:$0xff] }
 0x117   :  { %v690_v49 = vsub.f32 0.0, %v626_v63 }
 0x118   :  { %v3773_v4 = vadd.f32 -0.6931472, %v1455_v0  ;;  %v562_v0 = vmax.f32 %v4694_v59, 0.0 }
 0x119   :  { %v4233_v5 = vpop.eup %4232  ;;  %v772_v6 = vmul.f32 1.442695, %v690_v49 }
 0x11a   :  { %v1017_v7 = vadd.f32 1.0, %v4233_v5  ;;  %v431_v56 = vpop.f32.mrf.mxu0  ;;  %v1575_v8 = vpack.c.bf16 %v3773_v4, %v3772_v1  ;;  %v4235_v10 = vpop.eup %4234  ;;  %v1020_v12 = vmul.f32 -0.5, %v4233_v5  ;;  %v1023_v11 = vand.u32 2147483647, %v4233_v5 }
 0x11b   :  { %4236 = vpow2.f32 %v772_v6  ;;  %v4700_v3 = vadd.f32 %v4560_v9, %v431_v56  ;;  %v1010_v17 = vmul.f32 0.6931472, %v4235_v10 }
 0x11c   :  { %4238 = vlog2.f32 %v1017_v7  ;;  %3837 = vmatmul.msk.bf16.gmra.mxu1 %vm1620_vm3, %v1575_v8  ;;  %v1021_v18 = vadd.f32 1.0, %v1020_v12  ;;  %vm1024_vm5 = vcmp.lt.f32.partialorder %v1023_v11, 0.0004427343 }
 0x11d   :  { %v627_v16 = vand.u32 2147483647, %v4700_v3  ;;  %v1016_v28 = vsel %vm1015_vm4, %v1013_v19, %v1010_v17  ;;  %v563_v7 = vmax.f32 %v4700_v3, 0.0 }
 0x11e   :  { %v1022_v32 = vmul.f32 %v4233_v5, %v1021_v18  ;;  %v1456_v35 = vadd.f32 %v1016_v28, %v560_v26 }
 0x11f   :  { %v691_v2 = vsub.f32 0.0, %v627_v16 }
 0x120   :  { %v3774_v43 = vadd.f32 -0.6931472, %v1456_v35 }
 0x121   :  { %v4237_v21 = vpop.eup %4236  ;;  %v774_v23 = vmul.f32 1.442695, %v691_v2 }
 0x122   :  { %v4239_v25 = vpop.eup %4238  ;;  %v1026_v13 = vadd.f32 1.0, %v4237_v21  ;;  %v434_v29 = vpop.f32.mrf.mxu0  ;;  %v1029_v39 = vmul.f32 -0.5, %v4237_v21  ;;  %v1032_v52 = vand.u32 2147483647, %v4237_v21 }
 0x123   :  { %v1019_v20 = vmul.f32 0.6931472, %v4239_v25  ;;  %4240 = vpow2.f32 %v774_v23  ;;  %v4709_v33 = vadd.f32 %v4560_v9, %v434_v29 }
 0x124   :  { %4242 = vlog2.f32 %v1026_v13  ;;  %v1030_v51 = vadd.f32 1.0, %v1029_v39  ;;  %vm1033_vm6 = vcmp.lt.f32.partialorder %v1032_v52, 0.0004427343 }
 0x125   :  { %v1025_v27 = vsel %vm1024_vm5, %v1022_v32, %v1019_v20  ;;  %v628_v36 = vand.u32 2147483647, %v4709_v33  ;;  %3744 = vmatmul.msk.bf16.gmra.mxu0 %vm278_vm0, %v4100_v24  ;;  %v564_v39 = vmax.f32 %v4709_v33, 0.0 }
 0x126   :  { %v1457_v22 = vadd.f32 %v1025_v27, %v561_v34  ;;  %v1031_v47 = vmul.f32 %v4237_v21, %v1030_v51 }
 0x127   :  { %v692_v37 = vsub.f32 0.0, %v628_v36 }
 0x128   :  { %v3775_v31 = vadd.f32 -0.6931472, %v1457_v22  ;;  %v4102_v22 = vld [vmem:[%s5677_s1 + $0xa0] sm:$0xff] }
 0x129   :  { %v4241_v42 = vpop.eup %4240  ;;  %v776_v44 = vmul.f32 1.442695, %v692_v37  ;;  %v4714_v41 = vpop.f32.mrf.mxu1 }
 0x12a   :  { %v1035_v45 = vadd.f32 1.0, %v4241_v42  ;;  %v436_v30 = vpop.f32.mrf.mxu0  ;;  %v4243_v46 = vpop.eup %4242  ;;  %v1038_v38 = vmul.f32 -0.5, %v4241_v42  ;;  %v1576_v50 = vpack.c.bf16 %v3775_v31, %v3774_v43  ;;  %v1041_v58 = vand.u32 2147483647, %v4241_v42 }
 0x12b   :  { %4244 = vpow2.f32 %v776_v44  ;;  %v4717_v48 = vadd.f32 %v4560_v9, %v436_v30  ;;  %v1028_v54 = vmul.f32 0.6931472, %v4243_v46 }
 0x12c   :  { %4246 = vlog2.f32 %v1035_v45  ;;  %3838 = vmatmul.msk.bf16.gmra.mxu1 %vm1620_vm3, %v1576_v50  ;;  %v1039_v40 = vadd.f32 1.0, %v1038_v38  ;;  %vm1042_vm7 = vcmp.lt.f32.partialorder %v1041_v58, 0.0004427343 }
 0x12d   :  { %v629_v53 = vand.u32 2147483647, %v4717_v48  ;;  %v1034_v49 = vsel %vm1033_vm6, %v1031_v47, %v1028_v54  ;;  %v565_v46 = vmax.f32 %v4717_v48, 0.0 }
 0x12e   :  { %v1040_v5 = vmul.f32 %v4241_v42, %v1039_v40  ;;  %v1458_v56 = vadd.f32 %v1034_v49, %v562_v0 }
 0x12f   :  { %v693_v55 = vsub.f32 0.0, %v629_v53 }
 0x130   :  { %v3776_v18 = vadd.f32 -0.6931472, %v1458_v56 }
 0x131   :  { %v4245_v60 = vpop.eup %4244  ;;  %v778_v61 = vmul.f32 1.442695, %v693_v55  ;;  %v4729_v10 = vpop.f32.mrf.mxu1 }
 0x132   :  { %v4247_v63 = vpop.eup %4246  ;;  %v1044_v1 = vadd.f32 1.0, %v4245_v60  ;;  %v439_v57 = vpop.f32.mrf.mxu0  ;;  %v1047_v15 = vmul.f32 -0.5, %v4245_v60  ;;  %v1050_v26 = vand.u32 2147483647, %v4245_v60 }
 0x133   :  { %v1037_v4 = vmul.f32 0.6931472, %v4247_v63  ;;  %4248 = vpow2.f32 %v778_v61  ;;  %v4726_v6 = vadd.f32 %v4560_v9, %v439_v57 }
 0x134   :  { %4250 = vlog2.f32 %v1044_v1  ;;  %v1048_v25 = vadd.f32 1.0, %v1047_v15  ;;  %vm1051_vm8 = vcmp.lt.f32.partialorder %v1050_v26, 0.0004427343 }
 0x135   :  { %v1043_v8 = vsel %vm1042_vm7, %v1040_v5, %v1037_v4  ;;  %v630_v12 = vand.u32 2147483647, %v4726_v6  ;;  %3745 = vmatmul.msk.bf16.gmra.mxu0 %vm278_vm0, %v4101_v62  ;;  %v4755_v62 = vld [vmem:[%s5678_s4] ss:$0 sm:$0xff] }
 0x136   :  { %v1459_v59 = vadd.f32 %v1043_v8, %v563_v7  ;;  %v1049_v34 = vmul.f32 %v4245_v60, %v1048_v25 }
 0x137   :  { %v694_v14 = vsub.f32 0.0, %v630_v12 }
 0x138   :  { %v3777_v16 = vadd.f32 -0.6931472, %v1459_v59 }
 0x139   :  { %v4249_v17 = vpop.eup %4248  ;;  %v780_v2 = vmul.f32 1.442695, %v694_v14  ;;  %v4738_v20 = vpop.f32.mrf.mxu1  ;;  %v4103_v14 = vld [vmem:[%s5677_s1 + $0xa8] sm:$0xff] }
 0x13a   :  { %v1053_v19 = vadd.f32 1.0, %v4249_v17  ;;  %v441_v11 = vpop.f32.mrf.mxu0  ;;  %v4251_v3 = vpop.eup %4250  ;;  %v1056_v21 = vmul.f32 -0.5, %v4249_v17  ;;  %v1577_v24 = vpack.c.bf16 %v3777_v16, %v3776_v18  ;;  %v1059_v35 = vand.u32 2147483647, %v4249_v17 }
 0x13b   :  { %4252 = vpow2.f32 %v780_v2  ;;  %v4734_v23 = vadd.f32 %v4560_v9, %v441_v11  ;;  %v1046_v13 = vmul.f32 0.6931472, %v4251_v3  ;;  %v566_v16 = vmax.f32 %v4726_v6, 0.0 }
 0x13c   :  { %4254 = vlog2.f32 %v1053_v19  ;;  %3839 = vmatmul.msk.bf16.gmra.mxu1 %vm1620_vm3, %v1577_v24  ;;  %v1057_v29 = vadd.f32 1.0, %v1056_v21  ;;  %vm1060_vm9 = vcmp.lt.f32.partialorder %v1059_v35, 0.0004427343 }
 0x13d   :  { %v631_v28 = vand.u32 2147483647, %v4734_v23  ;;  %v1052_v31 = vsel %vm1051_vm8, %v1049_v34, %v1046_v13  ;;  %v567_v24 = vmax.f32 %v4734_v23, 0.0 }
 0x13e   :  { %v1058_v45 = vmul.f32 %v4249_v17, %v1057_v29  ;;  %v1460_v38 = vadd.f32 %v1052_v31, %v564_v39 }
 0x13f   :  { %v695_v32 = vsub.f32 0.0, %v631_v28 }
 0x140   :  { %v3778_v55 = vadd.f32 -0.6931472, %v1460_v38 }
 0x141   :  { %v4253_v27 = vpop.eup %4252  ;;  %v782_v36 = vmul.f32 1.442695, %v695_v32  ;;  %v4750_v47 = vpop.f32.mrf.mxu1 }
 0x142   :  { %v4255_v37 = vpop.eup %4254  ;;  %v1062_v42 = vadd.f32 1.0, %v4253_v27  ;;  %v444_v43 = vpop.f32.mrf.mxu0  ;;  %v1065_v53 = vmul.f32 -0.5, %v4253_v27  ;;  %v1068_v1 = vand.u32 2147483647, %v4253_v27 }
 0x143   :  { %v1055_v44 = vmul.f32 0.6931472, %v4255_v37  ;;  %4256 = vpow2.f32 %v782_v36  ;;  %v4745_v30 = vadd.f32 %v4560_v9, %v444_v43 }
 0x144   :  { %4258 = vlog2.f32 %v1062_v42  ;;  %v1066_v49 = vadd.f32 1.0, %v1065_v53  ;;  %vm1069_vm10 = vcmp.lt.f32.partialorder %v1068_v1, 0.0004427343 }
 0x145   :  { %v1061_v50 = vsel %vm1060_vm9, %v1058_v45, %v1055_v44  ;;  %v632_v51 = vand.u32 2147483647, %v4745_v30  ;;  %3746 = vmatmul.msk.bf16.gmra.mxu0 %vm278_vm0, %v4102_v22 }
 0x146   :  { %v1461_v33 = vadd.f32 %v1061_v50, %v565_v46  ;;  %v1067_v56 = vmul.f32 %v4253_v27, %v1066_v49 }
 0x147   :  { %v696_v52 = vsub.f32 0.0, %v632_v51 }
 0x148   :  { %v3779_v54 = vadd.f32 -0.6931472, %v1461_v33 }
 0x149   :  { %v4257_v40 = vpop.eup %4256  ;;  %v784_v9 = vmul.f32 1.442695, %v696_v52  ;;  %v4766_v3 = vpop.f32.mrf.mxu1 }
 0x14a   :  { %v1071_v58 = vadd.f32 1.0, %v4257_v40  ;;  %v446_v60 = vpop.f32.mrf.mxu0  ;;  %v4259_v48 = vpop.eup %4258  ;;  %v1074_v61 = vmul.f32 -0.5, %v4257_v40  ;;  %v1578_v0 = vpack.c.bf16 %v3779_v54, %v3778_v55  ;;  %v1077_v8 = vand.u32 2147483647, %v4257_v40  ;;  %v4104_v54 = vld [vmem:[%s5677_s1 + $0xb0] sm:$0xff] }
 0x14b   :  { %4260 = vpow2.f32 %v784_v9  ;;  %v4758_v63 = vadd.f32 %v4755_v62, %v446_v60  ;;  %v1064_v4 = vmul.f32 0.6931472, %v4259_v48  ;;  %v568_v55 = vmax.f32 %v4745_v30, 0.0 }
 0x14c   :  { %4262 = vlog2.f32 %v1071_v58  ;;  %3840 = vmatmul.msk.bf16.gmra.mxu1 %vm1620_vm3, %v1578_v0  ;;  %v1075_v5 = vadd.f32 1.0, %v1074_v61  ;;  %vm1078_vm11 = vcmp.lt.f32.partialorder %v1077_v8, 0.0004427343 }
 0x14d   :  { %v633_v57 = vand.u32 2147483647, %v4758_v63  ;;  %v1070_v17 = vsel %vm1069_vm10, %v1067_v56, %v1064_v4  ;;  %v569_v49 = vmax.f32 %v4758_v63, 0.0 }
 0x14e   :  { %v1076_v11 = vmul.f32 %v4257_v40, %v1075_v5  ;;  %v1462_v25 = vadd.f32 %v1070_v17, %v566_v16 }
 0x14f   :  { %v697_v7 = vsub.f32 0.0, %v633_v57 }
 0x150   :  { %v3780_v35 = vadd.f32 -0.6931472, %v1462_v25 }
 0x151   :  { %v4261_v12 = vpop.eup %4260  ;;  %v786_v59 = vmul.f32 1.442695, %v697_v7  ;;  %v4777_v44 = vpop.f32.mrf.mxu1 }
 0x152   :  { %v4263_v15 = vpop.eup %4262  ;;  %v1080_v18 = vadd.f32 1.0, %v4261_v12  ;;  %v449_v2 = vpop.f32.mrf.mxu0  ;;  %v1083_v29 = vmul.f32 -0.5, %v4261_v12  ;;  %v1086_v43 = vand.u32 2147483647, %v4261_v12 }
 0x153   :  { %v1073_v19 = vmul.f32 0.6931472, %v4263_v15  ;;  %4264 = vpow2.f32 %v786_v59  ;;  %v4769_v21 = vadd.f32 %v4755_v62, %v449_v2 }
 0x154   :  { %4266 = vlog2.f32 %v1080_v18  ;;  %v1084_v42 = vadd.f32 1.0, %v1083_v29  ;;  %vm1087_vm12 = vcmp.lt.f32.partialorder %v1086_v43, 0.0004427343 }
 0x155   :  { %v1079_v26 = vsel %vm1078_vm11, %v1076_v11, %v1073_v19  ;;  %v634_v28 = vand.u32 2147483647, %v4769_v21  ;;  %3747 = vmatmul.msk.bf16.gmra.mxu0 %vm278_vm0, %v4103_v14 }
 0x156   :  { %v1463_v6 = vadd.f32 %v1079_v26, %v567_v24  ;;  %v1085_v51 = vmul.f32 %v4261_v12, %v1084_v42 }
 0x157   :  { %v698_v13 = vsub.f32 0.0, %v634_v28 }
 0x158   :  { %v3781_v32 = vadd.f32 -0.6931472, %v1463_v6 }
 0x159   :  { %v4265_v34 = vpop.eup %4264  ;;  %v788_v27 = vmul.f32 1.442695, %v698_v13  ;;  %v4791_v5 = vpop.f32.mrf.mxu1 }
 0x15a   :  { %v1089_v36 = vadd.f32 1.0, %v4265_v34  ;;  %v451_v22 = vpop.f32.mrf.mxu0  ;;  %v4267_v37 = vpop.eup %4266  ;;  %v1092_v39 = vmul.f32 -0.5, %v4265_v34  ;;  %v1579_v31 = vpack.c.bf16 %v3781_v32, %v3780_v35  ;;  %v1095_v33 = vand.u32 2147483647, %v4265_v34  ;;  %v4105_v35 = vld [vmem:[%s5677_s1 + $0xb8] sm:$0xff] }
 0x15b   :  { %4268 = vpow2.f32 %v788_v27  ;;  %v4775_v23 = vadd.f32 %v4755_v62, %v451_v22  ;;  %v1082_v46 = vmul.f32 0.6931472, %v4267_v37 }
 0x15c   :  { %4270 = vlog2.f32 %v1089_v36  ;;  %3841 = vmatmul.msk.bf16.gmra.mxu1 %vm1620_vm3, %v1579_v31  ;;  %v1093_v38 = vadd.f32 1.0, %v1092_v39  ;;  %vm1096_vm13 = vcmp.lt.f32.partialorder %v1095_v33, 0.0004427343  ;;  %v570_v36 = vmax.f32 %v4769_v21, 0.0 }
 0x15d   :  { %v635_v45 = vand.u32 2147483647, %v4775_v23  ;;  %v1088_v9 = vsel %vm1087_vm12, %v1085_v51, %v1082_v46 }
 0x15e   :  { %v1094_v61 = vmul.f32 %v4265_v34, %v1093_v38  ;;  %v1464_v1 = vadd.f32 %v1088_v9, %v568_v55 }
 0x15f   :  { %v699_v50 = vsub.f32 0.0, %v635_v45  ;;  %v571_v45 = vmax.f32 %v4775_v23, 0.0 }
 0x160   :  { %v3782_v59 = vadd.f32 -0.6931472, %v1464_v1 }
 0x161   :  { %v4269_v52 = vpop.eup %4268  ;;  %v790_v53 = vmul.f32 1.442695, %v699_v50  ;;  %v4798_v32 = vpop.f32.mrf.mxu1 }
 0x162   :  { %v4271_v40 = vpop.eup %4270  ;;  %v1098_v58 = vadd.f32 1.0, %v4269_v52  ;;  %v454_v60 = vpop.f32.mrf.mxu0  ;;  %v1101_v8 = vmul.f32 -0.5, %v4269_v52  ;;  %v1104_v11 = vand.u32 2147483647, %v4269_v52 }
 0x163   :  { %v1091_v48 = vmul.f32 0.6931472, %v4271_v40  ;;  %4272 = vpow2.f32 %v790_v53  ;;  %v4786_v0 = vadd.f32 %v4755_v62, %v454_v60 }
 0x164   :  { %4274 = vlog2.f32 %v1098_v58  ;;  %v1102_v19 = vadd.f32 1.0, %v1101_v8  ;;  %vm1105_vm14 = vcmp.lt.f32.partialorder %v1104_v11, 0.0004427343 }
 0x165   :  { %v1097_v57 = vsel %vm1096_vm13, %v1094_v61, %v1091_v48  ;;  %v636_v4 = vand.u32 2147483647, %v4786_v0  ;;  %3748 = vmatmul.msk.bf16.gmra.mxu0 %vm278_vm0, %v4104_v54 }
 0x166   :  { %v1465_v30 = vadd.f32 %v1097_v57, %v569_v49  ;;  %v1103_v6 = vmul.f32 %v4269_v52, %v1102_v19 }
 0x167   :  { %v700_v7 = vsub.f32 0.0, %v636_v4 }
 0x168   :  { %v3783_v56 = vadd.f32 -0.6931472, %v1465_v30 }
 0x169   :  { %v4273_v12 = vpop.eup %4272  ;;  %v792_v14 = vmul.f32 1.442695, %v700_v7  ;;  %v4810_v60 = vpop.f32.mrf.mxu1 }
 0x16a   :  { %v1107_v15 = vadd.f32 1.0, %v4273_v12  ;;  %v456_v16 = vpop.f32.mrf.mxu0  ;;  %v4275_v63 = vpop.eup %4274  ;;  %v1110_v17 = vmul.f32 -0.5, %v4273_v12  ;;  %v1580_v2 = vpack.c.bf16 %v3783_v56, %v3782_v59  ;;  %v1113_v13 = vand.u32 2147483647, %v4273_v12  ;;  %v4110_v56 = vld [vmem:[%s5677_s1 + $0xe0] sm:$0xff] }
 0x16b   :  { %4276 = vpow2.f32 %v792_v14  ;;  %v4794_v18 = vadd.f32 %v4755_v62, %v456_v16  ;;  %v1100_v25 = vmul.f32 0.6931472, %v4275_v63  ;;  %3754 = vmatmul.msk.bf16.vlgmr.msra.gmra.mxu3 %vm278_vm0, %v4110_v56  ;;  %v572_v63 = vmax.f32 %v4786_v0, 0.0 }
 0x16c   :  { %4278 = vlog2.f32 %v1107_v15  ;;  %3842 = vmatmul.msk.bf16.gmra.mxu1 %vm1620_vm3, %v1580_v2  ;;  %v1111_v26 = vadd.f32 1.0, %v1110_v17  ;;  %vm1114_vm15 = vcmp.lt.f32.partialorder %v1113_v13, 0.0004427343  ;;  %v4106_v15 = vld [vmem:[%s5677_s1 + $0xc0] sm:$0xff] }
 0x16d   :  { %v637_v24 = vand.u32 2147483647, %v4794_v18  ;;  %v1106_v22 = vsel %vm1105_vm14, %v1103_v6, %v1100_v25 }
 0x16e   :  { %v1112_v42 = vmul.f32 %v4273_v12, %v1111_v26  ;;  %v1466_v46 = vadd.f32 %v1106_v22, %v570_v36  ;;  %v573_v26 = vmax.f32 %v4794_v18, 0.0 }
 0x16f   :  { %v701_v28 = vsub.f32 0.0, %v637_v24 }
 0x170   :  { %v3784_v54 = vadd.f32 -0.6931472, %v1466_v46 }
 0x171   :  { %v4277_v29 = vpop.eup %4276  ;;  %v794_v34 = vmul.f32 1.442695, %v701_v28  ;;  %v4829_v13 = vpop.f32.mrf.mxu1 }
 0x172   :  { %v4279_v27 = vpop.eup %4278  ;;  %v1116_v37 = vadd.f32 1.0, %v4277_v29  ;;  %v459_v39 = vpop.f32.mrf.mxu0  ;;  %v1119_v52 = vmul.f32 -0.5, %v4277_v29  ;;  %v1122_v1 = vand.u32 2147483647, %v4277_v29 }
 0x173   :  { %v1109_v31 = vmul.f32 0.6931472, %v4279_v27  ;;  %4280 = vpow2.f32 %v794_v34  ;;  %v4805_v43 = vadd.f32 %v4755_v62, %v459_v39 }
 0x174   :  { %4282 = vlog2.f32 %v1116_v37  ;;  %v1120_v49 = vadd.f32 1.0, %v1119_v52  ;;  %vm1123_vm1 = vcmp.lt.f32.partialorder %v1122_v1, 0.0004427343 }
 0x175   :  { %v1115_v38 = vsel %vm1114_vm15, %v1112_v42, %v1109_v31  ;;  %v638_v50 = vand.u32 2147483647, %v4805_v43  ;;  %3749 = vmatmul.msk.bf16.gmra.mxu0 %vm278_vm0, %v4105_v35  ;;  %v574_v1 = vmax.f32 %v4805_v43, 0.0 }
 0x176   :  { %v1467_v21 = vadd.f32 %v1115_v38, %v571_v45  ;;  %v1121_v8 = vmul.f32 %v4277_v29, %v1120_v49 }
 0x177   :  { %v702_v51 = vsub.f32 0.0, %v638_v50 }
 0x178   :  { %v3785_v33 = vadd.f32 -0.6931472, %v1467_v21 }
 0x179   :  { %v4281_v53 = vpop.eup %4280  ;;  %v796_v40 = vmul.f32 1.442695, %v702_v51 }
 0x17a   :  { %v1125_v55 = vadd.f32 1.0, %v4281_v53  ;;  %v461_v9 = vpop.f32.mrf.mxu0  ;;  %v4283_v58 = vpop.eup %4282  ;;  %v1128_v23 = vmul.f32 -0.5, %v4281_v53  ;;  %v1581_v61 = vpack.c.bf16 %v3785_v33, %v3784_v54  ;;  %v1131_v12 = vand.u32 2147483647, %v4281_v53  ;;  %v4111_v54 = vld [vmem:[%s5677_s1 + $0xe8] sm:$0xff] }
 0x17b   :  { %4284 = vpow2.f32 %v796_v40  ;;  %v4813_v48 = vadd.f32 %v4755_v62, %v461_v9  ;;  %v1118_v4 = vmul.f32 0.6931472, %v4283_v58  ;;  %v4838_v33 = vpop.f32.mrf.mxu1  ;;  %3755 = vmatmul.msk.bf16.gmra.mxu3 %vm278_vm0, %v4111_v54 }
 0x17c   :  { %4286 = vlog2.f32 %v1125_v55  ;;  %3843 = vmatmul.msk.bf16.gmra.mxu1 %vm1620_vm3, %v1581_v61  ;;  %v1129_v30 = vadd.f32 1.0, %v1128_v23  ;;  %vm1132_vm2 = vcmp.lt.f32.partialorder %v1131_v12, 0.0004427343  ;;  %v4107_v61 = vld [vmem:[%s5677_s1 + $0xc8] sm:$0xff] }
 0x17d   :  { %v639_v57 = vand.u32 2147483647, %v4813_v48  ;;  %v1124_v17 = vsel %vm1123_vm1, %v1121_v8, %v1118_v4  ;;  %v575_v12 = vmax.f32 %v4813_v48, 0.0 }
 0x17e   :  { %v1130_v24 = vmul.f32 %v4281_v53, %v1129_v30  ;;  %v1468_v28 = vadd.f32 %v1124_v17, %v572_v63 }
 0x17f   :  { %v703_v7 = vsub.f32 0.0, %v639_v57 }
 0x180   :  { %v3786_v22 = vadd.f32 -0.6931472, %v1468_v28 }
 0x181   :  { %v4285_v59 = vpop.eup %4284  ;;  %v798_v14 = vmul.f32 1.442695, %v703_v7 }
 0x182   :  { %v4287_v16 = vpop.eup %4286  ;;  %v1134_v2 = vadd.f32 1.0, %v4285_v59  ;;  %v464_v19 = vpop.f32.mrf.mxu0  ;;  %v1137_v27 = vmul.f32 -0.5, %v4285_v59  ;;  %v1140_v50 = vand.u32 2147483647, %v4285_v59 }
 0x183   :  { %v1127_v11 = vmul.f32 0.6931472, %v4287_v16  ;;  %4288 = vpow2.f32 %v798_v14  ;;  %v4826_v25 = vadd.f32 %v4755_v62, %v464_v19 }
 0x184   :  { %4290 = vlog2.f32 %v1134_v2  ;;  %v1138_v38 = vadd.f32 1.0, %v1137_v27  ;;  %vm4843_vm4 = vcmp.lt.f32.partialorder %v1140_v50, 0.0004427343 }
 0x185   :  { %v1133_v6 = vsel %vm1132_vm2, %v1130_v24, %v1127_v11  ;;  %v640_v29 = vand.u32 2147483647, %v4826_v25  ;;  %3750 = vmatmul.msk.bf16.gmra.mxu0 %vm278_vm0, %v4106_v15  ;;  %v4860_v11 = vpop.f32.mrf.mxu1 }
 0x186   :  { %v1469_v0 = vadd.f32 %v1133_v6, %v573_v26  ;;  %v1139_v40 = vmul.f32 %v4285_v59, %v1138_v38 }
 0x187   :  { %v704_v34 = vsub.f32 0.0, %v640_v29 }
 0x188   :  { %v3787_v35 = vadd.f32 -0.6931472, %v1469_v0 }
 0x189   :  { %v4289_v36 = vpop.eup %4288  ;;  %v800_v37 = vmul.f32 1.442695, %v704_v34 }
 0x18a   :  { %v1143_v39 = vadd.f32 1.0, %v4289_v36  ;;  %v466_v31 = vpop.f32.mrf.mxu0  ;;  %v4291_v18 = vpop.eup %4290  ;;  %v1146_v42 = vmul.f32 -0.5, %v4289_v36  ;;  %v1582_v46 = vpack.c.bf16 %v3787_v35, %v3786_v22  ;;  %v1149_v55 = vand.u32 2147483647, %v4289_v36 }
 0x18b   :  { %4292 = vpow2.f32 %v800_v37  ;;  %v4834_v45 = vadd.f32 %v4755_v62, %v466_v31  ;;  %v1136_v51 = vmul.f32 0.6931472, %v4291_v18  ;;  %v4112_v31 = vld [vmem:[%s5677_s1 + $0xf0] sm:$0xff] }
 0x18c   :  { %4294 = vlog2.f32 %v1143_v39  ;;  %3844 = vmatmul.msk.bf16.gmra.mxu1 %vm1620_vm3, %v1582_v46  ;;  %v1147_v52 = vadd.f32 1.0, %v1146_v42  ;;  %vm1150_vm5 = vcmp.lt.f32.partialorder %v1149_v55, 0.0004427343  ;;  %3756 = vmatmul.msk.bf16.gmra.mxu3 %vm278_vm0, %v4112_v31 }
 0x18d   :  { %v641_v21 = vand.u32 2147483647, %v4834_v45  ;;  %v1142_v57 = vsel %vm4843_vm4, %v1139_v40, %v1136_v51  ;;  %v4881_v40 = vpop.f32.mrf.mxu1 }
 0x18e   :  { %v1148_v56 = vmul.f32 %v4289_v36, %v1147_v52  ;;  %v1470_v59 = vadd.f32 %v1142_v57, %v574_v1  ;;  %v576_v52 = vmax.f32 %v4826_v25, 0.0 }
 0x18f   :  { %v705_v53 = vsub.f32 0.0, %v641_v21  ;;  %v4108_v21 = vld [vmem:[%s5677_s1 + $0xd0] sm:$0xff] }
 0x190   :  { %v3788_v19 = vadd.f32 -0.6931472, %v1470_v59 }
 0x191   :  { %v4293_v9 = vpop.eup %4292  ;;  %v802_v23 = vmul.f32 1.442695, %v705_v53 }
 0x192   :  { %v4295_v49 = vpop.eup %4294  ;;  %v1152_v4 = vadd.f32 1.0, %v4293_v9  ;;  %v469_v30 = vpop.f32.mrf.mxu0  ;;  %v1155_v16 = vmul.f32 -0.5, %v4293_v9  ;;  %v1158_v35 = vand.u32 2147483647, %v4293_v9 }
 0x193   :  { %v1145_v7 = vmul.f32 0.6931472, %v4295_v49  ;;  %4296 = vpow2.f32 %v802_v23  ;;  %v4855_v8 = vadd.f32 %v4755_v62, %v469_v30 }
 0x194   :  { %4298 = vlog2.f32 %v1152_v4  ;;  %v1156_v28 = vadd.f32 1.0, %v1155_v16  ;;  %vm4870_vm6 = vcmp.lt.f32.partialorder %v1158_v35, 0.0004427343 }
 0x195   :  { %v1151_v14 = vsel %vm1150_vm5, %v1148_v56, %v1145_v7  ;;  %v642_v15 = vand.u32 2147483647, %v4855_v8  ;;  %3751 = vmatmul.msk.bf16.gmra.mxu0 %vm278_vm0, %v4107_v61  ;;  %v577_v61 = vmax.f32 %v4834_v45, 0.0 }
 0x196   :  { %v1471_v43 = vadd.f32 %v1151_v14, %v575_v12  ;;  %v1157_v22 = vmul.f32 %v4293_v9, %v1156_v28 }
 0x197   :  { %v706_v63 = vsub.f32 0.0, %v642_v15 }
 0x198   :  { %v3789_v17 = vadd.f32 -0.6931472, %v1471_v43 }
 0x199   :  { %v4297_v2 = vpop.eup %4296  ;;  %v804_v24 = vmul.f32 1.442695, %v706_v63 }
 0x19a   :  { %v4299_v26 = vpop.eup %4298  ;;  %v1161_v48 = vadd.f32 1.0, %v4297_v2  ;;  %v471_v6 = vpop.f32.mrf.mxu0  ;;  %v1164_v29 = vmul.f32 -0.5, %v4297_v2  ;;  %v1583_v34 = vpack.c.bf16 %v3789_v17, %v3788_v19  ;;  %v1167_v42 = vand.u32 2147483647, %v4297_v2 }
 0x19b   :  { %4300 = vpow2.f32 %v804_v24  ;;  %v4863_v0 = vadd.f32 %v4755_v62, %v471_v6  ;;  %v1154_v27 = vmul.f32 0.6931472, %v4299_v26  ;;  %v4113_v6 = vld [vmem:[%s5677_s1 + $0xf8] sm:$0xff] }
 0x19c   :  { %4302 = vlog2.f32 %v1161_v48  ;;  %3845 = vmatmul.msk.bf16.gmra.mxu1 %vm1620_vm3, %v1583_v34  ;;  %v1165_v37 = vadd.f32 1.0, %v1164_v29  ;;  %vm1168_vm7 = vcmp.lt.f32.partialorder %v1167_v42, 0.0004427343  ;;  %3757 = vmatmul.msk.bf16.gmra.mxu3 %vm278_vm0, %v4113_v6 }
 0x19d   :  { %v643_v36 = vand.u32 2147483647, %v4863_v0  ;;  %v1160_v38 = vsel %vm4870_vm6, %v1157_v22, %v1154_v27 }
 0x19e   :  { %v1166_v9 = vmul.f32 %v4297_v2, %v1165_v37  ;;  %v1472_v23 = vadd.f32 %v1160_v38, %v576_v52  ;;  %v4892_v2 = vpop.f32.mrf.mxu1  ;;  %v578_v37 = vmax.f32 %v4855_v8, 0.0 }
 0x19f   :  { %v707_v39 = vsub.f32 0.0, %v643_v36  ;;  %v4109_v36 = vld [vmem:[%s5677_s1 + $0xd8] sm:$0xff] }
 0x1a0   :  { %v3790_v30 = vadd.f32 -0.6931472, %v1472_v23 }
 0x1a1   :  { %v4301_v46 = vpop.eup %4300  ;;  %v806_v50 = vmul.f32 1.442695, %v707_v39 }
 0x1a2   :  { %v4303_v51 = vpop.eup %4302  ;;  %v1170_v53 = vadd.f32 1.0, %v4301_v46  ;;  %v474_v54 = vpop.f32.mrf.mxu0  ;;  %v1173_v57 = vmul.f32 -0.5, %v4301_v46  ;;  %v1176_v17 = vand.u32 2147483647, %v4301_v46 }
 0x1a3   :  { %v1163_v55 = vmul.f32 0.6931472, %v4303_v51  ;;  %4304 = vpow2.f32 %v806_v50  ;;  %v4884_v58 = vadd.f32 %v4755_v62, %v474_v54  ;;  %v579_v50 = vmax.f32 %v4863_v0, 0.0 }
 0x1a4   :  { %4306 = vlog2.f32 %v1170_v53  ;;  %v1174_v16 = vadd.f32 1.0, %v1173_v57  ;;  %vm1177_vm8 = vcmp.lt.f32.partialorder %v1176_v17, 0.0004427343 }
 0x1a5   :  { %v1169_v49 = vsel %vm1168_vm7, %v1166_v9, %v1163_v55  ;;  %v644_v1 = vand.u32 2147483647, %v4884_v58  ;;  %3752 = vmatmul.msk.bf16.gmra.mxu0 %vm278_vm0, %v4108_v21 }
 0x1a6   :  { %v1473_v25 = vadd.f32 %v1169_v49, %v577_v61  ;;  %v1175_v26 = vmul.f32 %v4301_v46, %v1174_v16  ;;  %v4910_v8 = vpop.f32.mrf.mxu1 }
 0x1a7   :  { %v708_v4 = vsub.f32 0.0, %v644_v1 }
 0x1a8   :  { %v3791_v7 = vadd.f32 -0.6931472, %v1473_v25 }
 0x1a9   :  { %v4305_v56 = vpop.eup %4304  ;;  %v808_v12 = vmul.f32 1.442695, %v708_v4 }
 0x1aa   :  { %v4307_v59 = vpop.eup %4306  ;;  %v1584_v14 = vpack.c.bf16 %v3791_v7, %v3790_v30  ;;  %v1179_v15 = vadd.f32 1.0, %v4305_v56  ;;  %v476_v43 = vpop.f32.mrf.mxu0  ;;  %v1182_v45 = vmul.f32 -0.5, %v4305_v56  ;;  %v1185_v29 = vand.u32 2147483647, %v4305_v56 }
 0x1ab   :  { %4308 = vpow2.f32 %v808_v12  ;;  %v4890_v63 = vadd.f32 %v4755_v62, %v476_v43  ;;  %v1172_v19 = vmul.f32 0.6931472, %v4307_v59 }
 0x1ac   :  { %4310 = vlog2.f32 %v1179_v15  ;;  %3846 = vmatmul.msk.bf16.gmra.mxu1 %vm1620_vm3, %v1584_v14  ;;  %v1183_v28 = vadd.f32 1.0, %v1182_v45  ;;  %vm1186_vm9 = vcmp.lt.f32.partialorder %v1185_v29, 0.0004427343 }
 0x1ad   :  { %v645_v24 = vand.u32 2147483647, %v4890_v63  ;;  %v1178_v35 = vsel %vm1177_vm8, %v1175_v26, %v1172_v19  ;;  %v580_v26 = vmax.f32 %v4884_v58, 0.0 }
 0x1ae   :  { %v1184_v42 = vmul.f32 %v4305_v56, %v1183_v28  ;;  %v1474_v38 = vadd.f32 %v1178_v35, %v578_v37  ;;  %v4917_v45 = vpop.f32.mrf.mxu1 }
 0x1af   :  { %v709_v48 = vsub.f32 0.0, %v645_v24 }
 0x1b0   :  { %v3792_v55 = vadd.f32 -0.6931472, %v1474_v38 }
 0x1b1   :  { %v4309_v34 = vpop.eup %4308  ;;  %v810_v27 = vmul.f32 1.442695, %v709_v48 }
 0x1b2   :  { %v4311_v22 = vpop.eup %4310  ;;  %v1188_v39 = vadd.f32 1.0, %v4309_v34  ;;  %v479_v31 = vpop.f32.mrf.mxu0  ;;  %v1191_v53 = vmul.f32 -0.5, %v4309_v34  ;;  %v1194_v7 = vand.u32 2147483647, %v4309_v34 }
 0x1b3   :  { %v1181_v18 = vmul.f32 0.6931472, %v4311_v22  ;;  %4312 = vpow2.f32 %v810_v27  ;;  %v4905_v46 = vadd.f32 %v4755_v62, %v479_v31  ;;  %v581_v27 = vmax.f32 %v4890_v63, 0.0 }
 0x1b4   :  { %4314 = vlog2.f32 %v1188_v39  ;;  %v1192_v57 = vadd.f32 1.0, %v1191_v53 }
 0x1b5   :  { %v1187_v21 = vsel %vm1186_vm9, %v1184_v42, %v1181_v18  ;;  %v646_v51 = vand.u32 2147483647, %v4905_v46  ;;  %3753 = vmatmul.msk.bf16.gmra.mxu0 %vm278_vm0, %v4109_v36  ;;  %vm1195_vm0 = vcmp.lt.f32.partialorder %v1194_v7, 0.0004427343 }
 0x1b6   :  { %v1475_v52 = vadd.f32 %v1187_v21, %v579_v50  ;;  %v1193_v59 = vmul.f32 %v4309_v34, %v1192_v57  ;;  %v4925_v53 = vpop.f32.mrf.mxu1 }
 0x1b7   :  { %v710_v54 = vsub.f32 0.0, %v646_v51 }
 0x1b8   :  { %v3793_v9 = vadd.f32 -0.6931472, %v1475_v52 }
 0x1b9   :  { %v4313_v23 = vpop.eup %4312  ;;  %v812_v61 = vmul.f32 1.442695, %v710_v54 }
 0x1ba   :  { %v4315_v49 = vpop.eup %4314  ;;  %v1585_v1 = vpack.c.bf16 %v3793_v9, %v3792_v55  ;;  %v1197_v25 = vadd.f32 1.0, %v4313_v23  ;;  %v481_v0 = vpop.f32.mrf.mxu0  ;;  %v1200_v4 = vmul.f32 -0.5, %v4313_v23  ;;  %v1203_v43 = vand.u32 2147483647, %v4313_v23 }
 0x1bb   :  { %4316 = vpow2.f32 %v812_v61  ;;  %v4913_v30 = vadd.f32 %v4755_v62, %v481_v0  ;;  %v1190_v56 = vmul.f32 0.6931472, %v4315_v49 }
 0x1bc   :  { %4318 = vlog2.f32 %v1197_v25  ;;  %3847 = vmatmul.msk.bf16.gmra.mxu1 %vm1620_vm3, %v1585_v1  ;;  %v1201_v14 = vadd.f32 1.0, %v1200_v4  ;;  %vm1204_vm10 = vcmp.lt.f32.partialorder %v1203_v43, 0.0004427343 }
 0x1bd   :  { %v647_v12 = vand.u32 2147483647, %v4913_v30  ;;  %v1196_v17 = vsel %vm1195_vm0, %v1193_v59, %v1190_v56 }
 0x1be   :  { %v1202_v29 = vmul.f32 %v4313_v23, %v1201_v14  ;;  %v1476_v34 = vadd.f32 %v1196_v17, %v580_v26 }
 0x1bf   :  { %v711_v15 = vsub.f32 0.0, %v647_v12  ;;  %v582_v12 = vmax.f32 %v4905_v46, 0.0 }
 0x1c0   :  { %v3794_v58 = vadd.f32 -0.6931472, %v1476_v34 }
 0x1c1   :  { %v4317_v16 = vpop.eup %4316  ;;  %v814_v19 = vmul.f32 1.442695, %v711_v15 }
 0x1c2   :  { %v4319_v24 = vpop.eup %4318  ;;  %v1206_v28 = vadd.f32 1.0, %v4317_v16  ;;  %v484_v48 = vpop.f32.mrf.mxu0  ;;  %v1209_v39 = vmul.f32 -0.5, %v4317_v16  ;;  %v1212_v9 = vand.u32 2147483647, %v4317_v16 }
 0x1c3   :  { %v1199_v6 = vmul.f32 0.6931472, %v4319_v24  ;;  %4320 = vpow2.f32 %v814_v19  ;;  %v4921_v35 = vadd.f32 %v4755_v62, %v484_v48  ;;  %v4937_v24 = vpop.f32.mrf.mxu1 }
 0x1c4   :  { %4322 = vlog2.f32 %v1206_v28  ;;  %v1210_v54 = vadd.f32 1.0, %v1209_v39  ;;  %vm1213_vm11 = vcmp.lt.f32.partialorder %v1212_v9, 0.0004427343 }
 0x1c5   :  { %v1205_v36 = vsel %vm1204_vm10, %v1202_v29, %v1199_v6  ;;  %v648_v22 = vand.u32 2147483647, %v4921_v35 }
 0x1c6   :  { %v1477_v37 = vadd.f32 %v1205_v36, %v581_v27  ;;  %v1211_v49 = vmul.f32 %v4317_v16, %v1210_v54  ;;  %v583_v16 = vmax.f32 %v4913_v30, 0.0 }
 0x1c7   :  { %v712_v31 = vsub.f32 0.0, %v648_v22 }
 0x1c8   :  { %v3795_v18 = vadd.f32 -0.6931472, %v1477_v37 }
 0x1c9   :  { %v4321_v42 = vpop.eup %4320  ;;  %v816_v38 = vmul.f32 1.442695, %v712_v31 }
 0x1ca   :  { %v4323_v50 = vpop.eup %4322  ;;  %v1586_v21 = vpack.c.bf16 %v3795_v18, %v3794_v58  ;;  %v1215_v51 = vadd.f32 1.0, %v4321_v42  ;;  %v486_v52 = vpop.f32.mrf.mxu0  ;;  %v1218_v63 = vmul.f32 -0.5, %v4321_v42  ;;  %v1221_v0 = vand.u32 2147483647, %v4321_v42 }
 0x1cb   :  { %4324 = vpow2.f32 %v816_v38  ;;  %v4928_v55 = vadd.f32 %v4755_v62, %v486_v52  ;;  %v1208_v23 = vmul.f32 0.6931472, %v4323_v50 }
 0x1cc   :  { %4326 = vlog2.f32 %v1215_v51  ;;  %3848 = vmatmul.msk.bf16.gmra.mxu1 %vm1620_vm3, %v1586_v21  ;;  %v1219_v1 = vadd.f32 1.0, %v1218_v63  ;;  %vm1222_vm12 = vcmp.lt.f32.partialorder %v1221_v0, 0.0004427343  ;;  %v4945_v21 = vpop.f32.mrf.mxu1 }
 0x1cd   :  { %v649_v61 = vand.u32 2147483647, %v4928_v55  ;;  %v1214_v4 = vsel %vm1213_vm11, %v1211_v49, %v1208_v23 }
 0x1ce   :  { %v1220_v43 = vmul.f32 %v4321_v42, %v1219_v1  ;;  %v1478_v19 = vadd.f32 %v1214_v4, %v582_v12  ;;  %v584_v1 = vmax.f32 %v4921_v35, 0.0 }
 0x1cf   :  { %v713_v25 = vsub.f32 0.0, %v649_v61 }
 0x1d0   :  { %v3796_v29 = vadd.f32 -0.6931472, %v1478_v19 }
 0x1d1   :  { %v4325_v57 = vpop.eup %4324  ;;  %v818_v7 = vmul.f32 1.442695, %v713_v25 }
 0x1d2   :  { %v4327_v56 = vpop.eup %4326  ;;  %v1224_v59 = vadd.f32 1.0, %v4325_v57  ;;  %v489_v14 = vpop.f32.mrf.mxu0  ;;  %v1227_v46 = vmul.f32 -0.5, %v4325_v57  ;;  %v1230_v42 = vand.u32 2147483647, %v4325_v57 }
 0x1d3   :  { %v1217_v15 = vmul.f32 0.6931472, %v4327_v56  ;;  %4328 = vpow2.f32 %v818_v7  ;;  %v4934_v17 = vadd.f32 %v4755_v62, %v489_v14 }
 0x1d4   :  { %4330 = vlog2.f32 %v1224_v59  ;;  %v1228_v58 = vadd.f32 1.0, %v1227_v46  ;;  %vm1231_vm13 = vcmp.lt.f32.partialorder %v1230_v42, 0.0004427343 }
 0x1d5   :  { %v1223_v26 = vsel %vm1222_vm12, %v1220_v43, %v1217_v15  ;;  %v650_v28 = vand.u32 2147483647, %v4934_v17 }
 0x1d6   :  { %v1479_v48 = vadd.f32 %v1223_v26, %v583_v16  ;;  %v1229_v51 = vmul.f32 %v4325_v57, %v1228_v58  ;;  %v585_v57 = vmax.f32 %v4928_v55, 0.0 }
 0x1d7   :  { %v714_v6 = vsub.f32 0.0, %v650_v28  ;;  %v4953_v28 = vpop.f32.mrf.mxu1 }
 0x1d8   :  { %v3797_v34 = vadd.f32 -0.6931472, %v1479_v48 }
 0x1d9   :  { %v4329_v27 = vpop.eup %4328  ;;  %v820_v36 = vmul.f32 1.442695, %v714_v6 }
 0x1da   :  { %v4331_v22 = vpop.eup %4330  ;;  %v1587_v37 = vpack.c.bf16 %v3797_v34, %v3796_v29  ;;  %v1233_v39 = vadd.f32 1.0, %v4329_v27  ;;  %v491_v31 = vpop.f32.mrf.mxu0  ;;  %v1236_v30 = vmul.f32 -0.5, %v4329_v27  ;;  %v1239_v63 = vand.u32 2147483647, %v4329_v27 }
 0x1db   :  { %4332 = vpow2.f32 %v820_v36  ;;  %v4941_v18 = vadd.f32 %v4755_v62, %v491_v31  ;;  %v1226_v38 = vmul.f32 0.6931472, %v4331_v22 }
 0x1dc   :  { %4334 = vlog2.f32 %v1233_v39  ;;  %3849 = vmatmul.msk.bf16.gmra.mxu1 %vm1620_vm3, %v1587_v37  ;;  %v1237_v52 = vadd.f32 1.0, %v1236_v30  ;;  %vm1240_vm14 = vcmp.lt.f32.partialorder %v1239_v63, 0.0004427343 }
 0x1dd   :  { %v651_v50 = vand.u32 2147483647, %v4941_v18  ;;  %v1232_v23 = vsel %vm1231_vm13, %v1229_v51, %v1226_v38 }
 0x1de   :  { %v1238_v7 = vmul.f32 %v4329_v27, %v1237_v52  ;;  %v1480_v12 = vadd.f32 %v1232_v23, %v584_v1 }
 0x1df   :  { %v715_v54 = vsub.f32 0.0, %v651_v50 }
 0x1e0   :  { %v3798_v35 = vadd.f32 -0.6931472, %v1480_v12 }
 0x1e1   :  { %v4333_v9 = vpop.eup %4332  ;;  %v822_v61 = vmul.f32 1.442695, %v715_v54  ;;  %v586_v54 = vmax.f32 %v4934_v17, 0.0 }
 0x1e2   :  { %v4335_v49 = vpop.eup %4334  ;;  %v1242_v25 = vadd.f32 1.0, %v4333_v9  ;;  %v494_v0 = vpop.f32.mrf.mxu0  ;;  %v1245_v43 = vmul.f32 -0.5, %v4333_v9  ;;  %v1248_v22 = vand.u32 2147483647, %v4333_v9 }
 0x1e3   :  { %v1235_v4 = vmul.f32 0.6931472, %v4335_v49  ;;  %4336 = vpow2.f32 %v822_v61  ;;  %v4949_v56 = vadd.f32 %v4755_v62, %v494_v0  ;;  %v4961_v61 = vpop.f32.mrf.mxu1  ;;  %v587_v0 = vmax.f32 %v4941_v18, 0.0 }
 0x1e4   :  { %4338 = vlog2.f32 %v1242_v25  ;;  %v1246_v27 = vadd.f32 1.0, %v1245_v43  ;;  %vm1249_vm15 = vcmp.lt.f32.partialorder %v1248_v22, 0.0004427343 }
 0x1e5   :  { %v1241_v59 = vsel %vm1240_vm14, %v1238_v7, %v1235_v4  ;;  %v652_v14 = vand.u32 2147483647, %v4949_v56 }
 0x1e6   :  { %v1481_v15 = vadd.f32 %v1241_v59, %v585_v57  ;;  %v1247_v31 = vmul.f32 %v4333_v9, %v1246_v27 }
 0x1e7   :  { %v716_v19 = vsub.f32 0.0, %v652_v14 }
 0x1e8   :  { %v3799_v16 = vadd.f32 -0.6931472, %v1481_v15 }
 0x1e9   :  { %v4337_v26 = vpop.eup %4336  ;;  %v824_v48 = vmul.f32 1.442695, %v716_v19 }
 0x1ea   :  { %v4339_v46 = vpop.eup %4338  ;;  %v1588_v6 = vpack.c.bf16 %v3799_v16, %v3798_v35  ;;  %v1251_v29 = vadd.f32 1.0, %v4337_v26  ;;  %v496_v34 = vpop.f32.mrf.mxu0  ;;  %v1254_v55 = vmul.f32 -0.5, %v4337_v26  ;;  %v1257_v42 = vand.u32 2147483647, %v4337_v26 }
 0x1eb   :  { %4340 = vpow2.f32 %v824_v48  ;;  %v4956_v36 = vadd.f32 %v4755_v62, %v496_v34  ;;  %v1244_v37 = vmul.f32 0.6931472, %v4339_v46 }
 0x1ec   :  { %4342 = vlog2.f32 %v1251_v29  ;;  %3850 = vmatmul.msk.bf16.gmra.mxu1 %vm1620_vm3, %v1588_v6  ;;  %v1255_v58 = vadd.f32 1.0, %v1254_v55  ;;  %vm1258_vm1 = vcmp.lt.f32.partialorder %v1257_v42, 0.0004427343  ;;  %v4971_v29 = vpop.f32.mrf.mxu1 }
 0x1ed   :  { %v653_v39 = vand.u32 2147483647, %v4956_v36  ;;  %v1250_v50 = vsel %vm1249_vm15, %v1247_v31, %v1244_v37 }
 0x1ee   :  { %v1256_v1 = vmul.f32 %v4337_v26, %v1255_v58  ;;  %v1482_v9 = vadd.f32 %v1250_v50, %v586_v54 }
 0x1ef   :  { %v717_v30 = vsub.f32 0.0, %v653_v39 }
 0x1f0   :  { %v3800_v59 = vadd.f32 -0.6931472, %v1482_v9 }
 0x1f1   :  { %v4341_v38 = vpop.eup %4340  ;;  %v826_v51 = vmul.f32 1.442695, %v717_v30 }
 0x1f2   :  { %v4343_v52 = vpop.eup %4342  ;;  %v1260_v63 = vadd.f32 1.0, %v4341_v38  ;;  %v499_v23 = vpop.f32.mrf.mxu0  ;;  %v1263_v17 = vmul.f32 -0.5, %v4341_v38  ;;  %v1266_v6 = vand.u32 2147483647, %v4341_v38 }
 0x1f3   :  { %v1253_v49 = vmul.f32 0.6931472, %v4343_v52  ;;  %4344 = vpow2.f32 %v826_v51  ;;  %v4964_v25 = vadd.f32 %v4755_v62, %v499_v23 }
 0x1f4   :  { %4346 = vlog2.f32 %v1260_v63  ;;  %v1264_v48 = vadd.f32 1.0, %v1263_v17  ;;  %vm1267_vm2 = vcmp.lt.f32.partialorder %v1266_v6, 0.0004427343  ;;  %v4979_v63 = vld [vmem:[%s5678_s4] ss:$0 sm:$0xff] }
 0x1f5   :  { %v1259_v4 = vsel %vm1258_vm1, %v1256_v1, %v1253_v49  ;;  %v654_v7 = vand.u32 2147483647, %v4964_v25  ;;  %v589_v49 = vmax.f32 %v4956_v36, 0.0 }
 0x1f6   :  { %v1483_v12 = vadd.f32 %v1259_v4, %v587_v0  ;;  %v1265_v55 = vmul.f32 %v4341_v38, %v1264_v48  ;;  %v4986_v0 = vpop.f32.mrf.mxu1 }
 0x1f7   :  { %v718_v57 = vsub.f32 0.0, %v654_v7 }
 0x1f8   :  { %v3801_v14 = vadd.f32 -0.6931472, %v1483_v12 }
 0x1f9   :  { %v4345_v15 = vpop.eup %4344  ;;  %v828_v43 = vmul.f32 1.442695, %v718_v57 }
 0x1fa   :  { %v4347_v19 = vpop.eup %4346  ;;  %v1589_v35 = vpack.c.bf16 %v3801_v14, %v3800_v59  ;;  %v1269_v16 = vadd.f32 1.0, %v4345_v15  ;;  %v501_v26 = vpop.f32.mrf.mxu0  ;;  %v1272_v46 = vmul.f32 -0.5, %v4345_v15  ;;  %v1275_v39 = vand.u32 2147483647, %v4345_v15 }
 0x1fb   :  { %4348 = vpow2.f32 %v828_v43  ;;  %v4969_v18 = vadd.f32 %v4755_v62, %v501_v26  ;;  %v1262_v34 = vmul.f32 0.6931472, %v4347_v19  ;;  %v588_v62 = vmax.f32 %v4949_v56, 0.0 }
 0x1fc   :  { %4350 = vlog2.f32 %v1269_v16  ;;  %3851 = vmatmul.msk.bf16.gmra.mxu1 %vm1620_vm3, %v1589_v35  ;;  %v1273_v22 = vadd.f32 1.0, %v1272_v46  ;;  %vm1276_vm4 = vcmp.lt.f32.partialorder %v1275_v39, 0.0004427343 }
 0x1fd   :  { %v655_v27 = vand.u32 2147483647, %v4969_v18  ;;  %v1268_v58 = vsel %vm1267_vm2, %v1265_v55, %v1262_v34 }
 0x1fe   :  { %v1274_v54 = vmul.f32 %v4345_v15, %v1273_v22  ;;  %v1484_v23 = vadd.f32 %v1268_v58, %v588_v62 }
 0x1ff   :  { %v719_v37 = vsub.f32 0.0, %v655_v27 }
 0x200   :  { %v3802_v12 = vadd.f32 -0.6931472, %v1484_v23  ;;  %v591_v23 = vmax.f32 %v4969_v18, 0.0 }
 0x201   :  { %v4349_v31 = vpop.eup %4348  ;;  %v830_v30 = vmul.f32 1.442695, %v719_v37  ;;  %v4993_v37 = vpop.f32.mrf.mxu1 }
 0x202   :  { %v4351_v42 = vpop.eup %4350  ;;  %v1278_v50 = vadd.f32 1.0, %v4349_v31  ;;  %v504_v51 = vpop.f32.mrf.mxu0  ;;  %v1281_v4 = vmul.f32 -0.5, %v4349_v31  ;;  %v1284_v26 = vand.u32 2147483647, %v4349_v31 }
 0x203   :  { %v1271_v52 = vmul.f32 0.6931472, %v4351_v42  ;;  %4352 = vpow2.f32 %v830_v30  ;;  %v4982_v38 = vadd.f32 %v4979_v63, %v504_v51  ;;  %v590_v42 = vmax.f32 %v4964_v25, 0.0 }
 0x204   :  { %4354 = vlog2.f32 %v1278_v50  ;;  %v1282_v35 = vadd.f32 1.0, %v1281_v4  ;;  %vm1285_vm5 = vcmp.lt.f32.partialorder %v1284_v26, 0.0004427343  ;;  %v524_v26 = vpop.f32.mrf.mxu3 }
 0x205   :  { %v1277_v1 = vsel %vm1276_vm4, %v1274_v54, %v1271_v52  ;;  %v656_v56 = vand.u32 2147483647, %v4982_v38 }
 0x206   :  { %v1485_v9 = vadd.f32 %v1277_v1, %v589_v49  ;;  %v1283_v6 = vmul.f32 %v4349_v31, %v1282_v35 }
 0x207   :  { %v720_v7 = vsub.f32 0.0, %v656_v56 }
 0x208   :  { %v3803_v17 = vadd.f32 -0.6931472, %v1485_v9 }
 0x209   :  { %v4353_v57 = vpop.eup %4352  ;;  %v832_v59 = vmul.f32 1.442695, %v720_v7 }
 0x20a   :  { %v4355_v14 = vpop.eup %4354  ;;  %v1590_v15 = vpack.c.bf16 %v3803_v17, %v3802_v12  ;;  %v1287_v43 = vadd.f32 1.0, %v4353_v57  ;;  %v506_v19 = vpop.f32.mrf.mxu0  ;;  %v1290_v36 = vmul.f32 -0.5, %v4353_v57  ;;  %v1293_v55 = vand.u32 2147483647, %v4353_v57 }
 0x20b   :  { %4356 = vpow2.f32 %v832_v59  ;;  %v4989_v16 = vadd.f32 %v4979_v63, %v506_v19  ;;  %v1280_v48 = vmul.f32 0.6931472, %v4355_v14 }
 0x20c   :  { %4358 = vlog2.f32 %v1287_v43  ;;  %3852 = vmatmul.msk.bf16.gmra.mxu1 %vm1620_vm3, %v1590_v15  ;;  %v1291_v34 = vadd.f32 1.0, %v1290_v36  ;;  %vm1294_vm6 = vcmp.lt.f32.partialorder %v1293_v55, 0.0004427343  ;;  %v5001_v43 = vpop.f32.mrf.mxu1 }
 0x20d   :  { %v657_v46 = vand.u32 2147483647, %v4989_v16  ;;  %v1286_v39 = vsel %vm1285_vm5, %v1283_v6, %v1280_v48 }
 0x20e   :  { %v1292_v52 = vmul.f32 %v4353_v57, %v1291_v34  ;;  %v1486_v31 = vadd.f32 %v1286_v39, %v590_v42 }
 0x20f   :  { %v721_v27 = vsub.f32 0.0, %v657_v46 }
 0x210   :  { %v3804_v25 = vadd.f32 -0.6931472, %v1486_v31 }
 0x211   :  { %v4357_v22 = vpop.eup %4356  ;;  %v834_v58 = vmul.f32 1.442695, %v721_v27 }
 0x212   :  { %v4359_v30 = vpop.eup %4358  ;;  %v1296_v62 = vadd.f32 1.0, %v4357_v22  ;;  %v509_v50 = vpop.f32.mrf.mxu0  ;;  %v1299_v9 = vmul.f32 -0.5, %v4357_v22  ;;  %v1302_v36 = vand.u32 2147483647, %v4357_v22 }
 0x213   :  { %v1289_v51 = vmul.f32 0.6931472, %v4359_v30  ;;  %4360 = vpow2.f32 %v834_v58  ;;  %v4997_v54 = vadd.f32 %v4979_v63, %v509_v50 }
 0x214   :  { %4362 = vlog2.f32 %v1296_v62  ;;  %v1300_v19 = vadd.f32 1.0, %v1299_v9  ;;  %vm1303_vm7 = vcmp.lt.f32.partialorder %v1302_v36, 0.0004427343  ;;  %v592_v62 = vmax.f32 %v4982_v38, 0.0  ;;  %v526_v38 = vpop.f32.mrf.mxu3 }
 0x215   :  { %v1295_v49 = vsel %vm1294_vm6, %v1292_v52, %v1289_v51  ;;  %v658_v1 = vand.u32 2147483647, %v4997_v54 }
 0x216   :  { %v1487_v56 = vadd.f32 %v1295_v49, %v591_v23  ;;  %v1301_v6 = vmul.f32 %v4357_v22, %v1300_v19  ;;  %v593_v22 = vmax.f32 %v4989_v16, 0.0 }
 0x217   :  { %v722_v4 = vsub.f32 0.0, %v658_v1  ;;  %v5013_v1 = vpop.f32.mrf.mxu1 }
 0x218   :  { %v3805_v7 = vadd.f32 -0.6931472, %v1487_v56 }
 0x219   :  { %v4361_v12 = vpop.eup %4360  ;;  %v836_v17 = vmul.f32 1.442695, %v722_v4 }
 0x21a   :  { %v4363_v57 = vpop.eup %4362  ;;  %v1591_v59 = vpack.c.bf16 %v3805_v7, %v3804_v25  ;;  %v1305_v14 = vadd.f32 1.0, %v4361_v12  ;;  %v511_v15 = vpop.f32.mrf.mxu0  ;;  %v1308_v18 = vmul.f32 -0.5, %v4361_v12  ;;  %v1311_v55 = vand.u32 2147483647, %v4361_v12 }
 0x21b   :  { %4364 = vpow2.f32 %v836_v17  ;;  %v5004_v35 = vadd.f32 %v4979_v63, %v511_v15  ;;  %v1298_v48 = vmul.f32 0.6931472, %v4363_v57 }
 0x21c   :  { %4366 = vlog2.f32 %v1305_v14  ;;  %3853 = vmatmul.msk.bf16.gmra.mxu1 %vm1620_vm3, %v1591_v59  ;;  %v1309_v34 = vadd.f32 1.0, %v1308_v18  ;;  %vm1312_vm8 = vcmp.lt.f32.partialorder %v1311_v55, 0.0004427343 }
 0x21d   :  { %v659_v46 = vand.u32 2147483647, %v5004_v35  ;;  %v1304_v58 = vsel %vm1303_vm7, %v1301_v6, %v1298_v48 }
 0x21e   :  { %v1310_v31 = vmul.f32 %v4361_v12, %v1309_v34  ;;  %v1488_v49 = vadd.f32 %v1304_v58, %v592_v62  ;;  %v529_v62 = vpop.f32.mrf.mxu3 }
 0x21f   :  { %v723_v27 = vsub.f32 0.0, %v659_v46 }
 0x220   :  { %v3806_v17 = vadd.f32 -0.6931472, %v1488_v49 }
 0x221   :  { %v4365_v39 = vpop.eup %4364  ;;  %v838_v30 = vmul.f32 1.442695, %v723_v27  ;;  %v5021_v27 = vpop.f32.mrf.mxu1 }
 0x222   :  { %v4367_v42 = vpop.eup %4366  ;;  %v1314_v50 = vadd.f32 1.0, %v4365_v39  ;;  %v514_v51 = vpop.f32.mrf.mxu0  ;;  %v1317_v25 = vmul.f32 -0.5, %v4365_v39  ;;  %v1320_v48 = vand.u32 2147483647, %v4365_v39 }
 0x223   :  { %v1307_v52 = vmul.f32 0.6931472, %v4367_v42  ;;  %4368 = vpow2.f32 %v838_v30  ;;  %v5010_v23 = vadd.f32 %v4979_v63, %v514_v51 }
 0x224   :  { %4370 = vlog2.f32 %v1314_v50  ;;  %v1318_v16 = vadd.f32 1.0, %v1317_v25  ;;  %vm1321_vm9 = vcmp.lt.f32.partialorder %v1320_v48, 0.0004427343 }
 0x225   :  { %v1313_v56 = vsel %vm1312_vm8, %v1310_v31, %v1307_v52  ;;  %v660_v9 = vand.u32 2147483647, %v5010_v23  ;;  %v594_v31 = vmax.f32 %v4997_v54, 0.0  ;;  %vm2076_vm8 = vcmask 1043456  }
 0x226   :  { %v1489_v4 = vadd.f32 %v1313_v56, %v593_v22  ;;  %v1319_v55 = vmul.f32 %v4365_v39, %v1318_v16  ;;  %v5025_v22 = vadd.f32 %v4979_v63, %v524_v26 }
 0x227   :  { %v724_v7 = vsub.f32 0.0, %v660_v9 }
 0x228   :  { %v3807_v12 = vadd.f32 -0.6931472, %v1489_v4 }
 0x229   :  { %v4369_v57 = vpop.eup %4368  ;;  %v840_v59 = vmul.f32 1.442695, %v724_v7 }
 0x22a   :  { %v4371_v14 = vpop.eup %4370  ;;  %v1592_v15 = vpack.c.bf16 %v3807_v12, %v3806_v17  ;;  %v1323_v19 = vadd.f32 1.0, %v4369_v57  ;;  %v516_v18 = vpop.f32.mrf.mxu0  ;;  %v1326_v36 = vmul.f32 -0.5, %v4369_v57  ;;  %v1329_v30 = vand.u32 2147483647, %v4369_v57 }
 0x22b   :  { %4372 = vpow2.f32 %v840_v59  ;;  %v5017_v46 = vadd.f32 %v4979_v63, %v516_v18  ;;  %v1316_v6 = vmul.f32 0.6931472, %v4371_v14  ;;  %v595_v17 = vmax.f32 %v5004_v35, 0.0  ;;  %v5036_v18 = vpop.f32.mrf.mxu1 }
 0x22c   :  { %4374 = vlog2.f32 %v1323_v19  ;;  %3854 = vmatmul.msk.bf16.gmra.mxu1 %vm1620_vm3, %v1592_v15  ;;  %v1327_v58 = vadd.f32 1.0, %v1326_v36  ;;  %vm1330_vm0 = vcmp.lt.f32.partialorder %v1329_v30, 0.0004427343  ;;  %v5032_v59 = vadd.f32 %v4979_v63, %v526_v38  ;;  %v531_v38 = vpop.f32.mrf.mxu3 }
 0x22d   :  { %v661_v34 = vand.u32 2147483647, %v5017_v46  ;;  %v1322_v51 = vsel %vm1321_vm9, %v1319_v55, %v1316_v6  ;;  %v664_v14 = vand.u32 2147483647, %v5025_v22  ;;  %vm2063_vm9 = vcmask 64512  }
 0x22e   :  { %v1328_v25 = vmul.f32 %v4369_v57, %v1327_v58  ;;  %v1490_v7 = vadd.f32 %v1322_v51, %v594_v31  ;;  %v665_v35 = vand.u32 2147483647, %v5032_v59 }
 0x22f   :  { %v725_v42 = vsub.f32 0.0, %v661_v34  ;;  %v728_v6 = vsub.f32 0.0, %v664_v14 }
 0x230   :  { %v3808_v57 = vadd.f32 -0.6931472, %v1490_v7  ;;  %v729_v31 = vsub.f32 0.0, %v665_v35 }
 0x231   :  { %v4373_v50 = vpop.eup %4372  ;;  %v842_v56 = vmul.f32 1.442695, %v725_v42 }
 0x232   :  { %v4375_v52 = vpop.eup %4374  ;;  %v1332_v49 = vadd.f32 1.0, %v4373_v50  ;;  %v519_v9 = vpop.f32.mrf.mxu0  ;;  %v1335_v16 = vmul.f32 -0.5, %v4373_v50 }
 0x233   :  { %v1325_v4 = vmul.f32 0.6931472, %v4375_v52  ;;  %v5028_v39 = vadd.f32 %v4979_v63, %v519_v9  ;;  %4376 = vpow2.f32 %v842_v56  ;;  %v1338_v56 = vand.u32 2147483647, %v4373_v50 }
 0x234   :  { %4378 = vlog2.f32 %v1332_v49  ;;  %v1336_v51 = vadd.f32 1.0, %v1335_v16  ;;  %v848_v9 = vmul.f32 1.442695, %v728_v6  ;;  %v5051_v16 = vadd.f32 %v4979_v63, %v529_v62 }
 0x235   :  { %v1331_v12 = vsel %vm1330_vm0, %v1328_v25, %v1325_v4  ;;  %v662_v54 = vand.u32 2147483647, %v5028_v39  ;;  %vm5044_vm10 = vcmp.lt.f32.partialorder %v1338_v56, 0.0004427343  ;;  %vm3269_vm0 = vcmask 1041409  }
 0x236   :  { %v1491_v26 = vadd.f32 %v1331_v12, %v595_v17  ;;  %v1337_v17 = vmul.f32 %v4373_v50, %v1336_v51  ;;  %v596_v50 = vmax.f32 %v5010_v23, 0.0  ;;  %v597_v51 = vmax.f32 %v5017_v46, 0.0 }
 0x237   :  { %v726_v15 = vsub.f32 0.0, %v662_v54  ;;  %v850_v54 = vmul.f32 1.442695, %v729_v31  ;;  %v666_v31 = vand.u32 2147483647, %v5051_v16 }
 0x238   :  { %v3809_v19 = vadd.f32 -0.6931472, %v1491_v26 }
 0x239   :  { %v844_v36 = vmul.f32 1.442695, %v726_v15  ;;  %v4377_v55 = vpop.eup %4376 }
 0x23a   :  { %v1593_v48 = vpack.c.bf16 %v3809_v19, %v3808_v57  ;;  %v521_v34 = vpop.f32.mrf.mxu0  ;;  %v4379_v30 = vpop.eup %4378  ;;  %v1341_v42 = vadd.f32 1.0, %v4377_v55  ;;  %v1344_v52 = vmul.f32 -0.5, %v4377_v55  ;;  %v1347_v15 = vand.u32 2147483647, %v4377_v55 }
 0x23b   :  { %4380 = vpow2.f32 %v844_v36  ;;  %v5040_v58 = vadd.f32 %v4979_v63, %v521_v34  ;;  %v1334_v4 = vmul.f32 0.6931472, %v4379_v30  ;;  %v5053_v36 = vpop.f32.mrf.mxu1  ;;  %v5057_v30 = vadd.f32 %v4979_v63, %v531_v38 }
 0x23c   :  { %3855 = vmatmul.msk.bf16.gmra.mxu1 %vm1620_vm3, %v1593_v48  ;;  %4382 = vlog2.f32 %v1341_v42  ;;  %v1345_v12 = vadd.f32 1.0, %v1344_v52  ;;  %v534_v48 = vpop.f32.mrf.mxu3  ;;  %vm1348_vm11 = vcmp.lt.f32.partialorder %v1347_v15, 0.0004427343 }
 0x23d   :  { %v663_v49 = vand.u32 2147483647, %v5040_v58  ;;  %4384 = vpow2.f32 %v848_v9  ;;  %v1340_v19 = vsel %vm5044_vm10, %v1337_v17, %v1334_v4  ;;  %v667_v9 = vand.u32 2147483647, %v5057_v30 }
 0x23e   :  { %v1346_v34 = vmul.f32 %v4377_v55, %v1345_v12  ;;  %v1492_v42 = vadd.f32 %v1340_v19, %v596_v50  ;;  %vm3271_vm10 = vcmask 1042434  }
 0x23f   :  { %v727_v25 = vsub.f32 0.0, %v663_v49  ;;  %v731_v19 = vsub.f32 0.0, %v667_v9  ;;  %v598_v9 = vmax.f32 %v5028_v39, 0.0 }
 0x240   :  { %v3810_v55 = vadd.f32 -0.6931472, %v1492_v42 }
 0x241   :  { %v4381_v7 = vpop.eup %4380  ;;  %v846_v26 = vmul.f32 1.442695, %v727_v25 }
 0x242   :  { %v1350_v57 = vadd.f32 1.0, %v4381_v7  ;;  %v4383_v35 = vpop.eup %4382  ;;  %v1353_v52 = vmul.f32 -0.5, %v4381_v7  ;;  %v1356_v14 = vand.u32 2147483647, %v4381_v7 }
 0x243   :  { %4386 = vpow2.f32 %v846_v26  ;;  %v1343_v6 = vmul.f32 0.6931472, %v4383_v35  ;;  %v5061_v49 = vpop.eup %4384  ;;  %v5065_v35 = vpop.f32.mrf.mxu1 }
 0x244   :  { %4388 = vlog2.f32 %v1350_v57  ;;  %v1354_v12 = vadd.f32 1.0, %v1353_v52  ;;  %v1368_v15 = vadd.f32 1.0, %v5061_v49  ;;  %5695 = vst [vmem:[#allocation2_spill] sm:$0xff] %v5065_v35  ;;  %vm1357_vm12 = vcmp.lt.f32.partialorder %v1356_v14, 0.0004427343 }
 0x245   :  { %4390 = vpow2.f32 %v850_v54  ;;  %v1349_v62 = vsel %vm1348_vm11, %v1346_v34, %v1343_v6  ;;  %v730_v54 = vsub.f32 0.0, %v666_v31  ;;  %v536_v6 = vpop.f32.mrf.mxu3  ;;  %v854_v31 = vmul.f32 1.442695, %v731_v19 }
 0x246   :  { %v1493_v56 = vadd.f32 %v1349_v62, %v597_v51  ;;  %v1355_v34 = vmul.f32 %v4381_v7, %v1354_v12  ;;  %v599_v7 = vmax.f32 %v5040_v58, 0.0  ;;  %v5072_v12 = vadd.f32 %v4979_v63, %v534_v48 }
 0x247   :  { %v852_v42 = vmul.f32 1.442695, %v730_v54  ;;  %v1374_v39 = vand.u32 2147483647, %v5061_v49  ;;  %vm3273_vm11 = vcmask 1043459  }
 0x248   :  { %v3811_v25 = vadd.f32 -0.6931472, %v1493_v56  ;;  %v668_v58 = vand.u32 2147483647, %v5072_v12 }
 0x249   :  { %v4387_v23 = vpop.eup %4386  ;;  %vm1375_vm14 = vcmp.lt.f32.partialorder %v1374_v39, 0.0004427343 }
 0x24a   :  { %v4389_v4 = vpop.eup %4388  ;;  %v1359_v17 = vadd.f32 1.0, %v4387_v23  ;;  %v1362_v26 = vmul.f32 -0.5, %v4387_v23  ;;  %v1594_v46 = vpack.c.bf16 %v3811_v25, %v3810_v55  ;;  %v1365_v62 = vand.u32 2147483647, %v4387_v23 }
 0x24b   :  { %v4391_v38 = vpop.eup %4390  ;;  %v1352_v57 = vmul.f32 0.6931472, %v4389_v4  ;;  %v1371_v55 = vmul.f32 -0.5, %v5061_v49 }
 0x24c   :  { %4392 = vlog2.f32 %v1359_v17  ;;  %v1377_v50 = vadd.f32 1.0, %v4391_v38  ;;  %3856 = vmatmul.msk.bf16.gmra.mxu1 %vm1620_vm3, %v1594_v46  ;;  %v1363_v51 = vadd.f32 1.0, %v1362_v26  ;;  %v1380_v4 = vmul.f32 -0.5, %v4391_v38 }
 0x24d   :  { %4394 = vlog2.f32 %v1368_v15  ;;  %v1358_v52 = vsel %vm1357_vm12, %v1355_v34, %v1352_v57  ;;  %vm1366_vm13 = vcmp.lt.f32.partialorder %v1365_v62, 0.0004427343  ;;  %v5075_v26 = vadd.f32 %v4979_v63, %v536_v6 }
 0x24e   :  { %4396 = vlog2.f32 %v1377_v50  ;;  %v1364_v17 = vmul.f32 %v4387_v23, %v1363_v51  ;;  %v1494_v35 = vadd.f32 %v1358_v52, %v598_v9  ;;  %v1372_v15 = vadd.f32 1.0, %v1371_v55 }
 0x24f   :  { %4398 = vpow2.f32 %v852_v42  ;;  %v1381_v57 = vadd.f32 1.0, %v1380_v4  ;;  %v1383_v19 = vand.u32 2147483647, %v4391_v38  ;;  %v539_v42 = vpop.f32.mrf.mxu3  ;;  %v669_v51 = vand.u32 2147483647, %v5075_v26 }
 0x250   :  { %4400 = vpow2.f32 %v854_v31  ;;  %v3812_v50 = vadd.f32 -0.6931472, %v1494_v35  ;;  %v1373_v31 = vmul.f32 %v5061_v49, %v1372_v15  ;;  %v732_v9 = vsub.f32 0.0, %v668_v58 }
 0x251   :  { %v1382_v55 = vmul.f32 %v4391_v38, %v1381_v57  ;;  %vm1384_vm15 = vcmp.lt.f32.partialorder %v1383_v19, 0.0004427343  ;;  %v733_v4 = vsub.f32 0.0, %v669_v51  ;;  %v5085_v19 = vadd.f32 %v4979_v63, %v539_v42 }
 0x252   :  { %v4393_v56 = vpop.eup %4392  ;;  %vm3275_vm12 = vcmask 1044484  }
 0x253   :  { %v1361_v25 = vmul.f32 0.6931472, %v4393_v56  ;;  %v4395_v14 = vpop.eup %4394 }
 0x254   :  { %v4397_v23 = vpop.eup %4396  ;;  %v1370_v6 = vmul.f32 0.6931472, %v4395_v14  ;;  %v858_v14 = vmul.f32 1.442695, %v733_v4 }
 0x255   :  { %v1367_v54 = vsel %vm1366_vm13, %v1364_v17, %v1361_v25  ;;  %v4399_v48 = vpop.eup %4398  ;;  %v1379_v56 = vmul.f32 0.6931472, %v4397_v23  ;;  %v600_v25 = vmax.f32 %v5025_v22, 0.0  ;;  %v601_v17 = vmax.f32 %v5032_v59, 0.0 }
 0x256   :  { %v1495_v46 = vadd.f32 %v1367_v54, %v599_v7  ;;  %v4401_v52 = vpop.eup %4400  ;;  %v1386_v35 = vadd.f32 1.0, %v4399_v48  ;;  %v1376_v54 = vsel %vm1375_vm14, %v1373_v31, %v1370_v6  ;;  %v1389_v39 = vmul.f32 -0.5, %v4399_v48 }
 0x257   :  { %v1395_v7 = vadd.f32 1.0, %v4401_v52  ;;  %v1496_v49 = vadd.f32 %v1376_v54, %v600_v25  ;;  %v541_v38 = vpop.f32.mrf.mxu3  ;;  %v1398_v57 = vmul.f32 -0.5, %v4401_v52  ;;  %v1392_v6 = vand.u32 2147483647, %v4399_v48 }
 0x258   :  { %v3813_v34 = vadd.f32 -0.6931472, %v1495_v46  ;;  %v1385_v46 = vsel %vm1384_vm15, %v1382_v55, %v1379_v56  ;;  %4402 = vlog2.f32 %v1386_v35  ;;  %v5088_v22 = vadd.f32 %v4979_v63, %v541_v38 }
 0x259   :  { %v1497_v15 = vadd.f32 %v1385_v46, %v601_v17  ;;  %4404 = vlog2.f32 %v1395_v7  ;;  %v3814_v59 = vadd.f32 -0.6931472, %v1496_v49  ;;  %v1390_v58 = vadd.f32 1.0, %v1389_v39 }
 0x25a   :  { %v1595_v62 = vpack.c.bf16 %v3813_v34, %v3812_v50  ;;  %v856_v50 = vmul.f32 1.442695, %v732_v9  ;;  %v1399_v51 = vadd.f32 1.0, %v1398_v57  ;;  %v1401_v31 = vand.u32 2147483647, %v4401_v52 }
 0x25b   :  { %v3815_v23 = vadd.f32 -0.6931472, %v1497_v15  ;;  %v670_v56 = vand.u32 2147483647, %v5085_v19  ;;  %v671_v55 = vand.u32 2147483647, %v5088_v22  ;;  %v1391_v25 = vmul.f32 %v4399_v48, %v1390_v58 }
 0x25c   :  { %3857 = vmatmul.msk.bf16.vlgmr.msra.gmra.mxu2 %vm1620_vm3, %v1595_v62  ;;  %4406 = vpow2.f32 %v856_v50  ;;  %v1400_v63 = vmul.f32 %v4401_v52, %v1399_v51  ;;  %vm1393_vm1 = vcmp.lt.f32.partialorder %v1392_v6, 0.0004427343  ;;  %vm1402_vm2 = vcmp.lt.f32.partialorder %v1401_v31, 0.0004427343 }
 0x25d   :  { %4408 = vpow2.f32 %v858_v14  ;;  %v1596_v35 = vpack.c.bf16 %v3815_v23, %v3814_v59  ;;  %v734_v7 = vsub.f32 0.0, %v670_v56  ;;  %v735_v46 = vsub.f32 0.0, %v671_v55 }
 0x25e   :  { %v4403_v34 = vpop.eup %4402  ;;  %v602_v50 = vmax.f32 %v5051_v16, 0.0  ;;  %v603_v14 = vmax.f32 %v5057_v30, 0.0  ;;  %vm3277_vm13 = vcmask 1045509   ;;  %vm3279_vm14 = vcmask 1046534  }
 0x25f   :  { %v4405_v62 = vpop.eup %4404  ;;  %v1388_v4 = vmul.f32 0.6931472, %v4403_v34  ;;  %v860_v39 = vmul.f32 1.442695, %v734_v7  ;;  %v862_v57 = vmul.f32 1.442695, %v735_v46 }
 0x260   :  { %v1397_v17 = vmul.f32 0.6931472, %v4405_v62  ;;  %v4122_v7 = vld [vmem:[%s5681_s7 + $0x8] sm:$0xff]  ;;  %v604_v46 = vmax.f32 %v5072_v12, 0.0  ;;  %v4121_v12 = vld [vmem:[%s5681_s7] sm:$0xff]  ;;  %vm3281_vm15 = vcmask 1047559  }
 0x261   :  { %v1394_v15 = vsel %vm1393_vm1, %v1391_v25, %v1388_v4  ;;  %1948 = vmatpush.bf16.msrb.mxu2 %v4122_v7 }
 0x262   :  { %v4407_v9 = vpop.eup %4406  ;;  %v1403_v38 = vsel %vm1402_vm2, %v1400_v63, %v1397_v17  ;;  %v1498_v48 = vadd.f32 %v1394_v15, %v602_v50  ;;  %v605_v50 = vmax.f32 %v5075_v26, 0.0 }
 0x263   :  { %v4409_v42 = vpop.eup %4408  ;;  %v1404_v54 = vadd.f32 1.0, %v4407_v9  ;;  %v1499_v59 = vadd.f32 %v1403_v38, %v603_v14  ;;  %v1407_v52 = vmul.f32 -0.5, %v4407_v9  ;;  %v1410_v30 = vand.u32 2147483647, %v4407_v9 }
 0x264   :  { %v1413_v49 = vadd.f32 1.0, %v4409_v42  ;;  %v1416_v23 = vmul.f32 -0.5, %v4409_v42  ;;  %v3816_v34 = vadd.f32 -0.6931472, %v1498_v48  ;;  %v1419_v31 = vand.u32 2147483647, %v4409_v42 }
 0x265   :  { %4410 = vlog2.f32 %v1404_v54  ;;  %v3817_v58 = vadd.f32 -0.6931472, %v1499_v59  ;;  %v1408_v62 = vadd.f32 1.0, %v1407_v52  ;;  %vm1411_vm4 = vcmp.lt.f32.partialorder %v1410_v30, 0.0004427343  ;;  %1949 = vmatpush.bf16.msrb.mxu2 %v4121_v12 }
 0x266   :  { %4412 = vlog2.f32 %v1413_v49  ;;  %v1417_v16 = vadd.f32 1.0, %v1416_v23  ;;  %vm1420_vm5 = vcmp.lt.f32.partialorder %v1419_v31, 0.0004427343  ;;  %v606_v31 = vmax.f32 %v5085_v19, 0.0  ;;  %v4118_v19 = vld [vmem:[%s5682_s0 + $0x8] sm:$0xff] }
 0x267   :  { %4414 = vpow2.f32 %v860_v39  ;;  %v1597_v55 = vpack.c.bf16 %v3817_v58, %v3816_v34  ;;  %v1409_v25 = vmul.f32 %v4407_v9, %v1408_v62 }
 0x268   :  { %4416 = vpow2.f32 %v862_v57  ;;  %v1418_v63 = vmul.f32 %v4409_v42, %v1417_v16 }
 0x26b   :  { %v4411_v51 = vpop.eup %4410 }
 0x26c   :  { %3858 = vmatmul.msk.bf16.gmra.mxu2 %vm1620_vm3, %v1596_v35  ;;  %v4413_v6 = vpop.eup %4412  ;;  %v1406_v4 = vmul.f32 0.6931472, %v4411_v51 }
 0x26d   :  { %v4415_v56 = vpop.eup %4414  ;;  %v1415_v17 = vmul.f32 0.6931472, %v4413_v6 }
 0x26e   :  { %v4417_v35 = vpop.eup %4416  ;;  %v1422_v54 = vadd.f32 1.0, %v4415_v56  ;;  %v1412_v49 = vsel %vm1411_vm4, %v1409_v25, %v1406_v4  ;;  %v1425_v38 = vmul.f32 -0.5, %v4415_v56  ;;  %v1428_v58 = vand.u32 2147483647, %v4415_v56 }
 0x26f   :  { %v1431_v14 = vadd.f32 1.0, %v4417_v35  ;;  %v1421_v15 = vsel %vm1420_vm5, %v1418_v63, %v1415_v17  ;;  %v1500_v9 = vadd.f32 %v1412_v49, %v604_v46  ;;  %v1434_v39 = vmul.f32 -0.5, %v4417_v35 }
 0x270   :  { %4418 = vlog2.f32 %v1422_v54  ;;  %v1501_v42 = vadd.f32 %v1421_v15, %v605_v50  ;;  %v1426_v52 = vadd.f32 1.0, %v1425_v38  ;;  %v1437_v51 = vand.u32 2147483647, %v4417_v35  ;;  %v4120_v38 = vld [vmem:[%s5682_s0 + $0x18] sm:$0xff] }
 0x271   :  { %4420 = vlog2.f32 %v1431_v14  ;;  %v3818_v57 = vadd.f32 -0.6931472, %v1500_v9  ;;  %v1435_v23 = vadd.f32 1.0, %v1434_v39  ;;  %vm1429_vm6 = vcmp.lt.f32.partialorder %v1428_v58, 0.0004427343 }
 0x272   :  { %v3819_v48 = vadd.f32 -0.6931472, %v1501_v42  ;;  %v1427_v16 = vmul.f32 %v4415_v56, %v1426_v52  ;;  %vm1438_vm7 = vcmp.lt.f32.partialorder %v1437_v51, 0.0004427343  ;;  %v4117_v56 = vld [vmem:[%s5682_s0] sm:$0xff] }
 0x273   :  { %v1436_v30 = vmul.f32 %v4417_v35, %v1435_v23 }
 0x274   :  { %v1598_v26 = vpack.c.bf16 %v3819_v48, %v3818_v57 }
 0x276   :  { %v4419_v59 = vpop.eup %4418 }
 0x277   :  { %v4421_v34 = vpop.eup %4420  ;;  %v1424_v62 = vmul.f32 0.6931472, %v4419_v59 }
 0x278   :  { %v1433_v6 = vmul.f32 0.6931472, %v4421_v34  ;;  %v4123_v34 = vld [vmem:[%s5683_s2] sm:$0xff] }
 0x279   :  { %v1430_v4 = vsel %vm1429_vm6, %v1427_v16, %v1424_v62 }
 0x27a   :  { %v1439_v25 = vsel %vm1438_vm7, %v1436_v30, %v1433_v6  ;;  %v1502_v17 = vadd.f32 %v1430_v4, %v606_v31  ;;  %v4124_v6 = vld [vmem:[%s5683_s2 + $0x8] sm:$0xff]  ;;  %v4131_v30 = vld [vmem:[%s5683_s2 + $0x40] sm:$0xff]  ;;  %v4125_v31 = vld [vmem:[%s5683_s2 + $0x10] sm:$0xff] }
 0x27c   :  { %3859 = vmatmul.msk.bf16.gmra.mxu2 %vm1620_vm3, %v1597_v55  ;;  %v607_v55 = vmax.f32 %v5088_v22, 0.0  ;;  %v3820_v7 = vadd.f32 -0.6931472, %v1502_v17  ;;  %v4119_v22 = vld [vmem:[%s5682_s0 + $0x10] sm:$0xff] }
 0x27e   :  { %v1503_v63 = vadd.f32 %v1439_v25, %v607_v55  ;;  %v4132_v55 = vld [vmem:[%s5683_s2 + $0x48] sm:$0xff] }
 0x280   :  { %v3821_v54 = vadd.f32 -0.6931472, %v1503_v63 }
 0x282   :  { %v1599_v46 = vpack.c.bf16 %v3821_v54, %v3820_v7  ;;  %v4126_v7 = vld [vmem:[%s5683_s2 + $0x18] sm:$0xff]  ;;  %v4133_v54 = vld [vmem:[%s5683_s2 + $0x50] sm:$0xff] }
 0x28c   :  { %3860 = vmatmul.msk.bf16.gmra.mxu2 %vm1620_vm3, %v1598_v26 }
 0x29c   :  { %3861 = vmatmul.msk.bf16.gmra.mxu2 %vm1620_vm3, %v1599_v46  ;;  %v4127_v46 = vld [vmem:[%s5683_s2 + $0x20] sm:$0xff] }
 0x2ac   :  { %3886 = vmatmul.msk.bf16.vlgmr.msrb.gmra.mxu2 %vm1620_vm3, %v4117_v56  ;;  %v4134_v56 = vld [vmem:[%s5683_s2 + $0x58] sm:$0xff] }
 0x2bc   :  { %3887 = vmatmul.msk.bf16.gmra.mxu2 %vm1620_vm3, %v4118_v19 }
 0x2cc   :  { %3888 = vmatmul.msk.bf16.gmra.mxu2 %vm1620_vm3, %v4119_v22  ;;  %v4128_v22 = vld [vmem:[%s5683_s2 + $0x28] sm:$0xff] }
 0x2dc   :  { %3889 = vmatmul.msk.bf16.gmra.mxu2 %vm1620_vm3, %v4120_v38  ;;  %v4139_v38 = vld [vmem:[%s5683_s2 + $0x80] sm:$0xff] }
 0x2df   :  { %v5120_v35 = vpop.f32.mrf.mxu2 }
 0x2e7   :  { %v5122_v50 = vpop.f32.mrf.mxu2 }
 0x2e8   :  { %5696 = vst [vmem:[#allocation3_spill] sm:$0xff] %v5122_v50 }
 0x2ef   :  { %v5124_v14 = vpop.f32.mrf.mxu2 }
 0x2f7   :  { %v5126_v49 = vpop.f32.mrf.mxu2 }
 0x2ff   :  { %v5128_v15 = vpop.f32.mrf.mxu2 }
 0x307   :  { %v5130_v9 = vpop.f32.mrf.mxu2 }
 0x308   :  { %5697 = vst [vmem:[#allocation4_spill] sm:$0xff] %v5130_v9 }
 0x30f   :  { %v5132_v42 = vpop.f32.mrf.mxu2 }
 0x310   :  { %5698 = vst [vmem:[#allocation5_spill] sm:$0xff] %v5132_v42 }
 0x317   :  { %v5138_v39 = vpop.f32.mrf.mxu2 }
 0x318   :  { %5699 = vst [vmem:[#allocation6_spill] sm:$0xff] %v5138_v39 }
 0x31f   :  { %v5140_v57 = vpop.f32.mrf.mxu2 }
 0x320   :  { %5700 = vst [vmem:[#allocation7_spill] sm:$0xff] %v5140_v57 }
 0x327   :  { %v5142_v48 = vpop.f32.mrf.mxu2 }
 0x328   :  { %5701 = vst [vmem:[#allocation8_spill] sm:$0xff] %v5142_v48 }
 0x32f   :  { %v1951_v59 = vpop.f32.mrf.mxu2 }
 0x330   :  { %v2035_v52 = vpack.c.bf16 %v1951_v59, %v1951_v59  ;;  %v5190_v59 = vpop.f32.mrf.mxu1 }
 0x332   :  { %v2078_v23 = vsel %vm2076_vm8, %v2035_v52, 0 }
 0x333   :  { %2087 = vmatpush.bf16.msrb.mxu3 %v2078_v23 }
 0x336   :  { %3906 = vmatmul.msk.bf16.vlgmr.msrb.gmra.mxu3 %vm2063_vm9, %v4123_v34 }
 0x337   :  { %v1953_v58 = vpop.f32.mrf.mxu2 }
 0x338   :  { %v2036_v51 = vpack.c.bf16 %v1953_v58, %v1953_v58  ;;  %v5195_v34 = vpop.f32.mrf.mxu1  ;;  %v4129_v58 = vld [vmem:[%s5683_s2 + $0x30] sm:$0xff] }
 0x33a   :  { %v2142_v12 = vsel %vm2076_vm8, %v2036_v51, 0  ;;  %v4140_v51 = vld [vmem:[%s5683_s2 + $0x88] sm:$0xff] }
 0x33b   :  { %2151 = vmatpush.bf16.msra.mxu3 %v2142_v12 }
 0x33f   :  { %v1956_v26 = vpop.f32.mrf.mxu2 }
 0x340   :  { %v2037_v62 = vpack.c.bf16 %v1956_v26, %v1956_v26 }
 0x342   :  { %v2206_v16 = vsel %vm2076_vm8, %v2037_v62, 0  ;;  %v5205_v62 = vpop.f32.mrf.mxu1 }
 0x343   :  { %2215 = vmatpush.bf16.msra.mxu2 %v2206_v16 }
 0x346   :  { %3907 = vmatmul.msk.bf16.gmra.mxu3 %vm2063_vm9, %v4124_v6  ;;  %3946 = vmatmul.msk.bf16.vlgmr.msra.gmra.mxu2 %vm2063_vm9, %v4131_v30  ;;  %v4130_v6 = vld [vmem:[%s5683_s2 + $0x38] sm:$0xff]  ;;  %v4141_v30 = vld [vmem:[%s5683_s2 + $0x90] sm:$0xff] }
 0x347   :  { %v1958_v4 = vpop.f32.mrf.mxu2 }
 0x348   :  { %v2038_v19 = vpack.c.bf16 %v1958_v4, %v1958_v4  ;;  %v4135_v4 = vld [vmem:[%s5683_s2 + $0x60] sm:$0xff] }
 0x34a   :  { %v2270_v52 = vsel %vm2076_vm8, %v2038_v19, 0 }
 0x34b   :  { %2279 = vmatpush.bf16.msrb.mxu3 %v2270_v52 }
 0x34f   :  { %v1961_v25 = vpop.f32.mrf.mxu2 }
 0x350   :  { %v2039_v17 = vpack.c.bf16 %v1961_v25, %v1961_v25  ;;  %v4142_v25 = vld [vmem:[%s5683_s2 + $0x98] sm:$0xff] }
 0x352   :  { %v2334_v63 = vsel %vm2076_vm8, %v2039_v17, 0  ;;  %v5229_v17 = vld [vmem:[%s5680_s6] ss:$0 sm:$0xff] }
 0x353   :  { %2343 = vmatpush.bf16.msrb.mxu2 %v2334_v63  ;;  %v1727_v63 = vadd.f32 %v5229_v17, %v4714_v41  ;;  %v1729_v52 = vadd.f32 %v5229_v17, %v4729_v10  ;;  %v4136_v41 = vld [vmem:[%s5683_s2 + $0x68] sm:$0xff] }
 0x356   :  { %3908 = vmatmul.msk.bf16.gmra.mxu3 %vm2063_vm9, %v4125_v31  ;;  %3947 = vmatmul.msk.bf16.gmra.mxu2 %vm2063_vm9, %v4132_v55  ;;  %v5214_v31 = vpop.f32.mrf.mxu1 }
 0x357   :  { %v1963_v23 = vpop.f32.mrf.mxu2 }
 0x35e   :  { %v5218_v55 = vpop.f32.mrf.mxu1 }
 0x35f   :  { %v1966_v12 = vpop.f32.mrf.mxu2 }
 0x360   :  { %v2041_v26 = vpack.c.bf16 %v1966_v12, %v1966_v12 }
 0x362   :  { %v2462_v16 = vsel %vm2076_vm8, %v2041_v26, 0 }
 0x363   :  { %2471 = vmatpush.bf16.msra.mxu2 %v2462_v16  ;;  %v4147_v16 = vld [vmem:[%s5683_s2 + $0xc0] sm:$0xff] }
 0x366   :  { %3909 = vmatmul.msk.bf16.gmra.mxu3 %vm2063_vm9, %v4126_v7  ;;  %3948 = vmatmul.msk.bf16.gmra.mxu2 %vm2063_vm9, %v4133_v54  ;;  %v5235_v7 = vpop.f32.mrf.mxu1 }
 0x36e   :  { %v5242_v12 = vpop.f32.mrf.mxu1 }
 0x376   :  { %3926 = vmatmul.msk.bf16.vlgmr.msra.gmra.mxu3 %vm2063_vm9, %v4127_v46  ;;  %3949 = vmatmul.msk.bf16.gmra.mxu2 %vm2063_vm9, %v4134_v56  ;;  %v5257_v48 = vpop.f32.mrf.mxu1 }
 0x386   :  { %3927 = vmatmul.msk.bf16.gmra.mxu3 %vm2063_vm9, %v4128_v22  ;;  %3986 = vmatmul.msk.bf16.vlgmr.msrb.gmra.mxu2 %vm2063_vm9, %v4139_v38  ;;  %v5238_v38 = vpop.f32.mrf.mxu2 }
 0x396   :  { %3928 = vmatmul.msk.bf16.gmra.mxu3 %vm2063_vm9, %v4129_v58  ;;  %3987 = vmatmul.msk.bf16.gmra.mxu2 %vm2063_vm9, %v4140_v51 }
 0x3a6   :  { %3929 = vmatmul.msk.bf16.gmra.mxu3 %vm2063_vm9, %v4130_v6  ;;  %3988 = vmatmul.msk.bf16.gmra.mxu2 %vm2063_vm9, %v4141_v30 }
 0x3b6   :  { %3966 = vmatmul.msk.bf16.vlgmr.msrb.gmra.mxu3 %vm2063_vm9, %v4135_v4  ;;  %3989 = vmatmul.msk.bf16.gmra.mxu2 %vm2063_vm9, %v4142_v25 }
 0x3b9   :  { %v2089_v54 = vpop.f32.mrf.mxu3 }
 0x3ba   :  { %v2557_v46 = vmul.f32 %v2089_v54, %v1727_v63  ;;  %v1732_v63 = vadd.f32 %v5229_v17, %v4738_v20  ;;  %v1767_v54 = vadd.f32 %v5229_v17, %v4925_v53 }
 0x3bc   :  { %v2621_v56 = vsel %vm1620_vm3, %v2557_v46, 0.0  ;;  %v2040_v46 = vpack.c.bf16 %v1963_v23, %v1963_v23 }
 0x3bd   :  { %v2622_v19 = vrot.slane %v2621_v56, 4 }
 0x3bf   :  { %v2623_v22 = vadd.f32 %v2622_v19, %v2621_v56 }
 0x3c1   :  { %v2624_v58 = vrot.slane %v2623_v22, 2  ;;  %v2091_v51 = vpop.f32.mrf.mxu3 }
 0x3c2   :  { %v2558_v26 = vmul.f32 %v2091_v51, %v1729_v52 }
 0x3c3   :  { %v2625_v6 = vadd.f32 %v2624_v58, %v2623_v22 }
 0x3c4   :  { %v2628_v30 = vsel %vm1620_vm3, %v2558_v26, 0.0 }
 0x3c5   :  { %v2629_v4 = vrot.slane %v2628_v30, 4  ;;  %v2626_v10 = vrot.slane %v2625_v6, 1 }
 0x3c6   :  { %3967 = vmatmul.msk.bf16.gmra.mxu3 %vm2063_vm9, %v4136_v41  ;;  %4026 = vmatmul.msk.bf16.vlgmr.msra.gmra.mxu2 %vm2063_vm9, %v4147_v16 }
 0x3c7   :  { %v2630_v25 = vadd.f32 %v2629_v4, %v2628_v30  ;;  %v2627_v51 = vadd.f32 %v2626_v10, %v2625_v6  ;;  %v2398_v30 = vsel %vm2076_vm8, %v2040_v46, 0  ;;  %v1734_v6 = vadd.f32 %v5229_v17, %v4750_v47 }
 0x3c8   :  { %2407 = vmatpush.bf16.msra.mxu3 %v2398_v30  ;;  %v1769_v10 = vadd.f32 %v5229_v17, %v4937_v24 }
 0x3c9   :  { %v2631_v56 = vrot.slane %v2630_v25, 2  ;;  %v2094_v19 = vpop.f32.mrf.mxu3  ;;  %v2217_v52 = vpop.f32.mrf.mxu2  ;;  %v3069_v53 = vpack.c.bf16 %v2627_v51, %v2627_v51 }
 0x3ca   :  { %v2559_v22 = vmul.f32 %v2094_v19, %v1732_v63  ;;  %v2573_v58 = vmul.f32 %v2217_v52, %v1767_v54 }
 0x3cb   :  { %v2632_v26 = vadd.f32 %v2631_v56, %v2630_v25  ;;  %v3205_v47 = vunpack.c.l.b16 %v3069_v53 }
 0x3cc   :  { %v2635_v41 = vsel %vm1620_vm3, %v2559_v22, 0.0  ;;  %v2733_v16 = vsel %vm1620_vm3, %v2573_v58, 0.0  ;;  %v4137_v22 = vld [vmem:[%s5683_s2 + $0x70] sm:$0xff] }
 0x3cd   :  { %v2633_v20 = vrot.slane %v2632_v26, 1  ;;  %v2636_v4 = vrot.slane %v2635_v41, 4  ;;  %v2734_v57 = vrot.slane %v2733_v16, 4 }
 0x3cf   :  { %v2634_v23 = vadd.f32 %v2633_v20, %v2632_v26  ;;  %v2637_v39 = vadd.f32 %v2636_v4, %v2635_v41  ;;  %v2735_v50 = vadd.f32 %v2734_v57, %v2733_v16  ;;  %v4148_v57 = vld [vmem:[%s5683_s2 + $0xc8] sm:$0xff]  ;;  %v5275_v4 = vpop.f32.mrf.mxu1 }
 0x3d1   :  { %v3070_v25 = vpack.c.bf16 %v2634_v23, %v2634_v23  ;;  %v2638_v63 = vrot.slane %v2637_v39, 2  ;;  %v2736_v54 = vrot.slane %v2735_v50, 2  ;;  %v2096_v56 = vpop.f32.mrf.mxu3  ;;  %v2219_v19 = vpop.f32.mrf.mxu2 }
 0x3d2   :  { %v2560_v46 = vmul.f32 %v2096_v56, %v1734_v6  ;;  %v2574_v52 = vmul.f32 %v2219_v19, %v1769_v10 }
 0x3d3   :  { %v3206_v58 = vunpack.c.l.b16 %v3070_v25  ;;  %v2639_v51 = vadd.f32 %v2638_v63, %v2637_v39  ;;  %v2737_v24 = vadd.f32 %v2736_v54, %v2735_v50  ;;  %v1737_v50 = vadd.f32 %v5229_v17, %v4766_v3 }
 0x3d4   :  { %v2642_v26 = vsel %vm1620_vm3, %v2560_v46, 0.0  ;;  %v2740_v41 = vsel %vm1620_vm3, %v2574_v52, 0.0  ;;  %v1772_v39 = vadd.f32 %v5229_v17, %v4945_v21 }
 0x3d5   :  { %v3270_v16 = vsel %vm3269_vm0, %v3206_v58, %v3205_v47  ;;  %v2640_v30 = vrot.slane %v2639_v51, 1  ;;  %v2643_v20 = vrot.slane %v2642_v26, 4  ;;  %v2741_v23 = vrot.slane %v2740_v41, 4 }
 0x3d6   :  { %3968 = vmatmul.msk.bf16.gmra.mxu3 %vm2063_vm9, %v4137_v22  ;;  %4027 = vmatmul.msk.bf16.gmra.mxu2 %vm2063_vm9, %v4148_v57  ;;  %v2738_v10 = vrot.slane %v2737_v24, 1 }
 0x3d7   :  { %v2641_v6 = vadd.f32 %v2640_v30, %v2639_v51  ;;  %v2644_v53 = vadd.f32 %v2643_v20, %v2642_v26  ;;  %v2742_v25 = vadd.f32 %v2741_v23, %v2740_v41 }
 0x3d8   :  { %v2739_v58 = vadd.f32 %v2738_v10, %v2737_v24  ;;  %v1774_v24 = vadd.f32 %v5229_v17, %v4953_v28  ;;  %v4149_v28 = vld [vmem:[%s5683_s2 + $0xd0] sm:$0xff] }
 0x3d9   :  { %v3071_v63 = vpack.c.bf16 %v2641_v6, %v2641_v6  ;;  %v2645_v54 = vrot.slane %v2644_v53, 2  ;;  %v2099_v56 = vpop.f32.mrf.mxu3  ;;  %v2222_v19 = vpop.f32.mrf.mxu2  ;;  %v2743_v46 = vrot.slane %v2742_v25, 2 }
 0x3da   :  { %v2561_v52 = vmul.f32 %v2099_v56, %v1737_v50  ;;  %v2575_v22 = vmul.f32 %v2222_v19, %v1772_v39  ;;  %v1739_v50 = vadd.f32 %v5229_v17, %v4777_v44  ;;  %v3085_v39 = vpack.c.bf16 %v2739_v58, %v2739_v58  ;;  %v4138_v44 = vld [vmem:[%s5683_s2 + $0x78] sm:$0xff] }
 0x3db   :  { %v3207_v47 = vunpack.c.l.b16 %v3071_v63  ;;  %v2646_v57 = vadd.f32 %v2645_v54, %v2644_v53  ;;  %v2744_v51 = vadd.f32 %v2743_v46, %v2742_v25  ;;  %v5290_v53 = vpop.f32.mrf.mxu1 }
 0x3dc   :  { %v2649_v26 = vsel %vm1620_vm3, %v2561_v52, 0.0  ;;  %v2747_v3 = vsel %vm1620_vm3, %v2575_v22, 0.0  ;;  %v3221_v58 = vunpack.c.l.b16 %v3085_v39  ;;  %v1742_v39 = vadd.f32 %v5229_v17, %v4791_v5 }
 0x3dd   :  { %v3272_v21 = vsel %vm3271_vm10, %v3207_v47, %v3270_v16  ;;  %v2647_v30 = vrot.slane %v2646_v57, 1  ;;  %v2650_v41 = vrot.slane %v2649_v26, 4  ;;  %v2748_v20 = vrot.slane %v2747_v3, 4 }
 0x3de   :  { %v2745_v23 = vrot.slane %v2744_v51, 1 }
 0x3df   :  { %v2648_v6 = vadd.f32 %v2647_v30, %v2646_v57  ;;  %v2651_v42 = vadd.f32 %v2650_v41, %v2649_v26  ;;  %v2749_v9 = vadd.f32 %v2748_v20, %v2747_v3 }
 0x3e0   :  { %v2746_v10 = vadd.f32 %v2745_v23, %v2744_v51 }
 0x3e1   :  { %v3072_v25 = vpack.c.bf16 %v2648_v6, %v2648_v6  ;;  %v2652_v63 = vrot.slane %v2651_v42, 2  ;;  %v2750_v16 = vrot.slane %v2749_v9, 2  ;;  %v2101_v54 = vpop.f32.mrf.mxu3  ;;  %v2224_v56 = vpop.f32.mrf.mxu2 }
 0x3e2   :  { %v3086_v19 = vpack.c.bf16 %v2746_v10, %v2746_v10  ;;  %v2562_v46 = vmul.f32 %v2101_v54, %v1739_v50  ;;  %v2576_v52 = vmul.f32 %v2224_v56, %v1774_v24  ;;  %v1777_v10 = vadd.f32 %v5229_v17, %v4961_v61 }
 0x3e3   :  { %v3208_v22 = vunpack.c.l.b16 %v3072_v25  ;;  %v2653_v47 = vadd.f32 %v2652_v63, %v2651_v42  ;;  %v2751_v57 = vadd.f32 %v2750_v16, %v2749_v9 }
 0x3e4   :  { %v3222_v51 = vunpack.c.l.b16 %v3086_v19  ;;  %v2656_v26 = vsel %vm1620_vm3, %v2562_v46, 0.0  ;;  %v2754_v3 = vsel %vm1620_vm3, %v2576_v52, 0.0  ;;  %v5308_v19 = vpop.f32.mrf.mxu1 }
 0x3e5   :  { %v3274_v30 = vsel %vm3273_vm11, %v3208_v22, %v3272_v21  ;;  %v2654_v41 = vrot.slane %v2653_v47, 1  ;;  %v2752_v20 = vrot.slane %v2751_v57, 1  ;;  %v2657_v23 = vrot.slane %v2656_v26, 4 }
 0x3e6   :  { %v3290_v6 = vsel %vm3269_vm0, %v3222_v51, %v3221_v58  ;;  %v2755_v50 = vrot.slane %v2754_v3, 4  ;;  %3969 = vmatmul.msk.bf16.gmra.mxu3 %vm2063_vm9, %v4138_v44  ;;  %4028 = vmatmul.msk.bf16.gmra.mxu2 %vm2063_vm9, %v4149_v28 }
 0x3e7   :  { %v2655_v42 = vadd.f32 %v2654_v41, %v2653_v47  ;;  %v2753_v9 = vadd.f32 %v2752_v20, %v2751_v57  ;;  %v2658_v24 = vadd.f32 %v2657_v23, %v2656_v26 }
 0x3e8   :  { %v2756_v21 = vadd.f32 %v2755_v50, %v2754_v3 }
 0x3e9   :  { %v3073_v25 = vpack.c.bf16 %v2655_v42, %v2655_v42  ;;  %v3087_v63 = vpack.c.bf16 %v2753_v9, %v2753_v9  ;;  %v2659_v16 = vrot.slane %v2658_v24, 2  ;;  %v2104_v54 = vpop.f32.mrf.mxu3  ;;  %v2227_v56 = vpop.f32.mrf.mxu2  ;;  %v1744_v42 = vadd.f32 %v5229_v17, %v4798_v32  ;;  %v4150_v32 = vld [vmem:[%s5683_s2 + $0xd8] sm:$0xff] }
 0x3ea   :  { %v2757_v46 = vrot.slane %v2756_v21, 2  ;;  %v2563_v52 = vmul.f32 %v2104_v54, %v1742_v39  ;;  %v2577_v44 = vmul.f32 %v2227_v56, %v1777_v10  ;;  %v1779_v9 = vadd.f32 %v5229_v17, %v4971_v29  ;;  %v4143_v56 = vld [vmem:[%s5683_s2 + $0xa0] sm:$0xff] }
 0x3eb   :  { %v3209_v28 = vunpack.c.l.b16 %v3073_v25  ;;  %v3223_v22 = vunpack.c.l.b16 %v3087_v63  ;;  %v2660_v47 = vadd.f32 %v2659_v16, %v2658_v24 }
 0x3ec   :  { %v2758_v57 = vadd.f32 %v2757_v46, %v2756_v21  ;;  %v2663_v5 = vsel %vm1620_vm3, %v2563_v52, 0.0  ;;  %v2761_v61 = vsel %vm1620_vm3, %v2577_v44, 0.0  ;;  %v5324_v52 = vpop.f32.mrf.mxu1 }
 0x3ed   :  { %v3276_v58 = vsel %vm3275_vm12, %v3209_v28, %v3274_v30  ;;  %v3291_v51 = vsel %vm3271_vm10, %v3223_v22, %v3290_v6  ;;  %v2661_v26 = vrot.slane %v2660_v47, 1  ;;  %v2664_v3 = vrot.slane %v2663_v5, 4 }
 0x3ee   :  { %v2759_v41 = vrot.slane %v2758_v57, 1  ;;  %v2762_v20 = vrot.slane %v2761_v61, 4 }
 0x3ef   :  { %v2662_v23 = vadd.f32 %v2661_v26, %v2660_v47  ;;  %v2665_v50 = vadd.f32 %v2664_v3, %v2663_v5 }
 0x3f0   :  { %v2760_v24 = vadd.f32 %v2759_v41, %v2758_v57  ;;  %v2763_v39 = vadd.f32 %v2762_v20, %v2761_v61 }
 0x3f1   :  { %v3074_v10 = vpack.c.bf16 %v2662_v23, %v2662_v23  ;;  %v2666_v21 = vrot.slane %v2665_v50, 2  ;;  %v2106_v30 = vpop.f32.mrf.mxu3  ;;  %v2229_v25 = vpop.f32.mrf.mxu2 }
 0x3f2   :  { %v3088_v6 = vpack.c.bf16 %v2760_v24, %v2760_v24  ;;  %v2764_v63 = vrot.slane %v2763_v39, 2  ;;  %v2564_v16 = vmul.f32 %v2106_v30, %v1744_v42  ;;  %v2578_v54 = vmul.f32 %v2229_v25, %v1779_v9 }
 0x3f3   :  { %v3210_v29 = vunpack.c.l.b16 %v3074_v10  ;;  %v2667_v46 = vadd.f32 %v2666_v21, %v2665_v50  ;;  %v1747_v42 = vadd.f32 %v5229_v17, %v4810_v60  ;;  %v1782_v9 = vadd.f32 %v5229_v17, %v4986_v0 }
 0x3f4   :  { %v3224_v44 = vunpack.c.l.b16 %v3088_v6  ;;  %v2765_v28 = vadd.f32 %v2764_v63, %v2763_v39  ;;  %v2670_v22 = vsel %vm1620_vm3, %v2564_v16, 0.0  ;;  %v2768_v47 = vsel %vm1620_vm3, %v2578_v54, 0.0 }
 0x3f5   :  { %v3278_v57 = vsel %vm3277_vm13, %v3210_v29, %v3276_v58  ;;  %v2668_v5 = vrot.slane %v2667_v46, 1  ;;  %v2671_v61 = vrot.slane %v2670_v22, 4  ;;  %v2769_v26 = vrot.slane %v2768_v47, 4 }
 0x3f6   :  { %v3292_v3 = vsel %vm3273_vm11, %v3224_v44, %v3291_v51  ;;  %v2766_v41 = vrot.slane %v2765_v28, 1  ;;  %4006 = vmatmul.msk.bf16.vlgmr.msra.gmra.mxu3 %vm2063_vm9, %v4143_v56  ;;  %4029 = vmatmul.msk.bf16.gmra.mxu2 %vm2063_vm9, %v4150_v32 }
 0x3f7   :  { %v2669_v20 = vadd.f32 %v2668_v5, %v2667_v46  ;;  %v2672_v23 = vadd.f32 %v2671_v61, %v2670_v22  ;;  %v2770_v50 = vadd.f32 %v2769_v26, %v2768_v47 }
 0x3f8   :  { %v2767_v58 = vadd.f32 %v2766_v41, %v2765_v28  ;;  %v5339_v28 = vpop.f32.mrf.mxu1  ;;  %v1749_v41 = vadd.f32 %v5229_v17, %v4829_v13 }
 0x3f9   :  { %v3075_v24 = vpack.c.bf16 %v2669_v20, %v2669_v20  ;;  %v2673_v39 = vrot.slane %v2672_v23, 2  ;;  %v2771_v10 = vrot.slane %v2770_v50, 2  ;;  %v2153_v21 = vpop.f32.mrf.mxu3  ;;  %v2232_v51 = vpop.f32.mrf.mxu2  ;;  %v1784_v20 = vadd.f32 %v5229_v17, %v4993_v37 }
 0x3fa   :  { %v3089_v30 = vpack.c.bf16 %v2767_v58, %v2767_v58  ;;  %v2565_v25 = vmul.f32 %v2153_v21, %v1747_v42  ;;  %v2579_v6 = vmul.f32 %v2232_v51, %v1782_v9 }
 0x3fb   :  { %v3211_v63 = vunpack.c.l.b16 %v3075_v24  ;;  %v2674_v16 = vadd.f32 %v2673_v39, %v2672_v23  ;;  %v2772_v54 = vadd.f32 %v2771_v10, %v2770_v50  ;;  %v4144_v10 = vld [vmem:[%s5683_s2 + $0xa8] sm:$0xff] }
 0x3fc   :  { %v3225_v56 = vunpack.c.l.b16 %v3089_v30  ;;  %v2677_v32 = vsel %vm1620_vm3, %v2565_v25, 0.0  ;;  %v2775_v60 = vsel %vm1620_vm3, %v2579_v6, 0.0 }
 0x3fd   :  { %v3280_v0 = vsel %vm3279_vm14, %v3211_v63, %v3278_v57  ;;  %v2675_v29 = vrot.slane %v2674_v16, 1  ;;  %v2773_v46 = vrot.slane %v2772_v54, 1  ;;  %v2678_v44 = vrot.slane %v2677_v32, 4 }
 0x3fe   :  { %v3293_v22 = vsel %vm3275_vm12, %v3225_v56, %v3292_v3  ;;  %v2776_v47 = vrot.slane %v2775_v60, 4 }
 0x3ff   :  { %v2676_v5 = vadd.f32 %v2675_v29, %v2674_v16  ;;  %v2774_v61 = vadd.f32 %v2773_v46, %v2772_v54  ;;  %v2679_v26 = vadd.f32 %v2678_v44, %v2677_v32  ;;  %v1752_v46 = vadd.f32 %v5229_v17, %v4838_v33 }
 0x400   :  { %v2777_v23 = vadd.f32 %v2776_v47, %v2775_v60  ;;  %v1807_v44 = vadd.f32 %v5229_v17, %v5205_v62  ;;  %v5360_v47 = vpop.f32.mrf.mxu1 }
 0x401   :  { %v3076_v50 = vpack.c.bf16 %v2676_v5, %v2676_v5  ;;  %v3090_v57 = vpack.c.bf16 %v2774_v61, %v2774_v61  ;;  %v2680_v42 = vrot.slane %v2679_v26, 2  ;;  %v2155_v9 = vpop.f32.mrf.mxu3  ;;  %v2234_v58 = vpop.f32.mrf.mxu2 }
 0x402   :  { %v2778_v24 = vrot.slane %v2777_v23, 2  ;;  %v2566_v39 = vmul.f32 %v2155_v9, %v1749_v41  ;;  %v2580_v3 = vmul.f32 %v2234_v58, %v1784_v20 }
 0x403   :  { %v3212_v21 = vunpack.c.l.b16 %v3076_v50  ;;  %v3226_v51 = vunpack.c.l.b16 %v3090_v57  ;;  %v2681_v13 = vadd.f32 %v2680_v42, %v2679_v26 }
 0x404   :  { %v2779_v30 = vadd.f32 %v2778_v24, %v2777_v23  ;;  %v2684_v37 = vsel %vm1620_vm3, %v2566_v39, 0.0  ;;  %v2782_v25 = vsel %vm1620_vm3, %v2580_v3, 0.0 }
 0x405   :  { %v5352_v6 = vsel %vm3281_vm15, %v3212_v21, %v3280_v0  ;;  %v2685_v63 = vrot.slane %v2684_v37, 4  ;;  %v2783_v16 = vrot.slane %v2782_v25, 4  ;;  %v2682_v54 = vrot.slane %v2681_v13, 1 }
 0x406   :  { %v2780_v56 = vrot.slane %v2779_v30, 1  ;;  %4007 = vmatmul.msk.bf16.gmra.mxu3 %vm2063_vm9, %v4144_v10  ;;  %v3294_v32 = vsel %vm3277_vm13, %v3226_v51, %v3293_v22  ;;  %v2042_v0 = vpack.c.bf16 %v5238_v38, %v5238_v38 }
 0x407   :  { %v2686_v60 = vadd.f32 %v2685_v63, %v2684_v37  ;;  %v2784_v29 = vadd.f32 %v2783_v16, %v2782_v25  ;;  %v2683_v23 = vadd.f32 %v2682_v54, %v2681_v13  ;;  %v1754_v63 = vadd.f32 %v5229_v17, %v4860_v11 }
 0x408   :  { %v2781_v5 = vadd.f32 %v2780_v56, %v2779_v30  ;;  %v2526_v24 = vsel %vm2076_vm8, %v2042_v0, 0  ;;  %v1809_v16 = vadd.f32 %v5229_v17, %v5214_v31  ;;  %v5372_v0 = vpop.f32.mrf.mxu1 }
 0x409   :  { %v2687_v61 = vrot.slane %v2686_v60, 2  ;;  %v2785_v26 = vrot.slane %v2784_v29, 2  ;;  %v2158_v41 = vpop.f32.mrf.mxu3  ;;  %v2345_v20 = vpop.f32.mrf.mxu2  ;;  %2535 = vmatpush.bf16.msrb.mxu3 %v2526_v24  ;;  %v3077_v21 = vpack.c.bf16 %v2683_v23, %v2683_v23  ;;  %v1757_v24 = vadd.f32 %v5229_v17, %v4881_v40 }
 0x40a   :  { %v3091_v22 = vpack.c.bf16 %v2781_v5, %v2781_v5  ;;  %v2567_v50 = vmul.f32 %v2158_v41, %v1752_v46  ;;  %v2589_v57 = vmul.f32 %v2345_v20, %v1807_v44 }
 0x40b   :  { %v2688_v42 = vadd.f32 %v2687_v61, %v2686_v60  ;;  %v2786_v9 = vadd.f32 %v2785_v26, %v2784_v29  ;;  %v4145_v61 = vld [vmem:[%s5683_s2 + $0xb0] sm:$0xff]  ;;  %v3213_v26 = vunpack.c.l.b16 %v3077_v21 }
 0x40c   :  { %v3227_v33 = vunpack.c.l.b16 %v3091_v22  ;;  %v2691_v58 = vsel %vm1620_vm3, %v2567_v50, 0.0  ;;  %v2845_v62 = vsel %vm1620_vm3, %v2589_v57, 0.0 }
 0x40d   :  { %v2689_v39 = vrot.slane %v2688_v42, 1  ;;  %v2787_v38 = vrot.slane %v2786_v9, 1  ;;  %v2692_v3 = vrot.slane %v2691_v58, 4  ;;  %v2846_v10 = vrot.slane %v2845_v62, 4 }
 0x40e   :  { %v3295_v51 = vsel %vm3279_vm14, %v3227_v33, %v3294_v32 }
 0x40f   :  { %v2690_v13 = vadd.f32 %v2689_v39, %v2688_v42  ;;  %v2788_v30 = vadd.f32 %v2787_v38, %v2786_v9  ;;  %v2693_v37 = vadd.f32 %v2692_v3, %v2691_v58  ;;  %v2847_v25 = vadd.f32 %v2846_v10, %v2845_v62 }
 0x410   :  { %v1812_v39 = vadd.f32 %v5229_v17, %v5218_v55 }
 0x411   :  { %v3078_v54 = vpack.c.bf16 %v2690_v13, %v2690_v13  ;;  %v3092_v56 = vpack.c.bf16 %v2788_v30, %v2788_v30  ;;  %v2694_v60 = vrot.slane %v2693_v37, 2  ;;  %v2848_v29 = vrot.slane %v2847_v25, 2  ;;  %v2160_v46 = vpop.f32.mrf.mxu3  ;;  %v2347_v44 = vpop.f32.mrf.mxu2 }
 0x412   :  { %v2568_v5 = vmul.f32 %v2160_v46, %v1754_v63  ;;  %v2590_v32 = vmul.f32 %v2347_v44, %v1809_v16 }
 0x413   :  { %v3214_v41 = vunpack.c.l.b16 %v3078_v54  ;;  %v3228_v11 = vunpack.c.l.b16 %v3092_v56  ;;  %v2695_v20 = vadd.f32 %v2694_v60, %v2693_v37  ;;  %v2849_v23 = vadd.f32 %v2848_v29, %v2847_v25  ;;  %v5388_v54 = vpop.f32.mrf.mxu1 }
 0x414   :  { %v2698_v31 = vsel %vm1620_vm3, %v2568_v5, 0.0  ;;  %v2852_v22 = vsel %vm1620_vm3, %v2590_v32, 0.0 }
 0x415   :  { %v3283_v50 = vsel %vm3269_vm0, %v3214_v41, %v3213_v26  ;;  %v2696_v57 = vrot.slane %v2695_v20, 1  ;;  %v2699_v42 = vrot.slane %v2698_v31, 4  ;;  %v2853_v9 = vrot.slane %v2852_v22, 4 }
 0x416   :  { %4008 = vmatmul.msk.bf16.gmra.mxu3 %vm2063_vm9, %v4145_v61  ;;  %v5382_v33 = vsel %vm3281_vm15, %v3228_v11, %v3295_v51  ;;  %v2850_v38 = vrot.slane %v2849_v23, 1  ;;  %v1759_v11 = vadd.f32 %v5229_v17, %v4892_v2  ;;  %v4146_v2 = vld [vmem:[%s5683_s2 + $0xb8] sm:$0xff] }
 0x417   :  { %v2697_v58 = vadd.f32 %v2696_v57, %v2695_v20  ;;  %v2700_v62 = vadd.f32 %v2699_v42, %v2698_v31  ;;  %v2854_v3 = vadd.f32 %v2853_v9, %v2852_v22  ;;  %v1814_v20 = vadd.f32 %v5229_v17, %v5235_v7 }
 0x418   :  { %v2851_v56 = vadd.f32 %v2850_v38, %v2849_v23 }
 0x419   :  { %v3079_v10 = vpack.c.bf16 %v2697_v58, %v2697_v58  ;;  %v2701_v21 = vrot.slane %v2700_v62, 2  ;;  %v2163_v13 = vpop.f32.mrf.mxu3  ;;  %v2350_v30 = vpop.f32.mrf.mxu2  ;;  %v2855_v37 = vrot.slane %v2854_v3, 2  ;;  %v4156_v58 = vld [vmem:[%s5684_s8 + $0x8] sm:$0xff] }
 0x41a   :  { %v2569_v25 = vmul.f32 %v2163_v13, %v1757_v24  ;;  %v2591_v63 = vmul.f32 %v2350_v30, %v1812_v39  ;;  %v3101_v23 = vpack.c.bf16 %v2851_v56, %v2851_v56  ;;  %3366 = vmatpush.bf16.msrb.mxu2 %v4156_v58 }
 0x41b   :  { %v3215_v16 = vunpack.c.l.b16 %v3079_v10  ;;  %v2702_v51 = vadd.f32 %v2701_v21, %v2700_v62  ;;  %v2856_v60 = vadd.f32 %v2855_v37, %v2854_v3  ;;  %v5409_v56 = vpop.f32.mrf.mxu1 }
 0x41c   :  { %v2705_v40 = vsel %vm1620_vm3, %v2569_v25, 0.0  ;;  %v2859_v29 = vsel %vm1620_vm3, %v2591_v63, 0.0  ;;  %v3237_v10 = vunpack.c.l.b16 %v3101_v23 }
 0x41d   :  { %v3284_v55 = vsel %vm3271_vm10, %v3215_v16, %v3283_v50  ;;  %v2703_v46 = vrot.slane %v2702_v51, 1  ;;  %v2706_v44 = vrot.slane %v2705_v40, 4  ;;  %v2860_v5 = vrot.slane %v2859_v29, 4 }
 0x41e   :  { %v2857_v32 = vrot.slane %v2856_v60, 1 }
 0x41f   :  { %v2704_v61 = vadd.f32 %v2703_v46, %v2702_v51  ;;  %v2707_v26 = vadd.f32 %v2706_v44, %v2705_v40  ;;  %v2861_v41 = vadd.f32 %v2860_v5, %v2859_v29  ;;  %v4155_v51 = vld [vmem:[%s5684_s8] sm:$0xff]  ;;  %v1817_v5 = vadd.f32 %v5229_v17, %v5242_v12 }
 0x420   :  { %v2858_v31 = vadd.f32 %v2857_v32, %v2856_v60  ;;  %3367 = vmatpush.bf16.msrb.mxu2 %v4155_v51 }
 0x421   :  { %v3080_v22 = vpack.c.bf16 %v2704_v61, %v2704_v61  ;;  %v2708_v57 = vrot.slane %v2707_v26, 2  ;;  %v2862_v42 = vrot.slane %v2861_v41, 2  ;;  %v2165_v9 = vpop.f32.mrf.mxu3  ;;  %v2352_v50 = vpop.f32.mrf.mxu2 }
 0x422   :  { %v3102_v62 = vpack.c.bf16 %v2858_v31, %v2858_v31  ;;  %v2570_v24 = vmul.f32 %v2165_v9, %v1759_v11  ;;  %v2592_v39 = vmul.f32 %v2352_v50, %v1814_v20 }
 0x423   :  { %v3216_v38 = vunpack.c.l.b16 %v3080_v22  ;;  %v2709_v7 = vadd.f32 %v2708_v57, %v2707_v26  ;;  %v2863_v3 = vadd.f32 %v2862_v42, %v2861_v41 }
 0x424   :  { %v3238_v21 = vunpack.c.l.b16 %v3102_v62  ;;  %v2712_v13 = vsel %vm1620_vm3, %v2570_v24, 0.0  ;;  %v2866_v30 = vsel %vm1620_vm3, %v2592_v39, 0.0 }
 0x425   :  { %v3285_v37 = vsel %vm3273_vm11, %v3216_v38, %v3284_v55  ;;  %v2710_v25 = vrot.slane %v2709_v7, 1  ;;  %v2864_v63 = vrot.slane %v2863_v3, 1  ;;  %v2713_v16 = vrot.slane %v2712_v13, 4 }
 0x426   :  { %v3304_v60 = vsel %vm3269_vm0, %v3238_v21, %v3237_v10  ;;  %v2867_v40 = vrot.slane %v2866_v30, 4  ;;  %4009 = vmatmul.msk.bf16.gmra.mxu3 %vm2063_vm9, %v4146_v2  ;;  %v1762_v55 = vadd.f32 %v5229_v17, %v4910_v8  ;;  %v1764_v10 = vadd.f32 %v5229_v17, %v4917_v45 }
 0x427   :  { %v2711_v29 = vadd.f32 %v2710_v25, %v2709_v7  ;;  %v2865_v46 = vadd.f32 %v2864_v63, %v2863_v3  ;;  %v2714_v44 = vadd.f32 %v2713_v16, %v2712_v13  ;;  %v1819_v21 = vadd.f32 %v5229_v17, %v5257_v48  ;;  %v5425_v13 = vpop.f32.mrf.mxu1 }
 0x428   :  { %v2868_v32 = vadd.f32 %v2867_v40, %v2866_v30 }
 0x429   :  { %v3081_v61 = vpack.c.bf16 %v2711_v29, %v2711_v29  ;;  %v3103_v26 = vpack.c.bf16 %v2865_v46, %v2865_v46  ;;  %v2715_v41 = vrot.slane %v2714_v44, 2  ;;  %v2168_v11 = vpop.f32.mrf.mxu3  ;;  %v2355_v20 = vpop.f32.mrf.mxu2 }
 0x42a   :  { %v2869_v23 = vrot.slane %v2868_v32, 2  ;;  %v2571_v31 = vmul.f32 %v2168_v11, %v1762_v55  ;;  %v2593_v22 = vmul.f32 %v2355_v20, %v1817_v5 }
 0x42b   :  { %v3217_v57 = vunpack.c.l.b16 %v3081_v61  ;;  %v3239_v42 = vunpack.c.l.b16 %v3103_v26  ;;  %v2716_v9 = vadd.f32 %v2715_v41, %v2714_v44  ;;  %v4151_v44 = vld [vmem:[%s5683_s2 + $0xe0] sm:$0xff] }
 0x42c   :  { %v2870_v50 = vadd.f32 %v2869_v23, %v2868_v32  ;;  %v2719_v58 = vsel %vm1620_vm3, %v2571_v31, 0.0  ;;  %v2873_v8 = vsel %vm1620_vm3, %v2593_v22, 0.0 }
 0x42d   :  { %v3286_v62 = vsel %vm3275_vm12, %v3217_v57, %v3285_v37  ;;  %v3305_v12 = vsel %vm3271_vm10, %v3239_v42, %v3304_v60  ;;  %v2717_v24 = vrot.slane %v2716_v9, 1  ;;  %v2720_v39 = vrot.slane %v2719_v58, 4 }
 0x42e   :  { %v2871_v2 = vrot.slane %v2870_v50, 1  ;;  %v2874_v38 = vrot.slane %v2873_v8, 4 }
 0x42f   :  { %v2718_v7 = vadd.f32 %v2717_v24, %v2716_v9  ;;  %v2721_v3 = vadd.f32 %v2720_v39, %v2719_v58  ;;  %v1787_v9 = vadd.f32 %v5229_v17, %v5001_v43 }
 0x430   :  { %v2872_v30 = vadd.f32 %v2871_v2, %v2870_v50  ;;  %v2875_v25 = vadd.f32 %v2874_v38, %v2873_v8  ;;  %v1822_v50 = vadd.f32 %v5229_v17, %v5275_v4  ;;  %v1846_v38 = vpop.f32.mrf.mxu1 }
 0x431   :  { %v3082_v63 = vpack.c.bf16 %v2718_v7, %v2718_v7  ;;  %v2722_v37 = vrot.slane %v2721_v3, 2  ;;  %v2170_v16 = vpop.f32.mrf.mxu3  ;;  %v2357_v51 = vpop.f32.mrf.mxu2 }
 0x432   :  { %v3104_v60 = vpack.c.bf16 %v2872_v30, %v2872_v30  ;;  %v2876_v40 = vrot.slane %v2875_v25, 2  ;;  %v2572_v29 = vmul.f32 %v2170_v16, %v1764_v10  ;;  %v2594_v46 = vmul.f32 %v2357_v51, %v1819_v21 }
 0x433   :  { %v3218_v45 = vunpack.c.l.b16 %v3082_v63  ;;  %v2723_v55 = vadd.f32 %v2722_v37, %v2721_v3 }
 0x434   :  { %v3240_v5 = vunpack.c.l.b16 %v3104_v60  ;;  %v2877_v48 = vadd.f32 %v2876_v40, %v2875_v25  ;;  %v2726_v32 = vsel %vm1620_vm3, %v2572_v29, 0.0  ;;  %v2880_v61 = vsel %vm1620_vm3, %v2594_v46, 0.0 }
 0x435   :  { %v3287_v26 = vsel %vm3277_vm13, %v3218_v45, %v3286_v62  ;;  %v2724_v41 = vrot.slane %v2723_v55, 1  ;;  %v2727_v11 = vrot.slane %v2726_v32, 4  ;;  %v2881_v20 = vrot.slane %v2880_v61, 4 }
 0x436   :  { %v3306_v23 = vsel %vm3273_vm11, %v3240_v5, %v3305_v12  ;;  %v2878_v31 = vrot.slane %v2877_v48, 1  ;;  %4046 = vmatmul.msk.bf16.vlgmr.msrb.gmra.mxu3 %vm2063_vm9, %v4151_v44  ;;  %v1789_v45 = vadd.f32 %v5229_v17, %v5013_v1 }
 0x437   :  { %v2725_v22 = vadd.f32 %v2724_v41, %v2723_v55  ;;  %v2728_v57 = vadd.f32 %v2727_v11, %v2726_v32  ;;  %v2882_v42 = vadd.f32 %v2881_v20, %v2880_v61  ;;  %v1824_v55 = vadd.f32 %v5229_v17, %v5290_v53 }
 0x438   :  { %v2879_v58 = vadd.f32 %v2878_v31, %v2877_v48  ;;  %v1848_v1 = vpop.f32.mrf.mxu1 }
 0x439   :  { %v3083_v8 = vpack.c.bf16 %v2725_v22, %v2725_v22  ;;  %v2729_v62 = vrot.slane %v2728_v57, 2  ;;  %v2883_v24 = vrot.slane %v2882_v42, 2  ;;  %v2281_v39 = vpop.f32.mrf.mxu3  ;;  %v2360_v2 = vpop.f32.mrf.mxu2 }
 0x43a   :  { %v3105_v12 = vpack.c.bf16 %v2879_v58, %v2879_v58  ;;  %v2581_v7 = vmul.f32 %v2281_v39, %v1787_v9  ;;  %v2595_v3 = vmul.f32 %v2360_v2, %v1822_v50 }
 0x43b   :  { %v3219_v10 = vunpack.c.l.b16 %v3083_v8  ;;  %v2730_v21 = vadd.f32 %v2729_v62, %v2728_v57  ;;  %v2884_v30 = vadd.f32 %v2883_v24, %v2882_v42 }
 0x43c   :  { %v3241_v25 = vunpack.c.l.b16 %v3105_v12  ;;  %v2789_v63 = vsel %vm1620_vm3, %v2581_v7, 0.0  ;;  %v2887_v43 = vsel %vm1620_vm3, %v2595_v3, 0.0 }
 0x43d   :  { %v3288_v4 = vsel %vm3279_vm14, %v3219_v10, %v3287_v26  ;;  %v2731_v37 = vrot.slane %v2730_v21, 1  ;;  %v2885_v16 = vrot.slane %v2884_v30, 1  ;;  %v2790_v51 = vrot.slane %v2789_v63, 4 }
 0x43e   :  { %v3307_v60 = vsel %vm3275_vm12, %v3241_v25, %v3306_v23  ;;  %v2888_v40 = vrot.slane %v2887_v43, 4  ;;  %v4152_v23 = vld [vmem:[%s5683_s2 + $0xe8] sm:$0xff]  ;;  %v1792_v10 = vadd.f32 %v5229_v17, %v5021_v27 }
 0x43f   :  { %v2732_v29 = vadd.f32 %v2731_v37, %v2730_v21  ;;  %v2886_v46 = vadd.f32 %v2885_v16, %v2884_v30  ;;  %v2791_v44 = vadd.f32 %v2790_v51, %v2789_v63  ;;  %v1847_v21 = vadd.f32 %v5229_v17, %v1846_v38 }
 0x440   :  { %v2889_v5 = vadd.f32 %v2888_v40, %v2887_v43 }
 0x441   :  { %v3084_v48 = vpack.c.bf16 %v2732_v29, %v2732_v29  ;;  %v3106_v32 = vpack.c.bf16 %v2886_v46, %v2886_v46  ;;  %v2792_v61 = vrot.slane %v2791_v44, 2  ;;  %v2283_v26 = vpop.f32.mrf.mxu3  ;;  %v2362_v41 = vpop.f32.mrf.mxu2 }
 0x442   :  { %v2890_v11 = vrot.slane %v2889_v5, 2  ;;  %v2582_v20 = vmul.f32 %v2283_v26, %v1789_v45  ;;  %v2596_v31 = vmul.f32 %v2362_v41, %v1824_v55 }
 0x443   :  { %v3220_v22 = vunpack.c.l.b16 %v3084_v48  ;;  %v3242_v57 = vunpack.c.l.b16 %v3106_v32  ;;  %v2793_v42 = vadd.f32 %v2792_v61, %v2791_v44 }
 0x444   :  { %v2891_v9 = vadd.f32 %v2890_v11, %v2889_v5  ;;  %v2796_v53 = vsel %vm1620_vm3, %v2582_v20, 0.0  ;;  %v2894_v50 = vsel %vm1620_vm3, %v2596_v31, 0.0  ;;  %v1851_v5 = vpop.f32.mrf.mxu1  ;;  %v1794_v20 = vadd.f32 %v5229_v17, %v5036_v18 }
 0x445   :  { %v3289_v58 = vsel %vm3281_vm15, %v3220_v22, %v3288_v4  ;;  %v2797_v8 = vrot.slane %v2796_v53, 4  ;;  %v2895_v62 = vrot.slane %v2894_v50, 4  ;;  %v2794_v39 = vrot.slane %v2793_v42, 1 }
 0x446   :  { %v3332_v24 = vpack.c.b16 %v3289_v58, %v5352_v6  ;;  %v2892_v2 = vrot.slane %v2891_v9, 1  ;;  %4047 = vmatmul.msk.bf16.gmra.mxu3 %vm2063_vm9, %v4152_v23  ;;  %v3308_v12 = vsel %vm3277_vm13, %v3242_v57, %v3307_v60  ;;  %v1849_v31 = vadd.f32 %v5229_v17, %v1848_v1 }
 0x447   :  { %v2798_v7 = vadd.f32 %v2797_v8, %v2796_v53  ;;  %v2896_v3 = vadd.f32 %v2895_v62, %v2894_v50  ;;  %v2795_v4 = vadd.f32 %v2794_v39, %v2793_v42  ;;  %v4153_v8 = vld [vmem:[%s5683_s2 + $0xf0] sm:$0xff] }
 0x448   :  { %v2893_v30 = vadd.f32 %v2892_v2, %v2891_v9  ;;  %4058 = vmatmul.msk.bf16.vlgmr.msrb.gmra.mxu2 %vm1620_vm3, %v3332_v24 }
 0x449   :  { %v2799_v25 = vrot.slane %v2798_v7, 2  ;;  %v2897_v63 = vrot.slane %v2896_v3, 2  ;;  %v2286_v43 = vpop.f32.mrf.mxu3  ;;  %v2473_v6 = vpop.f32.mrf.mxu2  ;;  %v3093_v48 = vpack.c.bf16 %v2795_v4, %v2795_v4 }
 0x44a   :  { %v3107_v37 = vpack.c.bf16 %v2893_v30, %v2893_v30  ;;  %v2583_v16 = vmul.f32 %v2286_v43, %v1792_v10  ;;  %v2605_v51 = vmul.f32 %v2473_v6, %v1847_v21 }
 0x44b   :  { %v2800_v40 = vadd.f32 %v2799_v25, %v2798_v7  ;;  %v2898_v60 = vadd.f32 %v2897_v63, %v2896_v3  ;;  %v3229_v62 = vunpack.c.l.b16 %v3093_v48  ;;  %v5479_v63 = vld [vmem:[%s5680_s6] ss:$0 sm:$0xff] }
 0x44c   :  { %v3243_v29 = vunpack.c.l.b16 %v3107_v37  ;;  %v2803_v46 = vsel %vm1620_vm3, %v2583_v16, 0.0  ;;  %v2957_v27 = vsel %vm1620_vm3, %v2605_v51, 0.0  ;;  %v1797_v43 = vadd.f32 %v5479_v63, %v5053_v36  ;;  %v1853_v4 = vpop.f32.mrf.mxu1 }
 0x44d   :  { %v2801_v44 = vrot.slane %v2800_v40, 1  ;;  %v2899_v38 = vrot.slane %v2898_v60, 1  ;;  %v2804_v45 = vrot.slane %v2803_v46, 4  ;;  %v2958_v55 = vrot.slane %v2957_v27, 4 }
 0x44e   :  { %v3309_v32 = vsel %vm3279_vm14, %v3243_v29, %v3308_v12  ;;  %v1852_v6 = vadd.f32 %v5479_v63, %v1851_v5 }
 0x44f   :  { %v2802_v61 = vadd.f32 %v2801_v44, %v2800_v40  ;;  %v2900_v26 = vadd.f32 %v2899_v38, %v2898_v60  ;;  %v2805_v41 = vadd.f32 %v2804_v45, %v2803_v46  ;;  %v2959_v11 = vadd.f32 %v2958_v55, %v2957_v27 }
 0x451   :  { %v3094_v23 = vpack.c.bf16 %v2802_v61, %v2802_v61  ;;  %v3108_v22 = vpack.c.bf16 %v2900_v26, %v2900_v26  ;;  %v2806_v57 = vrot.slane %v2805_v41, 2  ;;  %v2960_v42 = vrot.slane %v2959_v11, 2  ;;  %v2288_v9 = vpop.f32.mrf.mxu3  ;;  %v2475_v53 = vpop.f32.mrf.mxu2 }
 0x452   :  { %v2584_v50 = vmul.f32 %v2288_v9, %v1794_v20  ;;  %v2606_v58 = vmul.f32 %v2475_v53, %v1849_v31 }
 0x453   :  { %v3230_v24 = vunpack.c.l.b16 %v3094_v23  ;;  %v3244_v39 = vunpack.c.l.b16 %v3108_v22  ;;  %v2807_v2 = vadd.f32 %v2806_v57, %v2805_v41  ;;  %v2961_v12 = vadd.f32 %v2960_v42, %v2959_v11  ;;  %v5702_v22 = vld [vmem:[#allocation2_spill] sm:$0xff] }
 0x454   :  { %v2810_v18 = vsel %vm1620_vm3, %v2584_v50, 0.0  ;;  %v2964_v17 = vsel %vm1620_vm3, %v2606_v58, 0.0  ;;  %v1799_v57 = vadd.f32 %v5479_v63, %v5702_v22  ;;  %v1854_v42 = vadd.f32 %v5479_v63, %v1853_v4 }
 0x455   :  { %v3297_v1 = vsel %vm3269_vm0, %v3230_v24, %v3229_v62  ;;  %v2808_v7 = vrot.slane %v2807_v2, 1  ;;  %v2811_v3 = vrot.slane %v2810_v18, 4  ;;  %v2965_v10 = vrot.slane %v2964_v17, 4 }
 0x456   :  { %4048 = vmatmul.msk.bf16.gmra.mxu3 %vm2063_vm9, %v4153_v8  ;;  %v5474_v21 = vsel %vm3281_vm15, %v3244_v39, %v3309_v32  ;;  %v2962_v37 = vrot.slane %v2961_v12, 1 }
 0x457   :  { %v2809_v30 = vadd.f32 %v2808_v7, %v2807_v2  ;;  %v2812_v25 = vadd.f32 %v2811_v3, %v2810_v18  ;;  %v2966_v16 = vadd.f32 %v2965_v10, %v2964_v17  ;;  %v4154_v18 = vld [vmem:[%s5683_s2 + $0xf8] sm:$0xff]  ;;  %v1856_v17 = vpop.f32.mrf.mxu1 }
 0x458   :  { %v2963_v55 = vadd.f32 %v2962_v37, %v2961_v12 }
 0x459   :  { %v3095_v51 = vpack.c.bf16 %v2809_v30, %v2809_v30  ;;  %v2813_v40 = vrot.slane %v2812_v25, 2  ;;  %v2291_v60 = vpop.f32.mrf.mxu3  ;;  %v2478_v29 = vpop.f32.mrf.mxu2  ;;  %v2967_v46 = vrot.slane %v2966_v16, 2 }
 0x45a   :  { %v2585_v27 = vmul.f32 %v2291_v60, %v1797_v43  ;;  %v2607_v44 = vmul.f32 %v2478_v29, %v1852_v6  ;;  %v3117_v9 = vpack.c.bf16 %v2963_v55, %v2963_v55 }
 0x45b   :  { %v3231_v38 = vunpack.c.l.b16 %v3095_v51  ;;  %v2814_v45 = vadd.f32 %v2813_v40, %v2812_v25  ;;  %v2968_v48 = vadd.f32 %v2967_v46, %v2966_v16 }
 0x45c   :  { %v2817_v32 = vsel %vm1620_vm3, %v2585_v27, 0.0  ;;  %v2971_v36 = vsel %vm1620_vm3, %v2607_v44, 0.0  ;;  %v3253_v10 = vunpack.c.l.b16 %v3117_v9  ;;  %v1802_v27 = vadd.f32 %v5479_v63, %v5190_v59 }
 0x45d   :  { %v3298_v5 = vsel %vm3271_vm10, %v3231_v38, %v3297_v1  ;;  %v2815_v61 = vrot.slane %v2814_v45, 1  ;;  %v2818_v26 = vrot.slane %v2817_v32, 4  ;;  %v2972_v41 = vrot.slane %v2971_v36, 4 }
 0x45e   :  { %v2969_v11 = vrot.slane %v2968_v48, 1  ;;  %v1857_v44 = vadd.f32 %v5479_v63, %v1856_v17 }
 0x45f   :  { %v2816_v20 = vadd.f32 %v2815_v61, %v2814_v45  ;;  %v2819_v31 = vadd.f32 %v2818_v26, %v2817_v32  ;;  %v2973_v23 = vadd.f32 %v2972_v41, %v2971_v36  ;;  %v1858_v59 = vpop.f32.mrf.mxu1 }
 0x460   :  { %v2970_v53 = vadd.f32 %v2969_v11, %v2968_v48 }
 0x461   :  { %v3096_v50 = vpack.c.bf16 %v2816_v20, %v2816_v20  ;;  %v2820_v58 = vrot.slane %v2819_v31, 2  ;;  %v2974_v8 = vrot.slane %v2973_v23, 2  ;;  %v2293_v62 = vpop.f32.mrf.mxu3  ;;  %v2480_v24 = vpop.f32.mrf.mxu2 }
 0x462   :  { %v3118_v39 = vpack.c.bf16 %v2970_v53, %v2970_v53  ;;  %v2586_v2 = vmul.f32 %v2293_v62, %v1799_v57  ;;  %v2608_v12 = vmul.f32 %v2480_v24, %v1854_v42  ;;  %v1804_v24 = vadd.f32 %v5479_v63, %v5195_v34 }
 0x463   :  { %v3232_v1 = vunpack.c.l.b16 %v3096_v50  ;;  %v2821_v7 = vadd.f32 %v2820_v58, %v2819_v31  ;;  %v2975_v3 = vadd.f32 %v2974_v8, %v2973_v23 }
 0x464   :  { %v3254_v30 = vunpack.c.l.b16 %v3118_v39  ;;  %v2824_v25 = vsel %vm1620_vm3, %v2586_v2, 0.0  ;;  %v2978_v43 = vsel %vm1620_vm3, %v2608_v12, 0.0  ;;  %v1859_v39 = vadd.f32 %v5479_v63, %v1858_v59 }
 0x465   :  { %v3299_v6 = vsel %vm3273_vm11, %v3232_v1, %v3298_v5  ;;  %v2822_v4 = vrot.slane %v2821_v7, 1  ;;  %v2976_v37 = vrot.slane %v2975_v3, 1  ;;  %v2825_v16 = vrot.slane %v2824_v25, 4 }
 0x466   :  { %v3318_v51 = vsel %vm3269_vm0, %v3254_v30, %v3253_v10  ;;  %v2979_v40 = vrot.slane %v2978_v43, 4  ;;  %4049 = vmatmul.msk.bf16.gmra.mxu3 %vm2063_vm9, %v4154_v18 }
 0x467   :  { %v2823_v60 = vadd.f32 %v2822_v4, %v2821_v7  ;;  %v2977_v29 = vadd.f32 %v2976_v37, %v2975_v3  ;;  %v2826_v46 = vadd.f32 %v2825_v16, %v2824_v25 }
 0x468   :  { %v2980_v38 = vadd.f32 %v2979_v40, %v2978_v43 }
 0x469   :  { %v3097_v45 = vpack.c.bf16 %v2823_v60, %v2823_v60  ;;  %v3119_v55 = vpack.c.bf16 %v2977_v29, %v2977_v29  ;;  %v2827_v48 = vrot.slane %v2826_v46, 2  ;;  %v2296_v32 = vpop.f32.mrf.mxu3  ;;  %v2483_v36 = vpop.f32.mrf.mxu2 }
 0x46a   :  { %v2981_v5 = vrot.slane %v2980_v38, 2  ;;  %v2587_v61 = vmul.f32 %v2296_v32, %v1802_v27  ;;  %v2609_v26 = vmul.f32 %v2483_v36, %v1857_v44 }
 0x46b   :  { %v3233_v41 = vunpack.c.l.b16 %v3097_v45  ;;  %v3255_v11 = vunpack.c.l.b16 %v3119_v55  ;;  %v2828_v20 = vadd.f32 %v2827_v48, %v2826_v46  ;;  %v1862_v55 = vadd.f32 %v5479_v63, %v5120_v35 }
 0x46c   :  { %v2982_v31 = vadd.f32 %v2981_v5, %v2980_v38  ;;  %v2831_v23 = vsel %vm1620_vm3, %v2587_v61, 0.0  ;;  %v2985_v22 = vsel %vm1620_vm3, %v2609_v26, 0.0 }
 0x46d   :  { %v3300_v57 = vsel %vm3275_vm12, %v3233_v41, %v3299_v6  ;;  %v3319_v42 = vsel %vm3271_vm10, %v3255_v11, %v3318_v51  ;;  %v2829_v9 = vrot.slane %v2828_v20, 1  ;;  %v2832_v53 = vrot.slane %v2831_v23, 4 }
 0x46e   :  { %v2983_v50 = vrot.slane %v2982_v31, 1  ;;  %v2986_v58 = vrot.slane %v2985_v22, 4 }
 0x46f   :  { %v2830_v8 = vadd.f32 %v2829_v9, %v2828_v20  ;;  %v2833_v62 = vadd.f32 %v2832_v53, %v2831_v23 }
 0x470   :  { %v2984_v2 = vadd.f32 %v2983_v50, %v2982_v31  ;;  %v2987_v12 = vadd.f32 %v2986_v58, %v2985_v22 }
 0x471   :  { %v3098_v18 = vpack.c.bf16 %v2830_v8, %v2830_v8  ;;  %v2834_v17 = vrot.slane %v2833_v62, 2  ;;  %v2298_v1 = vpop.f32.mrf.mxu3  ;;  %v2485_v7 = vpop.f32.mrf.mxu2 }
 0x472   :  { %v3120_v3 = vpack.c.bf16 %v2984_v2, %v2984_v2  ;;  %v2988_v10 = vrot.slane %v2987_v12, 2  ;;  %v2588_v30 = vmul.f32 %v2298_v1, %v1804_v24  ;;  %v2610_v25 = vmul.f32 %v2485_v7, %v1859_v39 }
 0x473   :  { %v3234_v43 = vunpack.c.l.b16 %v3098_v18  ;;  %v2835_v6 = vadd.f32 %v2834_v17, %v2833_v62 }
 0x474   :  { %v3256_v4 = vunpack.c.l.b16 %v3120_v3  ;;  %v2989_v37 = vadd.f32 %v2988_v10, %v2987_v12  ;;  %v2838_v16 = vsel %vm1620_vm3, %v2588_v30, 0.0  ;;  %v2992_v34 = vsel %vm1620_vm3, %v2610_v25, 0.0 }
 0x475   :  { %v2836_v51 = vrot.slane %v2835_v6, 1  ;;  %v2839_v40 = vrot.slane %v2838_v16, 4  ;;  %v2993_v60 = vrot.slane %v2992_v34, 4  ;;  %v3301_v29 = vsel %vm3277_vm13, %v3234_v43, %v3300_v57 }
 0x476   :  { %v3320_v46 = vsel %vm3273_vm11, %v3256_v4, %v3319_v42  ;;  %v2990_v27 = vrot.slane %v2989_v37, 1 }
 0x477   :  { %v2837_v44 = vadd.f32 %v2836_v51, %v2835_v6  ;;  %v2840_v38 = vadd.f32 %v2839_v40, %v2838_v16  ;;  %v2994_v45 = vadd.f32 %v2993_v60, %v2992_v34  ;;  %v1829_v16 = vadd.f32 %v5479_v63, %v5324_v52 }
 0x478   :  { %v2991_v48 = vadd.f32 %v2990_v27, %v2989_v37  ;;  %v1832_v34 = vadd.f32 %v5479_v63, %v5339_v28  ;;  %v1834_v51 = vadd.f32 %v5479_v63, %v5360_v47  ;;  %v1837_v60 = vadd.f32 %v5479_v63, %v5372_v0 }
 0x479   :  { %v3099_v32 = vpack.c.bf16 %v2837_v44, %v2837_v44  ;;  %v2841_v36 = vrot.slane %v2840_v38, 2  ;;  %v2995_v5 = vrot.slane %v2994_v45, 2  ;;  %v2409_v61 = vpop.f32.mrf.mxu3  ;;  %v2488_v26 = vpop.f32.mrf.mxu2 }
 0x47a   :  { %v3121_v41 = vpack.c.bf16 %v2991_v48, %v2991_v48  ;;  %v2611_v11 = vmul.f32 %v2488_v26, %v1862_v55  ;;  %v1839_v48 = vadd.f32 %v5479_v63, %v5388_v54 }
 0x47b   :  { %v3235_v20 = vunpack.c.l.b16 %v3099_v32  ;;  %v2842_v31 = vadd.f32 %v2841_v36, %v2840_v38  ;;  %v2996_v23 = vadd.f32 %v2995_v5, %v2994_v45 }
 0x47c   :  { %v3257_v22 = vunpack.c.l.b16 %v3121_v41  ;;  %v2999_v59 = vsel %vm1620_vm3, %v2611_v11, 0.0 }
 0x47d   :  { %v2843_v57 = vrot.slane %v2842_v31, 1  ;;  %v2997_v42 = vrot.slane %v2996_v23, 1  ;;  %v3000_v9 = vrot.slane %v2999_v59, 4  ;;  %v3302_v35 = vsel %vm3279_vm14, %v3235_v20, %v3301_v29 }
 0x47e   :  { %v3321_v53 = vsel %vm3275_vm12, %v3257_v22, %v3320_v46 }
 0x47f   :  { %v2844_v50 = vadd.f32 %v2843_v57, %v2842_v31  ;;  %v3001_v58 = vadd.f32 %v3000_v9, %v2999_v59  ;;  %v2998_v8 = vadd.f32 %v2997_v42, %v2996_v23  ;;  %v1842_v9 = vadd.f32 %v5479_v63, %v5409_v56 }
 0x480   :  { %v1844_v56 = vadd.f32 %v5479_v63, %v5425_v13 }
 0x481   :  { %v3100_v62 = vpack.c.bf16 %v2844_v50, %v2844_v50  ;;  %v3002_v24 = vrot.slane %v3001_v58, 2  ;;  %v2411_v39 = vpop.f32.mrf.mxu3  ;;  %v3122_v18 = vpack.c.bf16 %v2998_v8, %v2998_v8 }
 0x482   :  { %v2598_v40 = vmul.f32 %v2411_v39, %v1829_v16 }
 0x483   :  { %v3236_v2 = vunpack.c.l.b16 %v3100_v62  ;;  %v3003_v12 = vadd.f32 %v3002_v24, %v3001_v58  ;;  %v3258_v3 = vunpack.c.l.b16 %v3122_v18 }
 0x484   :  { %v2908_v52 = vsel %vm1620_vm3, %v2598_v40, 0.0 }
 0x485   :  { %v3004_v17 = vrot.slane %v3003_v12, 1  ;;  %v3303_v1 = vsel %vm3281_vm15, %v3236_v2, %v3302_v35  ;;  %v3322_v6 = vsel %vm3277_vm13, %v3258_v3, %v3321_v53  ;;  %v2909_v55 = vrot.slane %v2908_v52, 4 }
 0x486   :  { %v3333_v10 = vpack.c.b16 %v3303_v1, %v5382_v33  ;;  %v1827_v33 = vadd.f32 %v5479_v63, %v5308_v19 }
 0x487   :  { %v3005_v7 = vadd.f32 %v3004_v17, %v3003_v12  ;;  %v2910_v41 = vadd.f32 %v2909_v55, %v2908_v52 }
 0x488   :  { %4059 = vmatmul.msk.bf16.gmra.mxu2 %vm1620_vm3, %v3333_v10  ;;  %v2597_v27 = vmul.f32 %v2409_v61, %v1827_v33 }
 0x489   :  { %v3123_v30 = vpack.c.bf16 %v3005_v7, %v3005_v7  ;;  %v2414_v25 = vpop.f32.mrf.mxu3  ;;  %v2911_v57 = vrot.slane %v2910_v41, 2 }
 0x48a   :  { %v2599_v29 = vmul.f32 %v2414_v25, %v1832_v34  ;;  %v2901_v28 = vsel %vm1620_vm3, %v2597_v27, 0.0 }
 0x48b   :  { %v3259_v43 = vunpack.c.l.b16 %v3123_v30  ;;  %v2902_v32 = vrot.slane %v2901_v28, 4  ;;  %v2912_v62 = vadd.f32 %v2911_v57, %v2910_v41 }
 0x48c   :  { %v2915_v45 = vsel %vm1620_vm3, %v2599_v29, 0.0 }
 0x48d   :  { %v5522_v4 = vsel %vm3279_vm14, %v3259_v43, %v3322_v6  ;;  %v2916_v0 = vrot.slane %v2915_v45, 4  ;;  %v2903_v31 = vadd.f32 %v2902_v32, %v2901_v28  ;;  %v2913_v7 = vrot.slane %v2912_v62, 1 }
 0x48f   :  { %v2917_v11 = vadd.f32 %v2916_v0, %v2915_v45  ;;  %v2904_v53 = vrot.slane %v2903_v31, 2  ;;  %v2914_v33 = vadd.f32 %v2913_v7, %v2912_v62 }
 0x491   :  { %v2416_v37 = vpop.f32.mrf.mxu3  ;;  %v2918_v54 = vrot.slane %v2917_v11, 2  ;;  %v2905_v12 = vadd.f32 %v2904_v53, %v2903_v31  ;;  %v3110_v45 = vpack.c.bf16 %v2914_v33, %v2914_v33 }
 0x492   :  { %v2600_v44 = vmul.f32 %v2416_v37, %v1834_v51 }
 0x493   :  { %v2919_v39 = vadd.f32 %v2918_v54, %v2917_v11  ;;  %v2906_v25 = vrot.slane %v2905_v12, 1 }
 0x494   :  { %v2922_v19 = vsel %vm1620_vm3, %v2600_v44, 0.0 }
 0x495   :  { %v2923_v36 = vrot.slane %v2922_v19, 4  ;;  %v2920_v30 = vrot.slane %v2919_v39, 1 }
 0x497   :  { %v2924_v23 = vadd.f32 %v2923_v36, %v2922_v19  ;;  %v1867_v19 = vadd.f32 %v5479_v63, %v5124_v14 }
 0x499   :  { %v2419_v46 = vpop.f32.mrf.mxu3  ;;  %v2925_v35 = vrot.slane %v2924_v23, 2 }
 0x49a   :  { %v2601_v38 = vmul.f32 %v2419_v46, %v1837_v60  ;;  %v2921_v60 = vadd.f32 %v2920_v30, %v2919_v39  ;;  %v2907_v46 = vadd.f32 %v2906_v25, %v2905_v12 }
 0x49b   :  { %v2926_v18 = vadd.f32 %v2925_v35, %v2924_v23  ;;  %v1869_v35 = vadd.f32 %v5479_v63, %v5126_v49 }
 0x49c   :  { %v2929_v47 = vsel %vm1620_vm3, %v2601_v38, 0.0  ;;  %v3111_v55 = vpack.c.bf16 %v2921_v60, %v2921_v60 }
 0x49d   :  { %v2930_v61 = vrot.slane %v2929_v47, 4  ;;  %v2927_v43 = vrot.slane %v2926_v18, 1 }
 0x49f   :  { %v2931_v59 = vadd.f32 %v2930_v61, %v2929_v47  ;;  %v2928_v27 = vadd.f32 %v2927_v43, %v2926_v18  ;;  %v2490_v18 = vpop.f32.mrf.mxu2  ;;  %v1872_v43 = vadd.f32 %v5479_v63, %v5128_v15 }
 0x4a1   :  { %v2421_v5 = vpop.f32.mrf.mxu3  ;;  %v2932_v58 = vrot.slane %v2931_v59, 2  ;;  %v3112_v0 = vpack.c.bf16 %v2928_v27, %v2928_v27 }
 0x4a2   :  { %v2602_v26 = vmul.f32 %v2421_v5, %v1839_v48  ;;  %v3109_v48 = vpack.c.bf16 %v2907_v46, %v2907_v46 }
 0x4a3   :  { %v2933_v1 = vadd.f32 %v2932_v58, %v2931_v59  ;;  %v3248_v59 = vunpack.c.l.b16 %v3112_v0 }
 0x4a4   :  { %v2936_v20 = vsel %vm1620_vm3, %v2602_v26, 0.0  ;;  %v3246_v26 = vunpack.c.l.b16 %v3110_v45 }
 0x4a5   :  { %v2937_v22 = vrot.slane %v2936_v20, 4  ;;  %v2934_v16 = vrot.slane %v2933_v1, 1 }
 0x4a7   :  { %v2938_v42 = vadd.f32 %v2937_v22, %v2936_v20  ;;  %v2935_v52 = vadd.f32 %v2934_v16, %v2933_v1  ;;  %v3247_v20 = vunpack.c.l.b16 %v3111_v55  ;;  %v3245_v22 = vunpack.c.l.b16 %v3109_v48 }
 0x4a9   :  { %v2424_v50 = vpop.f32.mrf.mxu3  ;;  %v2939_v24 = vrot.slane %v2938_v42, 2  ;;  %v3113_v5 = vpack.c.bf16 %v2935_v52, %v2935_v52  ;;  %v5703_v52 = vld [vmem:[#allocation4_spill] sm:$0xff] }
 0x4aa   :  { %v2603_v8 = vmul.f32 %v2424_v50, %v1842_v9  ;;  %v3311_v9 = vsel %vm3269_vm0, %v3246_v26, %v3245_v22  ;;  %v1874_v45 = vadd.f32 %v5479_v63, %v5703_v52 }
 0x4ab   :  { %v2940_v3 = vadd.f32 %v2939_v24, %v2938_v42  ;;  %v3249_v42 = vunpack.c.l.b16 %v3113_v5  ;;  %v3312_v50 = vsel %vm3271_vm10, %v3247_v20, %v3311_v9 }
 0x4ac   :  { %v2943_v2 = vsel %vm1620_vm3, %v2603_v8, 0.0  ;;  %v3313_v8 = vsel %vm3273_vm11, %v3248_v59, %v3312_v50 }
 0x4ad   :  { %v2944_v17 = vrot.slane %v2943_v2, 4  ;;  %v2941_v51 = vrot.slane %v2940_v3, 1  ;;  %v3314_v39 = vsel %vm3275_vm12, %v3249_v42, %v3313_v8 }
 0x4af   :  { %v2945_v10 = vadd.f32 %v2944_v17, %v2943_v2  ;;  %v2942_v13 = vadd.f32 %v2941_v51, %v2940_v3 }
 0x4b1   :  { %v2946_v6 = vrot.slane %v2945_v10, 2  ;;  %v2426_v37 = vpop.f32.mrf.mxu3  ;;  %v3114_v41 = vpack.c.bf16 %v2942_v13, %v2942_v13 }
 0x4b2   :  { %v2604_v34 = vmul.f32 %v2426_v37, %v1844_v56 }
 0x4b3   :  { %v2947_v40 = vadd.f32 %v2946_v6, %v2945_v10  ;;  %v3250_v54 = vunpack.c.l.b16 %v3114_v41  ;;  %v5568_v6 = vld [vmem:[%s5685_s9] ss:$0 sm:$0xff] }
 0x4b4   :  { %v2950_v29 = vsel %vm1620_vm3, %v2604_v34, 0.0 }
 0x4b5   :  { %v2948_v44 = vrot.slane %v2947_v40, 1  ;;  %v2951_v38 = vrot.slane %v2950_v29, 4  ;;  %v3315_v1 = vsel %vm3277_vm13, %v3250_v54, %v3314_v39  ;;  %v5705_v54 = vld [vmem:[#allocation3_spill] sm:$0xff] }
 0x4b7   :  { %v2952_v28 = vadd.f32 %v2951_v38, %v2950_v29  ;;  %v2949_v47 = vadd.f32 %v2948_v44, %v2947_v40  ;;  %v4158_v44 = vld [vmem:[%s5686_s10 + $0x8] sm:$0xff] }
 0x4b8   :  { %3559 = vmatpush.bf16.msra.mxu3 %v4158_v44 }
 0x4b9   :  { %v2953_v32 = vrot.slane %v2952_v28, 2  ;;  %v2537_v36 = vpop.f32.mrf.mxu3  ;;  %v3115_v31 = vpack.c.bf16 %v2949_v47, %v2949_v47 }
 0x4ba   :  { %v2613_v61 = vmul.f32 %v2537_v36, %v1867_v19 }
 0x4bb   :  { %v2954_v11 = vadd.f32 %v2953_v32, %v2952_v28  ;;  %v3251_v58 = vunpack.c.l.b16 %v3115_v31  ;;  %v4157_v32 = vld [vmem:[%s5686_s10] sm:$0xff] }
 0x4bc   :  { %v3013_v23 = vsel %vm1620_vm3, %v2613_v61, 0.0  ;;  %3560 = vmatpush.bf16.msra.mxu3 %v4157_v32 }
 0x4bd   :  { %v2955_v57 = vrot.slane %v2954_v11, 1  ;;  %v3014_v14 = vrot.slane %v3013_v23, 4  ;;  %v3316_v3 = vsel %vm3279_vm14, %v3251_v58, %v3315_v1 }
 0x4bf   :  { %v2956_v53 = vadd.f32 %v2955_v57, %v2954_v11  ;;  %v3015_v2 = vadd.f32 %v3014_v14, %v3013_v23  ;;  %v5704_v57 = vld [vmem:[#allocation5_spill] sm:$0xff] }
 0x4c0   :  { %v1877_v42 = vadd.f32 %v5479_v63, %v5704_v57 }
 0x4c1   :  { %v3116_v62 = vpack.c.bf16 %v2956_v53, %v2956_v53  ;;  %v2539_v24 = vpop.f32.mrf.mxu3  ;;  %v3016_v56 = vrot.slane %v3015_v2, 2  ;;  %v1864_v53 = vadd.f32 %v5479_v63, %v5705_v54 }
 0x4c2   :  { %v2614_v12 = vmul.f32 %v2539_v24, %v1869_v35 }
 0x4c3   :  { %v3252_v17 = vunpack.c.l.b16 %v3116_v62  ;;  %v3017_v34 = vadd.f32 %v3016_v56, %v3015_v2  ;;  %v2612_v2 = vmul.f32 %v2490_v18, %v1864_v53 }
 0x4c4   :  { %v3020_v7 = vsel %vm1620_vm3, %v2614_v12, 0.0 }
 0x4c5   :  { %v3021_v49 = vrot.slane %v3020_v7, 4  ;;  %v3317_v10 = vsel %vm3281_vm15, %v3252_v17, %v3316_v3  ;;  %v3018_v46 = vrot.slane %v3017_v34, 1 }
 0x4c6   :  { %v3334_v30 = vpack.c.b16 %v3317_v10, %v5474_v21 }
 0x4c7   :  { %v3022_v25 = vadd.f32 %v3021_v49, %v3020_v7  ;;  %v3019_v47 = vadd.f32 %v3018_v46, %v3017_v34 }
 0x4c8   :  { %4060 = vmatmul.msk.bf16.gmra.mxu2 %vm1620_vm3, %v3334_v30  ;;  %v3006_v30 = vsel %vm1620_vm3, %v2612_v2, 0.0 }
 0x4c9   :  { %v3023_v37 = vrot.slane %v3022_v25, 2  ;;  %v2542_v16 = vpop.f32.mrf.mxu3  ;;  %v3125_v31 = vpack.c.bf16 %v3019_v47, %v3019_v47 }
 0x4ca   :  { %v2615_v33 = vmul.f32 %v2542_v16, %v1872_v43 }
 0x4cb   :  { %v3024_v51 = vadd.f32 %v3023_v37, %v3022_v25  ;;  %v3369_v40 = vpop.f32.mrf.mxu2  ;;  %v3261_v62 = vunpack.c.l.b16 %v3125_v31  ;;  %v5706_v25 = vld [vmem:[#allocation6_spill] sm:$0xff] }
 0x4cc   :  { %v3027_v60 = vsel %vm1620_vm3, %v2615_v33, 0.0  ;;  %v5572_v21 = vadd.f32 %v5568_v6, %v3369_v40  ;;  %v1879_v43 = vadd.f32 %v5479_v63, %v5706_v25 }
 0x4cd   :  { %v3025_v29 = vrot.slane %v3024_v51, 1  ;;  %v3028_v15 = vrot.slane %v3027_v60, 4 }
 0x4ce   :  { %v3397_v27 = vand.u32 2147483647, %v5572_v21 }
 0x4cf   :  { %v3029_v38 = vadd.f32 %v3028_v15, %v3027_v60  ;;  %v3026_v13 = vadd.f32 %v3025_v29, %v3024_v51  ;;  %v3007_v51 = vrot.slane %v3006_v30, 4 }
 0x4d0   :  { %v3405_v28 = vsub.f32 0.0, %v3397_v27 }
 0x4d1   :  { %v3030_v19 = vrot.slane %v3029_v38, 2  ;;  %v2544_v55 = vpop.f32.mrf.mxu3  ;;  %v3126_v61 = vpack.c.bf16 %v3026_v13, %v3026_v13 }
 0x4d2   :  { %v3413_v48 = vmul.f32 1.442695, %v3405_v28  ;;  %v2616_v0 = vmul.f32 %v2544_v55, %v1874_v45  ;;  %v3008_v28 = vadd.f32 %v3007_v51, %v3006_v30 }
 0x4d3   :  { %v3031_v36 = vadd.f32 %v3030_v19, %v3029_v38  ;;  %v3371_v5 = vpop.f32.mrf.mxu2  ;;  %v3262_v14 = vunpack.c.l.b16 %v3126_v61 }
 0x4d4   :  { %4422 = vpow2.f32 %v3413_v48  ;;  %v3034_v26 = vsel %vm1620_vm3, %v2616_v0, 0.0  ;;  %v5585_v41 = vadd.f32 %v5568_v6, %v3371_v5  ;;  %v5707_v0 = vld [vmem:[#allocation7_spill] sm:$0xff] }
 0x4d5   :  { %v3032_v11 = vrot.slane %v3031_v36, 1  ;;  %v3035_v20 = vrot.slane %v3034_v26, 4  ;;  %v3325_v1 = vsel %vm3269_vm0, %v3262_v14, %v3261_v62  ;;  %v1882_v32 = vadd.f32 %v5479_v63, %v5707_v0 }
 0x4d6   :  { %v3398_v23 = vand.u32 2147483647, %v5585_v41  ;;  %v3389_v14 = vmax.f32 %v5572_v21, 0.0  ;;  %v5710_v21 = vld [vmem:[#allocation8_spill] sm:$0xff] }
 0x4d7   :  { %v3033_v22 = vadd.f32 %v3032_v11, %v3031_v36  ;;  %v3036_v59 = vadd.f32 %v3035_v20, %v3034_v26 }
 0x4d8   :  { %v3406_v9 = vsub.f32 0.0, %v3398_v23  ;;  %v3009_v23 = vrot.slane %v3008_v28, 2 }
 0x4d9   :  { %v3127_v35 = vpack.c.bf16 %v3033_v22, %v3033_v22  ;;  %v3037_v50 = vrot.slane %v3036_v59, 2  ;;  %v2547_v58 = vpop.f32.mrf.mxu3 }
 0x4da   :  { %v4423_v8 = vpop.eup %4422  ;;  %v3415_v24 = vmul.f32 1.442695, %v3406_v9  ;;  %v2617_v39 = vmul.f32 %v2547_v58, %v1877_v42  ;;  %v3390_v9 = vmax.f32 %v5585_v41, 0.0  ;;  %v1884_v41 = vadd.f32 %v5479_v63, %v5710_v21 }
 0x4db   :  { %v3263_v12 = vunpack.c.l.b16 %v3127_v35  ;;  %v3429_v17 = vadd.f32 1.0, %v4423_v8  ;;  %v3038_v7 = vadd.f32 %v3037_v50, %v3036_v59  ;;  %v3432_v37 = vmul.f32 -0.5, %v4423_v8 }
 0x4dc   :  { %4424 = vpow2.f32 %v3415_v24  ;;  %v3041_v3 = vsel %vm1620_vm3, %v2617_v39, 0.0  ;;  %v3435_v52 = vand.u32 2147483647, %v4423_v8 }
 0x4dd   :  { %v3326_v49 = vsel %vm3271_vm10, %v3263_v12, %v3325_v1  ;;  %4426 = vlog2.f32 %v3429_v17  ;;  %v3039_v10 = vrot.slane %v3038_v7, 1  ;;  %v3042_v56 = vrot.slane %v3041_v3, 4 }
 0x4de   :  { %v3433_v46 = vadd.f32 1.0, %v3432_v37  ;;  %vm5601_vm1 = vcmp.lt.f32.partialorder %v3435_v52, 0.0004427343 }
 0x4df   :  { %v3043_v18 = vadd.f32 %v3042_v56, %v3041_v3  ;;  %v3040_v16 = vadd.f32 %v3039_v10, %v3038_v7  ;;  %v3010_v3 = vadd.f32 %v3009_v23, %v3008_v28 }
 0x4e0   :  { %v3434_v36 = vmul.f32 %v4423_v8, %v3433_v46 }
 0x4e1   :  { %v2549_v34 = vpop.f32.mrf.mxu3  ;;  %v3044_v40 = vrot.slane %v3043_v18, 2  ;;  %v3128_v45 = vpack.c.bf16 %v3040_v16, %v3040_v16 }
 0x4e2   :  { %v4425_v33 = vpop.eup %4424  ;;  %v2618_v60 = vmul.f32 %v2549_v34, %v1879_v43  ;;  %v3011_v34 = vrot.slane %v3010_v3, 1 }
 0x4e3   :  { %v4427_v29 = vpop.eup %4426  ;;  %v3438_v15 = vadd.f32 1.0, %v4425_v33  ;;  %v3441_v27 = vmul.f32 -0.5, %v4425_v33  ;;  %v3045_v44 = vadd.f32 %v3044_v40, %v3043_v18  ;;  %v3444_v47 = vand.u32 2147483647, %v4425_v33 }
 0x4e4   :  { %v3048_v38 = vsel %vm1620_vm3, %v2618_v60, 0.0  ;;  %v3431_v19 = vmul.f32 0.6931472, %v4427_v29  ;;  %v3264_v11 = vunpack.c.l.b16 %v3128_v45  ;;  %v3012_v29 = vadd.f32 %v3011_v34, %v3010_v3 }
 0x4e5   :  { %4428 = vlog2.f32 %v3438_v15  ;;  %v3049_v13 = vrot.slane %v3048_v38, 4  ;;  %v3046_v55 = vrot.slane %v3045_v44, 1  ;;  %v3442_v5 = vadd.f32 1.0, %v3441_v27 }
 0x4e6   :  { %v3437_v22 = vsel %vm5601_vm1, %v3434_v36, %v3431_v19  ;;  %vm3445_vm2 = vcmp.lt.f32.partialorder %v3444_v47, 0.0004427343  ;;  %v3327_v62 = vsel %vm3273_vm11, %v3264_v11, %v3326_v49  ;;  %v3124_v52 = vpack.c.bf16 %v3012_v29, %v3012_v29 }
 0x4e7   :  { %v3050_v48 = vadd.f32 %v3049_v13, %v3048_v38  ;;  %v3047_v61 = vadd.f32 %v3046_v55, %v3045_v44  ;;  %v3443_v35 = vmul.f32 %v4425_v33, %v3442_v5  ;;  %v3501_v8 = vadd.f32 %v3437_v22, %v3389_v14 }
 0x4e8   :  { %v3260_v19 = vunpack.c.l.b16 %v3124_v52 }
 0x4e9   :  { %v3051_v20 = vrot.slane %v3050_v48, 2  ;;  %v2552_v31 = vpop.f32.mrf.mxu3  ;;  %v3129_v59 = vpack.c.bf16 %v3047_v61, %v3047_v61  ;;  %v4062_v10 = vadd.f32 -0.6931472, %v3501_v8 }
 0x4ea   :  { %v2619_v57 = vmul.f32 %v2552_v31, %v1882_v32 }
 0x4eb   :  { %v4429_v42 = vpop.eup %4428  ;;  %v3052_v54 = vadd.f32 %v3051_v20, %v3050_v48  ;;  %v3265_v50 = vunpack.c.l.b16 %v3129_v59  ;;  %v3324_v48 = vsel %vm3281_vm15, %v3260_v19, %v5522_v4 }
 0x4ec   :  { %v3440_v53 = vmul.f32 0.6931472, %v4429_v42  ;;  %v3055_v58 = vsel %vm1620_vm3, %v2619_v57, 0.0 }
 0x4ed   :  { %v3053_v24 = vrot.slane %v3052_v54, 1  ;;  %v3056_v39 = vrot.slane %v3055_v58, 4  ;;  %v3328_v12 = vsel %vm3275_vm12, %v3265_v50, %v3327_v62 }
 0x4ee   :  { %v3446_v2 = vsel %vm3445_vm2, %v3443_v35, %v3440_v53 }
 0x4ef   :  { %v3502_v17 = vadd.f32 %v3446_v2, %v3390_v9  ;;  %v3057_v1 = vadd.f32 %v3056_v39, %v3055_v58  ;;  %v3054_v7 = vadd.f32 %v3053_v24, %v3052_v54 }
 0x4f1   :  { %v4063_v56 = vadd.f32 -0.6931472, %v3502_v17  ;;  %v3058_v30 = vrot.slane %v3057_v1, 2  ;;  %v2554_v25 = vpop.f32.mrf.mxu3  ;;  %v3130_v49 = vpack.c.bf16 %v3054_v7, %v3054_v7 }
 0x4f2   :  { %v2620_v43 = vmul.f32 %v2554_v25, %v1884_v41 }
 0x4f3   :  { %v3517_v37 = vpack.c.bf16 %v4063_v56, %v4062_v10  ;;  %v3059_v18 = vadd.f32 %v3058_v30, %v3057_v1  ;;  %v3266_v63 = vunpack.c.l.b16 %v3130_v49 }
 0x4f4   :  { %v3062_v16 = vsel %vm1620_vm3, %v2620_v43, 0.0 }
 0x4f5   :  { %v3060_v33 = vrot.slane %v3059_v18, 1  ;;  %v3063_v51 = vrot.slane %v3062_v16, 4  ;;  %4078 = vmatmul.msk.bf16.vlgmr.msra.gmra.mxu3 %vm1620_vm3, %v3517_v37  ;;  %v3329_v38 = vsel %vm3277_vm13, %v3266_v63, %v3328_v12 }
 0x4f7   :  { %v3061_v40 = vadd.f32 %v3060_v33, %v3059_v18  ;;  %v3064_v60 = vadd.f32 %v3063_v51, %v3062_v16 }
 0x4f9   :  { %v3131_v15 = vpack.c.bf16 %v3061_v40, %v3061_v40  ;;  %v3065_v46 = vrot.slane %v3064_v60, 2 }
 0x4fb   :  { %v3267_v27 = vunpack.c.l.b16 %v3131_v15  ;;  %v3066_v44 = vadd.f32 %v3065_v46, %v3064_v60 }
 0x4fd   :  { %v3067_v45 = vrot.slane %v3066_v44, 1  ;;  %v3330_v13 = vsel %vm3279_vm14, %v3267_v27, %v3329_v38 }
 0x4ff   :  { %v3068_v28 = vadd.f32 %v3067_v45, %v3066_v44 }
 0x501   :  { %v3132_v55 = vpack.c.bf16 %v3068_v28, %v3068_v28 }
 0x503   :  { %v3268_v47 = vunpack.c.l.b16 %v3132_v55 }
 0x505   :  { %v3331_v0 = vsel %vm3281_vm15, %v3268_v47, %v3330_v13 }
 0x506   :  { %v3335_v32 = vpack.c.b16 %v3331_v0, %v3324_v48 }
 0x508   :  { %4061 = vmatmul.msk.bf16.gmra.mxu2 %vm1620_vm3, %v3335_v32 }
 0x50b   :  { %v3374_v36 = vpop.f32.mrf.mxu2 }
 0x50c   :  { %v3375_v5 = vadd.f32 %v5568_v6, %v3374_v36 }
 0x50e   :  { %v3399_v61 = vand.u32 2147483647, %v3375_v5  ;;  %v3391_v12 = vmax.f32 %v3375_v5, 0.0 }
 0x510   :  { %v3407_v26 = vsub.f32 0.0, %v3399_v61 }
 0x512   :  { %v3417_v11 = vmul.f32 1.442695, %v3407_v26 }
 0x513   :  { %v3376_v20 = vpop.f32.mrf.mxu2 }
 0x514   :  { %4430 = vpow2.f32 %v3417_v11  ;;  %v3377_v31 = vadd.f32 %v5568_v6, %v3376_v20 }
 0x516   :  { %v3400_v23 = vand.u32 2147483647, %v3377_v31  ;;  %v3392_v41 = vmax.f32 %v3377_v31, 0.0 }
 0x518   :  { %v3408_v22 = vsub.f32 0.0, %v3400_v23  ;;  %v5631_v23 = vld [vmem:[%s5687_s11] ss:$0 sm:$0xff] }
 0x51a   :  { %v4431_v59 = vpop.eup %4430  ;;  %v3419_v57 = vmul.f32 1.442695, %v3408_v22 }
 0x51b   :  { %v3447_v4 = vadd.f32 1.0, %v4431_v59  ;;  %v3450_v42 = vmul.f32 -0.5, %v4431_v59  ;;  %v3453_v50 = vand.u32 2147483647, %v4431_v59 }
 0x51c   :  { %4432 = vpow2.f32 %v3419_v57 }
 0x51d   :  { %4434 = vlog2.f32 %v3447_v4  ;;  %v3451_v53 = vadd.f32 1.0, %v3450_v42  ;;  %vm3454_vm4 = vcmp.lt.f32.partialorder %v3453_v50, 0.0004427343 }
 0x51f   :  { %v3452_v8 = vmul.f32 %v4431_v59, %v3451_v53 }
 0x522   :  { %v4433_v14 = vpop.eup %4432 }
 0x523   :  { %v4435_v9 = vpop.eup %4434  ;;  %v3456_v54 = vadd.f32 1.0, %v4433_v14  ;;  %v3459_v35 = vmul.f32 -0.5, %v4433_v14  ;;  %v3462_v24 = vand.u32 2147483647, %v4433_v14 }
 0x524   :  { %v3449_v58 = vmul.f32 0.6931472, %v4435_v9 }
 0x525   :  { %4436 = vlog2.f32 %v3456_v54  ;;  %v3460_v62 = vadd.f32 1.0, %v3459_v35  ;;  %vm3463_vm5 = vcmp.lt.f32.partialorder %v3462_v24, 0.0004427343 }
 0x526   :  { %v3455_v39 = vsel %vm3454_vm4, %v3452_v8, %v3449_v58 }
 0x527   :  { %v3461_v1 = vmul.f32 %v4433_v14, %v3460_v62  ;;  %v3503_v21 = vadd.f32 %v3455_v39, %v3391_v12 }
 0x529   :  { %v4064_v10 = vadd.f32 -0.6931472, %v3503_v21 }
 0x52b   :  { %v4437_v2 = vpop.eup %4436 }
 0x52c   :  { %v3458_v17 = vmul.f32 0.6931472, %v4437_v2 }
 0x52e   :  { %v3464_v7 = vsel %vm3463_vm5, %v3461_v1, %v3458_v17 }
 0x52f   :  { %v3504_v3 = vadd.f32 %v3464_v7, %v3392_v41 }
 0x531   :  { %v4065_v56 = vadd.f32 -0.6931472, %v3504_v3 }
 0x533   :  { %v3518_v30 = vpack.c.bf16 %v4065_v56, %v4064_v10 }
 0x535   :  { %4079 = vmatmul.msk.bf16.gmra.mxu3 %vm1620_vm3, %v3518_v30 }
 0x54b   :  { %v3379_v25 = vpop.f32.mrf.mxu2 }
 0x54c   :  { %v3380_v43 = vadd.f32 %v5568_v6, %v3379_v25 }
 0x54e   :  { %v3401_v37 = vand.u32 2147483647, %v3380_v43  ;;  %v3393_v48 = vmax.f32 %v3380_v43, 0.0 }
 0x550   :  { %v3409_v18 = vsub.f32 0.0, %v3401_v37 }
 0x552   :  { %v3421_v49 = vmul.f32 1.442695, %v3409_v18 }
 0x553   :  { %v3381_v16 = vpop.f32.mrf.mxu2 }
 0x554   :  { %4438 = vpow2.f32 %v3421_v49  ;;  %v3382_v34 = vadd.f32 %v5568_v6, %v3381_v16 }
 0x556   :  { %v3402_v33 = vand.u32 2147483647, %v3382_v34  ;;  %v3394_v5 = vmax.f32 %v3382_v34, 0.0 }
 0x558   :  { %v3410_v51 = vsub.f32 0.0, %v3402_v33 }
 0x55a   :  { %v4439_v40 = vpop.eup %4438  ;;  %v3423_v60 = vmul.f32 1.442695, %v3410_v51 }
 0x55b   :  { %v3465_v63 = vadd.f32 1.0, %v4439_v40  ;;  %v3468_v29 = vmul.f32 -0.5, %v4439_v40  ;;  %v3471_v52 = vand.u32 2147483647, %v4439_v40 }
 0x55c   :  { %4440 = vpow2.f32 %v3423_v60 }
 0x55d   :  { %4442 = vlog2.f32 %v3465_v63  ;;  %v3469_v44 = vadd.f32 1.0, %v3468_v29  ;;  %vm3472_vm6 = vcmp.lt.f32.partialorder %v3471_v52, 0.0004427343 }
 0x55f   :  { %v3470_v13 = vmul.f32 %v4439_v40, %v3469_v44 }
 0x562   :  { %v4441_v15 = vpop.eup %4440 }
 0x563   :  { %v4443_v46 = vpop.eup %4442  ;;  %v3474_v27 = vadd.f32 1.0, %v4441_v15  ;;  %v3477_v38 = vmul.f32 -0.5, %v4441_v15  ;;  %v3480_v19 = vand.u32 2147483647, %v4441_v15 }
 0x564   :  { %v3467_v45 = vmul.f32 0.6931472, %v4443_v46 }
 0x565   :  { %4444 = vlog2.f32 %v3474_v27  ;;  %v3478_v28 = vadd.f32 1.0, %v3477_v38  ;;  %vm3481_vm7 = vcmp.lt.f32.partialorder %v3480_v19, 0.0004427343 }
 0x566   :  { %v3473_v55 = vsel %vm3472_vm6, %v3470_v13, %v3467_v45 }
 0x567   :  { %v3479_v32 = vmul.f32 %v4441_v15, %v3478_v28  ;;  %v3505_v36 = vadd.f32 %v3473_v55, %v3393_v48 }
 0x569   :  { %v4066_v11 = vadd.f32 -0.6931472, %v3505_v36 }
 0x56b   :  { %v4445_v47 = vpop.eup %4444 }
 0x56c   :  { %v3476_v0 = vmul.f32 0.6931472, %v4445_v47 }
 0x56e   :  { %v3482_v61 = vsel %vm3481_vm7, %v3479_v32, %v3476_v0 }
 0x56f   :  { %v3506_v26 = vadd.f32 %v3482_v61, %v3394_v5 }
 0x571   :  { %v4067_v20 = vadd.f32 -0.6931472, %v3506_v26 }
 0x573   :  { %v3519_v31 = vpack.c.bf16 %v4067_v20, %v4066_v11 }
 0x575   :  { %4080 = vmatmul.msk.bf16.gmra.mxu3 %vm1620_vm3, %v3519_v31 }
 0x578   :  { %v3562_v22 = vpop.f32.mrf.mxu3 }
 0x579   :  { %v3563_v59 = vadd.f32 %v5631_v23, %v3562_v22 }
 0x57b   :  { %3582 = vst.msk [vmem:[%s5688_s12] sm:$0xff] %vm1620_vm3, %v3563_v59 }
 0x580   :  { %v3564_v57 = vpop.f32.mrf.mxu3 }
 0x581   :  { %v3565_v4 = vadd.f32 %v5631_v23, %v3564_v57 }
 0x583   :  { %3583 = vst.msk [vmem:[%s5688_s12 + $0x8] sm:$0xff] %vm1620_vm3, %v3565_v4 }
 0x58b   :  { %v3384_v42 = vpop.f32.mrf.mxu2 }
 0x58c   :  { %v3385_v14 = vadd.f32 %v5568_v6, %v3384_v42 }
 0x58e   :  { %v3403_v9 = vand.u32 2147483647, %v3385_v14  ;;  %v3395_v43 = vmax.f32 %v3385_v14, 0.0 }
 0x590   :  { %v3411_v54 = vsub.f32 0.0, %v3403_v9 }
 0x592   :  { %v3425_v53 = vmul.f32 1.442695, %v3411_v54 }
 0x593   :  { %v3386_v35 = vpop.f32.mrf.mxu2 }
 0x594   :  { %4446 = vpow2.f32 %v3425_v53  ;;  %v3387_v50 = vadd.f32 %v5568_v6, %v3386_v35 }
 0x596   :  { %v3404_v58 = vand.u32 2147483647, %v3387_v50  ;;  %v3396_v16 = vmax.f32 %v3387_v50, 0.0 }
 0x598   :  { %v3412_v8 = vsub.f32 0.0, %v3404_v58 }
 0x59a   :  { %v4447_v62 = vpop.eup %4446  ;;  %v3427_v24 = vmul.f32 1.442695, %v3412_v8 }
 0x59b   :  { %v3483_v39 = vadd.f32 1.0, %v4447_v62  ;;  %v3486_v2 = vmul.f32 -0.5, %v4447_v62  ;;  %v3489_v7 = vand.u32 2147483647, %v4447_v62 }
 0x59c   :  { %4448 = vpow2.f32 %v3427_v24 }
 0x59d   :  { %4450 = vlog2.f32 %v3483_v39  ;;  %v3487_v21 = vadd.f32 1.0, %v3486_v2  ;;  %vm3490_vm8 = vcmp.lt.f32.partialorder %v3489_v7, 0.0004427343 }
 0x59f   :  { %v3488_v10 = vmul.f32 %v4447_v62, %v3487_v21 }
 0x5a2   :  { %v4449_v12 = vpop.eup %4448 }
 0x5a3   :  { %v4451_v17 = vpop.eup %4450  ;;  %v3492_v1 = vadd.f32 1.0, %v4449_v12  ;;  %v3495_v41 = vmul.f32 -0.5, %v4449_v12  ;;  %v3498_v6 = vand.u32 2147483647, %v4449_v12 }
 0x5a4   :  { %v3485_v3 = vmul.f32 0.6931472, %v4451_v17 }
 0x5a5   :  { %4452 = vlog2.f32 %v3492_v1  ;;  %v3496_v56 = vadd.f32 1.0, %v3495_v41  ;;  %vm3499_vm9 = vcmp.lt.f32.partialorder %v3498_v6, 0.0004427343 }
 0x5a6   :  { %v3491_v30 = vsel %vm3490_vm8, %v3488_v10, %v3485_v3 }
 0x5a7   :  { %v3497_v18 = vmul.f32 %v4449_v12, %v3496_v56  ;;  %v3507_v49 = vadd.f32 %v3491_v30, %v3395_v43 }
 0x5a9   :  { %v4068_v51 = vadd.f32 -0.6931472, %v3507_v49 }
 0x5ab   :  { %v4453_v25 = vpop.eup %4452 }
 0x5ac   :  { %v3494_v37 = vmul.f32 0.6931472, %v4453_v25 }
 0x5ae   :  { %v3500_v34 = vsel %vm3499_vm9, %v3497_v18, %v3494_v37 }
 0x5af   :  { %v3508_v33 = vadd.f32 %v3500_v34, %v3396_v16 }
 0x5b1   :  { %v4069_v40 = vadd.f32 -0.6931472, %v3508_v33 }
 0x5b3   :  { %v3520_v60 = vpack.c.bf16 %v4069_v40, %v4068_v51 }
 0x5b5   :  { %4081 = vmatmul.msk.bf16.gmra.mxu3 %vm1620_vm3, %v3520_v60 }
 0x5b8   :  { %v3567_v63 = vpop.f32.mrf.mxu3 }
 0x5b9   :  { %v3568_v29 = vadd.f32 %v5631_v23, %v3567_v63 }
 0x5bb   :  { %3584 = vst.msk [vmem:[%s5688_s12 + $0x10] sm:$0xff] %vm1620_vm3, %v3568_v29 }
 0x5c0   :  { %v3569_v15 = vpop.f32.mrf.mxu3 }
 0x5c1   :  { %v3570_v46 = vadd.f32 %v5631_v23, %v3569_v15 }
 0x5c3   :  { %3585 = vst.msk [vmem:[%s5688_s12 + $0x18] sm:$0xff] %vm1620_vm3, %v3570_v46 }
 0x5f8   :  { %v3572_v27 = vpop.f32.mrf.mxu3 }
 0x5f9   :  { %v3573_v44 = vadd.f32 %v5631_v23, %v3572_v27 }
 0x5fb   :  { %3586 = vst.msk [vmem:[%s5688_s12 + $0x20] sm:$0xff] %vm1620_vm3, %v3573_v44 }
 0x600   :  { %v3574_v38 = vpop.f32.mrf.mxu3 }
 0x601   :  { %v3575_v52 = vadd.f32 %v5631_v23, %v3574_v38 }
 0x603   :  { %3587 = vst.msk [vmem:[%s5688_s12 + $0x28] sm:$0xff] %vm1620_vm3, %v3575_v52 }
 0x638   :  { %v3577_v45 = vpop.f32.mrf.mxu3 }
 0x639   :  { %v3578_v13 = vadd.f32 %v5631_v23, %v3577_v45 }
 0x63b   :  { %3588 = vst.msk [vmem:[%s5688_s12 + $0x30] sm:$0xff] %vm1620_vm3, %v3578_v13 }
 0x640   :  { %v3579_v28 = vpop.f32.mrf.mxu3 }
 0x641   :  { %v3580_v19 = vadd.f32 %v5631_v23, %v3579_v28 }
 0x643   :  { %3589 = vst.msk [vmem:[%s5688_s12 + $0x38] sm:$0xff] %vm1620_vm3, %v3580_v19 }

</bundles_post_ra>
